<compile_context>
chip_gen: v7x
topology: tpu7x:2x2x1
jax: 0.10.0
libtpu: 0.0.40
codegen_flags: <defaults>
</compile_context>

<pallas_src>
import math

import jax
import jax.numpy as jnp
from jax.experimental import pallas as pl
from jax.experimental.pallas import tpu as pltpu

NUM_GROUPS = 32
EPS = 1e-5  # nn.GroupNorm default


def attention_block_kernel(x_ref, win_ref, bin_ref, wout_ref, bout_ref, o_ref):
    # x_ref: (Nb, S, C) block -- Nb batch elements, token-major layout.
    x = x_ref[...].astype(jnp.float32)                      # residual source
    nb, s, c = x.shape
    g = NUM_GROUPS
    gs = c // g

    # ---------------- GroupNorm(32, C): statistics only ----------------
    # (affine gamma/beta is folded into the QKV projection by the wrapper)
    mean_c = jnp.mean(x, axis=1)                            # (Nb, C) per-channel mean
    msq_c = jnp.mean(x * x, axis=1)                         # (Nb, C) per-channel E[x^2]
    gmean = jnp.mean(mean_c.reshape(nb, g, gs), axis=-1, keepdims=True)   # (Nb, G, 1)
    gmsq = jnp.mean(msq_c.reshape(nb, g, gs), axis=-1, keepdims=True)
    gvar = jnp.maximum(gmsq - gmean * gmean, 0.0)
    ginv = jax.lax.rsqrt(gvar + EPS)                        # (Nb, G, 1)
    mean_b = jnp.broadcast_to(gmean, (nb, g, gs)).reshape(nb, 1, c)
    inv_b = jnp.broadcast_to(ginv, (nb, g, gs)).reshape(nb, 1, c)
    xn = (x - mean_b) * inv_b                               # (Nb, S, C), f32

    # ---------------- fused QKV projection (bf16 MXU, f32 acc) ----------------
    tok = nb * s
    xn_tok = xn.reshape(tok, c).astype(jnp.bfloat16)        # (Nb*S, C)
    qkv = jnp.dot(xn_tok, win_ref[...],
                  preferred_element_type=jnp.float32) + bin_ref[...]      # (Nb*S, 3C)
    q = qkv[:, :c].reshape(nb, s, c).astype(jnp.bfloat16)   # scale pre-folded into Wq
    k = qkv[:, c:2 * c].reshape(nb, s, c).astype(jnp.bfloat16)
    v = qkv[:, 2 * c:].reshape(nb, s, c).astype(jnp.bfloat16)

    # ---------------- single-head attention, softmax in f32 ----------------
    scores = jnp.einsum('bqd,bkd->bqk', q, k,
                        preferred_element_type=jnp.float32)               # (Nb, S, S)
    scores = scores - jnp.max(scores, axis=-1, keepdims=True)
    p = jnp.exp(scores)
    p = p * pl.reciprocal(jnp.sum(p, axis=-1, keepdims=True), approx=True)
    attn = jnp.einsum('bqk,bkd->bqd', p.astype(jnp.bfloat16), v,
                      preferred_element_type=jnp.float32)                 # (Nb, S, C)

    # ---------------- output projection + residual ----------------
    out = jnp.dot(attn.reshape(tok, c).astype(jnp.bfloat16), wout_ref[...],
                  preferred_element_type=jnp.float32) + bout_ref[...]     # (Nb*S, C)
    o_ref[...] = (out.reshape(nb, s, c) + x).astype(o_ref.dtype)


def _pick_nb(n, c, s, budget_bytes):
    """Largest divisor of N whose per-step VMEM footprint fits the budget."""
    def footprint(nb):
        tok = nb * s
        fp = 2 * 2 * tok * c * 4          # x in + out blocks, double-buffered (f32)
        fp += tok * 3 * c * (4 + 2)       # qkv f32 + bf16 q/k/v
        fp += nb * s * s * (4 + 4 + 2)    # scores + p (f32) + p bf16
        fp += tok * c * (4 + 4)           # attn f32 + out f32
        fp += c * 3 * c * 2 + c * c * 2 + 4 * (4 * c)   # weights + biases
        return fp
    for nb in range(n, 0, -1):
        if n % nb == 0 and footprint(nb) <= budget_bytes:
            return nb
    return 1


def attention_block(x_nchw, params, *, nb=None):
    N, C, H, W = x_nchw.shape
    S = H * W
    assert C % NUM_GROUPS == 0, "channels must be divisible by 32 (GroupNorm)"

    # Layout plumbing in the wrapper (XLA): NCHW -> (N, S, C) token-major so the
    # kernel never has to transpose on the XLU.
    x_nsc = jnp.transpose(x_nchw.reshape(N, C, S), (0, 2, 1))

    gamma = params["gamma"].astype(jnp.float32)             # (C,)
    beta = params["beta"].astype(jnp.float32)               # (C,)
    w_in_t = params["w_in"].T.astype(jnp.float32)           # (C, 3C)
    b_in = params["b_in"].astype(jnp.float32)               # (3C,)
    w_out_t = params["w_out"].T.astype(jnp.float32)         # (C, C)
    b_out = params["b_out"].astype(jnp.float32)             # (C,)

    # Fold GroupNorm affine into the QKV projection:
    #   (gamma*xn + beta) @ W^T + b == xn @ (gamma[:,None]*W^T) + (beta @ W^T + b)
    w_in_f = gamma[:, None] * w_in_t
    b_in_f = beta @ w_in_t + b_in
    # Fold the 1/sqrt(d_head) attention scale into the Q columns.
    scale = 1.0 / math.sqrt(C)
    col_scale = jnp.concatenate([jnp.full((C,), scale, jnp.float32),
                                 jnp.ones((2 * C,), jnp.float32)])
    w_in_f = w_in_f * col_scale[None, :]
    b_in_f = b_in_f * col_scale

    win = w_in_f.astype(jnp.bfloat16)                       # (C, 3C)
    wout = w_out_t.astype(jnp.bfloat16)                     # (C, C)
    bin_ = b_in_f.reshape(1, 3 * C)                         # f32
    bout = b_out.reshape(1, C)                              # f32

    if nb is None:
        nb = _pick_nb(N, C, S, budget_bytes=12 * 2 ** 20)

    out = pl.pallas_call(
        attention_block_kernel,
        out_shape=jax.ShapeDtypeStruct((N, S, C), x_nchw.dtype),
        grid_spec=pltpu.PrefetchScalarGridSpec(
            num_scalar_prefetch=0,
            grid=(N // nb,),
            in_specs=[
                pl.BlockSpec((nb, S, C), lambda n: (n, 0, 0)),   # x (token-major)
                pl.BlockSpec((C, 3 * C), lambda n: (0, 0)),      # fused W_in
                pl.BlockSpec((1, 3 * C), lambda n: (0, 0)),      # fused b_in
                pl.BlockSpec((C, C), lambda n: (0, 0)),          # W_out^T
                pl.BlockSpec((1, C), lambda n: (0, 0)),          # b_out
            ],
            out_specs=pl.BlockSpec((nb, S, C), lambda n: (n, 0, 0)),
        ),
        compiler_params=pltpu.CompilerParams(
            dimension_semantics=("parallel",),    # batch steps independent (v7x megacore)
            vmem_limit_bytes=32 * 2 ** 20,        # explicit budget, safe on v5e/v6e/v7x
        ),
    )(x_nsc, win, bin_, wout, bout)

    return jnp.transpose(out, (0, 2, 1)).reshape(N, C, H, W)


def reference_attention_block(x_nchw, params):
    """Pure-JAX f32 reference mirroring the PyTorch module."""
    N, C, H, W = x_nchw.shape
    S = H * W
    x = x_nchw.reshape(N, C, S).astype(jnp.float32)
    g_size = C // NUM_GROUPS
    xg = x.reshape(N, NUM_GROUPS, g_size * S)
    mean = xg.mean(-1, keepdims=True)
    var = xg.var(-1, keepdims=True)
    xn = ((xg - mean) / jnp.sqrt(var + EPS)).reshape(N, C, S)
    y = params["gamma"][None, :, None] * xn + params["beta"][None, :, None]
    xs = jnp.swapaxes(y, 1, 2)                                   # (N, S, C)
    qkv = xs @ params["w_in"].T + params["b_in"]
    q, k, v = jnp.split(qkv, 3, axis=-1)
    scores = (q @ jnp.swapaxes(k, 1, 2)) / math.sqrt(C)
    p = jax.nn.softmax(scores, axis=-1)
    out = p @ v
    out = out @ params["w_out"].T + params["b_out"]
    out = jnp.swapaxes(out, 1, 2).reshape(N, C, H, W)
    return out + x_nchw


if __name__ == "__main__":
    N, C, H, W = 2, 64, 8, 8        # C must be divisible by 32 (GroupNorm groups)
    key = jax.random.PRNGKey(0)
    kx, kg, kb, kwi, kbi, kwo, kbo = jax.random.split(key, 7)

    x = jax.random.normal(kx, (N, C, H, W), dtype=jnp.float32)

    bound_in = 1.0 / math.sqrt(C)
    params = {
        "gamma": 1.0 + 0.1 * jax.random.normal(kg, (C,), dtype=jnp.float32),
        "beta": 0.1 * jax.random.normal(kb, (C,), dtype=jnp.float32),
        "w_in": jax.random.uniform(kwi, (3 * C, C), jnp.float32,
                                   -bound_in, bound_in),
        "b_in": jax.random.uniform(kbi, (3 * C,), jnp.float32,
                                   -bound_in, bound_in),
        "w_out": jax.random.uniform(kwo, (C, C), jnp.float32,
                                    -bound_in, bound_in),
        "b_out": jax.random.uniform(kbo, (C,), jnp.float32,
                                    -bound_in, bound_in),
    }

    out = attention_block(x, params)
    out = jax.block_until_ready(out)

    ref = reference_attention_block(x, params)
    assert out.shape == (N, C, H, W)
    max_err = float(jnp.max(jnp.abs(out - ref)))
    # bf16 MXU operands (f32 accumulation) -> loosened tolerance vs f32 reference.
    assert jnp.allclose(out, ref, rtol=5e-2, atol=5e-2), max_err

    print("KERNEL_OK")
</pallas_src>

<mosaic_0001>
module attributes {stable_mosaic.version = 11 : i64} {
  func.func @attention_block_kernel(%arg0: i32, %arg1: memref<2x64x64xf32, #tpu.memory_space<vmem>>, %arg2: memref<64x192xbf16, #tpu.memory_space<vmem>>, %arg3: memref<1x192xf32, #tpu.memory_space<vmem>>, %arg4: memref<64x64xbf16, #tpu.memory_space<vmem>>, %arg5: memref<1x64xf32, #tpu.memory_space<vmem>>, %arg6: memref<2x64x64xf32, #tpu.memory_space<vmem>>) attributes {dimension_semantics = [#tpu.dimension_semantics<parallel>], iteration_bounds = array<i64: 1>, scalar_prefetch = 0 : i64, scratch_operands = 0 : i64, tpu.core_type = #tpu.core_type<tc>, window_params = [{transform_indices = @transform_0, window_bounds = array<i64: 2, 64, 64>}, {pipeline_mode = #tpu.pipeline_mode<synchronous>, transform_indices = @transform_1, window_bounds = array<i64: 64, 192>}, {pipeline_mode = #tpu.pipeline_mode<synchronous>, transform_indices = @transform_2, window_bounds = array<i64: 1, 192>}, {pipeline_mode = #tpu.pipeline_mode<synchronous>, transform_indices = @transform_3, window_bounds = array<i64: 64, 64>}, {pipeline_mode = #tpu.pipeline_mode<synchronous>, transform_indices = @transform_4, window_bounds = array<i64: 1, 64>}, {transform_indices = @transform_5, window_bounds = array<i64: 2, 64, 64>}]} {
    %c0 = arith.constant 0 : index
    %c0_0 = arith.constant 0 : index
    %c0_1 = arith.constant 0 : index
    %0 = vector.load %arg1[%c0, %c0_0, %c0_1] : memref<2x64x64xf32, #tpu.memory_space<vmem>>, vector<2x64x64xf32>
    %cst = arith.constant dense<0.000000e+00> : vector<2x64xf32>
    %1 = vector.multi_reduction <add>, %0, %cst [1] : vector<2x64x64xf32> to vector<2x64xf32>
    %cst_2 = arith.constant 6.400000e+01 : f32
    %2 = vector.broadcast %cst_2 : f32 to vector<2x64xf32>
    %3 = arith.divf %1, %2 : vector<2x64xf32>
    %4 = arith.mulf %0, %0 : vector<2x64x64xf32>
    %cst_3 = arith.constant dense<0.000000e+00> : vector<2x64xf32>
    %5 = vector.multi_reduction <add>, %4, %cst_3 [1] : vector<2x64x64xf32> to vector<2x64xf32>
    %cst_4 = arith.constant 6.400000e+01 : f32
    %6 = vector.broadcast %cst_4 : f32 to vector<2x64xf32>
    %7 = arith.divf %5, %6 : vector<2x64xf32>
    %8 = vector.shape_cast %3 : vector<2x64xf32> to vector<2x32x2xf32>
    %cst_5 = arith.constant dense<0.000000e+00> : vector<2x32xf32>
    %9 = vector.multi_reduction <add>, %8, %cst_5 [2] : vector<2x32x2xf32> to vector<2x32xf32>
    %10 = vector.shape_cast %9 : vector<2x32xf32> to vector<2x32x1xf32>
    %cst_6 = arith.constant 2.000000e+00 : f32
    %11 = vector.broadcast %cst_6 : f32 to vector<2x32x1xf32>
    %12 = arith.divf %10, %11 : vector<2x32x1xf32>
    %13 = vector.shape_cast %7 : vector<2x64xf32> to vector<2x32x2xf32>
    %cst_7 = arith.constant dense<0.000000e+00> : vector<2x32xf32>
    %14 = vector.multi_reduction <add>, %13, %cst_7 [2] : vector<2x32x2xf32> to vector<2x32xf32>
    %15 = vector.shape_cast %14 : vector<2x32xf32> to vector<2x32x1xf32>
    %cst_8 = arith.constant 2.000000e+00 : f32
    %16 = vector.broadcast %cst_8 : f32 to vector<2x32x1xf32>
    %17 = arith.divf %15, %16 : vector<2x32x1xf32>
    %18 = arith.mulf %12, %12 : vector<2x32x1xf32>
    %19 = arith.subf %17, %18 : vector<2x32x1xf32>
    %cst_9 = arith.constant 0.000000e+00 : f32
    %20 = vector.broadcast %cst_9 : f32 to vector<2x32x1xf32>
    %21 = arith.maximumf %19, %20 : vector<2x32x1xf32>
    %cst_10 = arith.constant 9.99999974E-6 : f32
    %22 = vector.broadcast %cst_10 : f32 to vector<2x32x1xf32>
    %23 = arith.addf %21, %22 : vector<2x32x1xf32>
    %24 = math.rsqrt %23 : vector<2x32x1xf32>
    %25 = vector.shape_cast %12 : vector<2x32x1xf32> to vector<2x32x1xf32>
    %26 = vector.broadcast %25 : vector<2x32x1xf32> to vector<2x32x2xf32>
    %27 = vector.shape_cast %26 : vector<2x32x2xf32> to vector<2x1x64xf32>
    %28 = vector.shape_cast %24 : vector<2x32x1xf32> to vector<2x32x1xf32>
    %29 = vector.broadcast %28 : vector<2x32x1xf32> to vector<2x32x2xf32>
    %30 = vector.shape_cast %29 : vector<2x32x2xf32> to vector<2x1x64xf32>
    %31 = vector.broadcast %27 : vector<2x1x64xf32> to vector<2x64x64xf32>
    %32 = arith.subf %0, %31 : vector<2x64x64xf32>
    %33 = vector.broadcast %30 : vector<2x1x64xf32> to vector<2x64x64xf32>
    %34 = arith.mulf %32, %33 : vector<2x64x64xf32>
    %35 = vector.shape_cast %34 : vector<2x64x64xf32> to vector<128x64xf32>
    %36 = arith.truncf %35 : vector<128x64xf32> to vector<128x64xbf16>
    %c0_11 = arith.constant 0 : index
    %c0_12 = arith.constant 0 : index
    %37 = vector.load %arg2[%c0_11, %c0_12] : memref<64x192xbf16, #tpu.memory_space<vmem>>, vector<64x192xbf16>
    %cst_13 = arith.constant dense<0.000000e+00> : vector<128x192xf32>
    %38 = tpu.matmul %36, %37, %cst_13 {dimension_numbers = #tpu.dot_dimension_numbers<[1], [0], [0], [1], [0, 0, 1, 1], [], []>} : vector<128x64xbf16>, vector<64x192xbf16>, vector<128x192xf32> -> vector<128x192xf32>
    %c0_14 = arith.constant 0 : index
    %c0_15 = arith.constant 0 : index
    %39 = vector.load %arg3[%c0_14, %c0_15] : memref<1x192xf32, #tpu.memory_space<vmem>>, vector<1x192xf32>
    %40 = vector.broadcast %39 : vector<1x192xf32> to vector<128x192xf32>
    %41 = arith.addf %38, %40 : vector<128x192xf32>
    %42 = vector.extract_strided_slice %41 {offsets = [0, 0], sizes = [128, 64], strides = [1, 1]} : vector<128x192xf32> to vector<128x64xf32>
    %43 = vector.shape_cast %42 : vector<128x64xf32> to vector<2x64x64xf32>
    %44 = arith.truncf %43 : vector<2x64x64xf32> to vector<2x64x64xbf16>
    %45 = vector.extract_strided_slice %41 {offsets = [0, 64], sizes = [128, 64], strides = [1, 1]} : vector<128x192xf32> to vector<128x64xf32>
    %46 = vector.shape_cast %45 : vector<128x64xf32> to vector<2x64x64xf32>
    %47 = arith.truncf %46 : vector<2x64x64xf32> to vector<2x64x64xbf16>
    %48 = vector.extract_strided_slice %41 {offsets = [0, 128], sizes = [128, 64], strides = [1, 1]} : vector<128x192xf32> to vector<128x64xf32>
    %49 = vector.shape_cast %48 : vector<128x64xf32> to vector<2x64x64xf32>
    %50 = arith.truncf %49 : vector<2x64x64xf32> to vector<2x64x64xbf16>
    "tpu.trace_start"() <{level = 10 : i32, message = "bqd,bkd->bqk"}> : () -> ()
    %cst_16 = arith.constant dense<0.000000e+00> : vector<2x64x64xf32>
    %51 = tpu.matmul %44, %47, %cst_16 {dimension_numbers = #tpu.dot_dimension_numbers<[2], [2], [1], [1], [0, 0, 0, 1, 1, 1], [0], [0]>} : vector<2x64x64xbf16>, vector<2x64x64xbf16>, vector<2x64x64xf32> -> vector<2x64x64xf32>
    "tpu.trace_stop"() : () -> ()
    %cst_17 = arith.constant dense<0xFF800000> : vector<2x64xf32>
    %52 = vector.multi_reduction <maximumf>, %51, %cst_17 [2] : vector<2x64x64xf32> to vector<2x64xf32>
    %53 = vector.shape_cast %52 : vector<2x64xf32> to vector<2x64x1xf32>
    %54 = vector.broadcast %53 : vector<2x64x1xf32> to vector<2x64x64xf32>
    %55 = arith.subf %51, %54 : vector<2x64x64xf32>
    %56 = math.exp %55 : vector<2x64x64xf32>
    %cst_18 = arith.constant dense<0.000000e+00> : vector<2x64xf32>
    %57 = vector.multi_reduction <add>, %56, %cst_18 [2] : vector<2x64x64xf32> to vector<2x64xf32>
    %58 = vector.shape_cast %57 : vector<2x64xf32> to vector<2x64x1xf32>
    %59 = tpu.reciprocal %58 {approx = true} : vector<2x64x1xf32> -> vector<2x64x1xf32>
    %60 = vector.broadcast %59 : vector<2x64x1xf32> to vector<2x64x64xf32>
    %61 = arith.mulf %56, %60 : vector<2x64x64xf32>
    %62 = arith.truncf %61 : vector<2x64x64xf32> to vector<2x64x64xbf16>
    "tpu.trace_start"() <{level = 10 : i32, message = "bqk,bkd->bqd"}> : () -> ()
    %cst_19 = arith.constant dense<0.000000e+00> : vector<2x64x64xf32>
    %63 = tpu.matmul %62, %50, %cst_19 {dimension_numbers = #tpu.dot_dimension_numbers<[2], [1], [1], [2], [0, 0, 0, 1, 1, 2], [0], [0]>} : vector<2x64x64xbf16>, vector<2x64x64xbf16>, vector<2x64x64xf32> -> vector<2x64x64xf32>
    "tpu.trace_stop"() : () -> ()
    %64 = vector.shape_cast %63 : vector<2x64x64xf32> to vector<128x64xf32>
    %65 = arith.truncf %64 : vector<128x64xf32> to vector<128x64xbf16>
    %c0_20 = arith.constant 0 : index
    %c0_21 = arith.constant 0 : index
    %66 = vector.load %arg4[%c0_20, %c0_21] : memref<64x64xbf16, #tpu.memory_space<vmem>>, vector<64x64xbf16>
    %cst_22 = arith.constant dense<0.000000e+00> : vector<128x64xf32>
    %67 = tpu.matmul %65, %66, %cst_22 {dimension_numbers = #tpu.dot_dimension_numbers<[1], [0], [0], [1], [0, 0, 1, 1], [], []>} : vector<128x64xbf16>, vector<64x64xbf16>, vector<128x64xf32> -> vector<128x64xf32>
    %c0_23 = arith.constant 0 : index
    %c0_24 = arith.constant 0 : index
    %68 = vector.load %arg5[%c0_23, %c0_24] : memref<1x64xf32, #tpu.memory_space<vmem>>, vector<1x64xf32>
    %69 = vector.broadcast %68 : vector<1x64xf32> to vector<128x64xf32>
    %70 = arith.addf %67, %69 : vector<128x64xf32>
    %71 = vector.shape_cast %70 : vector<128x64xf32> to vector<2x64x64xf32>
    %72 = arith.addf %71, %0 : vector<2x64x64xf32>
    %c0_25 = arith.constant 0 : index
    %c0_26 = arith.constant 0 : index
    %c0_27 = arith.constant 0 : index
    %73 = vector.load %arg6[%c0_25, %c0_26, %c0_27] : memref<2x64x64xf32, #tpu.memory_space<vmem>>, vector<2x64x64xf32>
    tpu.vector_store %arg6[%c0_25, %c0_26, %c0_27], %72 {strides = array<i32>} : memref<2x64x64xf32, #tpu.memory_space<vmem>>, vector<2x64x64xf32>,
    return
  }
  func.func @transform_0(%arg0: i32) -> (i32, i32, i32) {
    %c0_i32 = arith.constant 0 : i32
    %c0_i32_0 = arith.constant 0 : i32
    %c0_i32_1 = arith.constant 0 : i32
    return %arg0, %c0_i32, %c0_i32_0 : i32, i32, i32
  }
  func.func @transform_1(%arg0: i32) -> (i32, i32) {
    %c0_i32 = arith.constant 0 : i32
    %c0_i32_0 = arith.constant 0 : i32
    %c0_i32_1 = arith.constant 0 : i32
    return %c0_i32, %c0_i32_0 : i32, i32
  }
  func.func @transform_2(%arg0: i32) -> (i32, i32) {
    %c0_i32 = arith.constant 0 : i32
    %c0_i32_0 = arith.constant 0 : i32
    %c0_i32_1 = arith.constant 0 : i32
    return %c0_i32, %c0_i32_0 : i32, i32
  }
  func.func @transform_3(%arg0: i32) -> (i32, i32) {
    %c0_i32 = arith.constant 0 : i32
    %c0_i32_0 = arith.constant 0 : i32
    %c0_i32_1 = arith.constant 0 : i32
    return %c0_i32, %c0_i32_0 : i32, i32
  }
  func.func @transform_4(%arg0: i32) -> (i32, i32) {
    %c0_i32 = arith.constant 0 : i32
    %c0_i32_0 = arith.constant 0 : i32
    %c0_i32_1 = arith.constant 0 : i32
    return %c0_i32, %c0_i32_0 : i32, i32
  }
  func.func @transform_5(%arg0: i32) -> (i32, i32, i32) {
    %c0_i32 = arith.constant 0 : i32
    %c0_i32_0 = arith.constant 0 : i32
    %c0_i32_1 = arith.constant 0 : i32
    return %arg0, %c0_i32, %c0_i32_0 : i32, i32, i32
  }
}

</mosaic_0001>

<bundles_post_ra>
// kernel: tpu_custom_call.1
= control target key start
LH: loop header
LB: loop body
LE: loop exit
PB: predicated region body
PF: predicated region fallthrough
CT: control target
= control target key end

     0   :  { %10 = vsyncpa [#allocation3], 0  ;;  %s5758_s0 = inlined_call_operand.hbm [shape: f32[2,64,64], index: 0, kind: input, shape index: {}]   ;;  %s5759_s1 = inlined_call_operand.hbm [shape: bf16[64,192], index: 1, kind: input, shape index: {}]   ;;  %s5760_s2 = inlined_call_operand.vmem [shape: f32[1,192], index: 2, kind: input, shape index: {}]   ;;  %s5761_s3 = inlined_call_operand.hbm [shape: bf16[64,64], index: 3, kind: input, shape index: {}]   ;;  %s5762_s4 = inlined_call_operand.vmem [shape: f32[1,64], index: 4, kind: input, shape index: {}]   ;;  %s5763_s5 = inlined_call_operand.hbm [shape: f32[2,64,64], index: 5, kind: output, shape index: {}]  }
   0x1   :  { %11 = vsyncpa [#allocation6], 0 }
   0x2   :  { %12 = vsyncpa [#allocation4], 0  ;;  %s4071_s18 = smov [#allocation5]   ;;  %s4072_s20 = smov [#allocation2]  }
   0x3   :  { %s30_s19 = sshll.u32 %s4071_s18, 4  ;;  %s18_s21 = sshll.u32 %s4072_s20, 4  ;;  %s31_s19 = int_to_ptr.vmem [resolvable:$true] %s30_s19  ;;  %s4173_s21 = int_to_ptr.vmem [resolvable:$true] %s18_s21 }
   0x4   :  { %s3977_s24 = scalar_lea.hbm %s5759_s1, 1024 }
   0x5   :  { %p3978_p0 = scmp.ne.s32.totalorder %s5759_s1, %s3977_s24  ;;  %p3981_p1 = scmp.lt.u32.totalorder %s3977_s24, %s5759_s1 }
   0x7   :  { %p3983_p2 = pnand %p3981_p1, %p3978_p0 }
   0x9   :  { %3986 = shalt.err (!%p3983_p2)
}
   0xa   :  { %s3987_s29 = scalar_lea.vmem %s31_s19, 1024  ;;  %p3992_p4 = scmp.lt.s32.totalorder %s31_s19, %s31_s19 }
   0xb   :  { %p3988_p3 = scmp.ne.s32.totalorder %s31_s19, %s3987_s29  ;;  %p3993_p5 = scmp.lt.s32.totalorder %s3987_s29, %s3987_s29 }
   0xd   :  { %p3994_p6 = por %p3993_p5, %p3992_p4 }
   0xf   :  { %p3995_p7 = pnand %p3994_p6, %p3988_p3 }
  0x11   :  { %3998 = shalt.err (!%p3995_p7)
}
  0x12   :  { %s5764_s30 = smov 128   ;;  %s4074_s6 = smov 8  }
  0x13   :  { %36 = dma.hbm_to_vmem [thread:$0]  %s5759_s1, 1024, %s31_s19, [#allocation6], %s5764_s30, %s5764_s30, %s4074_s6  }
  0x14   :  { %s3999_s11 = scalar_lea.hbm %s5758_s0, 2048 }
  0x15   :  { %p4000_p8 = scmp.ne.s32.totalorder %s5758_s0, %s3999_s11  ;;  %p4003_p9 = scmp.lt.u32.totalorder %s3999_s11, %s5758_s0 }
  0x17   :  { %p4005_p10 = pnand %p4003_p9, %p4000_p8 }
  0x19   :  { %4008 = shalt.err (!%p4005_p10)
}
  0x1a   :  { %s4009_s16 = scalar_lea.vmem %s4173_s21, 2048  ;;  %p4014_p12 = scmp.lt.s32.totalorder %s4173_s21, %s4173_s21 }
  0x1b   :  { %p4010_p11 = scmp.ne.s32.totalorder %s4173_s21, %s4009_s16  ;;  %p4015_p13 = scmp.lt.s32.totalorder %s4009_s16, %s4009_s16 }
  0x1d   :  { %p4016_p0 = por %p4015_p13, %p4014_p12 }
  0x1f   :  { %p4017_p1 = pnand %p4016_p0, %p4010_p11 }
  0x21   :  { %4020 = shalt.err (!%p4017_p1)
}
  0x22   :  { %24 = dma.hbm_to_vmem [thread:$0]  %s5758_s0, 2048, %s4173_s21, [#allocation3], %s5764_s30, %s5764_s30, %s4074_s6  }
  0x23   :  { %s4075_s18 = smov [#allocation7]   ;;  %s4021_s23 = scalar_lea.hbm %s5761_s3, 512 }
  0x24   :  { %s44_s19 = sshll.u32 %s4075_s18, 4  ;;  %p4022_p2 = scmp.ne.s32.totalorder %s5761_s3, %s4021_s23  ;;  %s45_s19 = int_to_ptr.vmem [resolvable:$true] %s44_s19 }
  0x25   :  { %p4025_p3 = scmp.lt.u32.totalorder %s4021_s23, %s5761_s3 }
  0x27   :  { %p4027_p4 = pnand %p4025_p3, %p4022_p2 }
  0x29   :  { %4030 = shalt.err (!%p4027_p4)
}
  0x2a   :  { %s4031_s28 = scalar_lea.vmem %s45_s19, 512  ;;  %p4036_p6 = scmp.lt.s32.totalorder %s45_s19, %s45_s19 }
  0x2b   :  { %p4032_p5 = scmp.ne.s32.totalorder %s45_s19, %s4031_s28  ;;  %p4037_p7 = scmp.lt.s32.totalorder %s4031_s28, %s4031_s28 }
  0x2d   :  { %p4038_p8 = por %p4037_p7, %p4036_p6 }
  0x2f   :  { %p4039_p9 = pnand %p4038_p8, %p4032_p5 }
  0x31   :  { %4042 = shalt.err (!%p4039_p9)
}
  0x32   :  { %s5765_s0 = smov 64   ;;  %s4077_s21 = smov 4  }
  0x33   :  { %50 = dma.hbm_to_vmem [thread:$0]  %s5761_s3, 512, %s45_s19, [#allocation6], %s5765_s0, %s5765_s0, %s4077_s21  }
  0x34   :  { %4065 = dma.done.wait [#allocation3], 2048  }
  0x35   :  { %4066 = vsyncadd [#allocation3], 4294965248 }
  0x36   :  { %4067 = dma.done.wait [#allocation6], 1536  }
  0x37   :  { %4068 = vsyncadd [#allocation6], 4294965760  ;;  %vm5784_vm0 = vcmask 523264   ;;  %v71_v0 = vld [vmem:[#allocation2 + $0x40] sm:$0xff]  ;;  %v72_v1 = vld [vmem:[#allocation2 + $0x48] sm:$0xff]  ;;  %s4078_s3 = smov 122  }
  0x38   :  { %v73_v2 = vld [vmem:[#allocation2 + $0x50] sm:$0xff]  ;;  %v74_v3 = vld [vmem:[#allocation2 + $0x58] sm:$0xff]  ;;  %v101_v4 = vsel %vm5784_vm0, %v71_v0, 0.0  ;;  %v102_v5 = vsel %vm5784_vm0, %v72_v1, 0.0  ;;  %v75_v7 = vld [vmem:[#allocation2 + $0x60] sm:$0xff]  ;;  %v133_v16 = vmul.f32 %v71_v0, %v71_v0  ;;  %v134_v23 = vmul.f32 %v72_v1, %v72_v1  ;;  %s4079_s8 = smov 126  }
  0x39   :  { %v104_v6 = vsel %vm5784_vm0, %v73_v2, 0.0  ;;  %v76_v8 = vld [vmem:[#allocation2 + $0x68] sm:$0xff]  ;;  %v103_v9 = vadd.f32 %v102_v5, %v101_v4  ;;  %v63_v10 = vld [vmem:[#allocation2] sm:$0xff]  ;;  %v106_v11 = vsel %vm5784_vm0, %v74_v3, 0.0  ;;  %v65_v13 = vld [vmem:[#allocation2 + $0x10] sm:$0xff]  ;;  %v108_v24 = vsel %vm5784_vm0, %v75_v7, 0.0 }
  0x3a   :  { %v64_v12 = vld [vmem:[#allocation2 + $0x8] sm:$0xff]  ;;  %v66_v14 = vld [vmem:[#allocation2 + $0x18] sm:$0xff]  ;;  %v80_v15 = vsel %vm5784_vm0, %v63_v10, 0.0  ;;  %v77_v17 = vld [vmem:[#allocation2 + $0x70] sm:$0xff]  ;;  %v83_v22 = vsel %vm5784_vm0, %v65_v13, 0.0  ;;  %v135_v30 = vmul.f32 %v73_v2, %v73_v2  ;;  %v136_v31 = vmul.f32 %v74_v3, %v74_v3  ;;  %s4080_s9 = smov 120  }
  0x3b   :  { %v78_v18 = vld [vmem:[#allocation2 + $0x78] sm:$0xff]  ;;  %v105_v19 = vadd.f32 %v104_v6, %v103_v9  ;;  %v67_v20 = vld [vmem:[#allocation2 + $0x20] sm:$0xff]  ;;  %v81_v21 = vsel %vm5784_vm0, %v64_v12, 0.0  ;;  %v68_v25 = vld [vmem:[#allocation2 + $0x28] sm:$0xff]  ;;  %v85_v29 = vsel %vm5784_vm0, %v66_v14, 0.0  ;;  %v110_v32 = vsel %vm5784_vm0, %v76_v8, 0.0 }
  0x3c   :  { %v82_v26 = vadd.f32 %v81_v21, %v80_v15  ;;  %v4233_v28 = vld [vmem:[#allocation2 + $0x30] sm:$0xff]  ;;  %v112_v33 = vsel %vm5784_vm0, %v77_v17, 0.0  ;;  %v87_v35 = vsel %vm5784_vm0, %v67_v20, 0.0  ;;  %v137_v37 = vmul.f32 %v75_v7, %v75_v7  ;;  %v70_v45 = vld [vmem:[#allocation2 + $0x38] sm:$0xff]  ;;  %s4081_s10 = smov 124   ;;  %s4082_s11 = smov 116  }
  0x3d   :  { %v107_v27 = vadd.f32 %v106_v11, %v105_v19  ;;  %v162_v38 = vsel %vm5784_vm0, %v133_v16, 0.0  ;;  %v163_v39 = vsel %vm5784_vm0, %v134_v23, 0.0  ;;  %v114_v40 = vsel %vm5784_vm0, %v78_v18, 0.0  ;;  %s4083_s12 = smov 118   ;;  %s4084_s13 = smov 114  }
  0x3e   :  { %v84_v34 = vadd.f32 %v83_v22, %v82_v26  ;;  %v164_v42 = vadd.f32 %v163_v39, %v162_v38  ;;  %v165_v43 = vsel %vm5784_vm0, %v135_v30, 0.0  ;;  %v89_v46 = vsel %vm5784_vm0, %v68_v25, 0.0  ;;  %s4085_s14 = smov 112   ;;  %s4086_s15 = smov 110  }
  0x3f   :  { %v109_v36 = vadd.f32 %v108_v24, %v107_v27  ;;  %v138_v47 = vmul.f32 %v76_v8, %v76_v8  ;;  %v167_v48 = vsel %vm5784_vm0, %v136_v31, 0.0  ;;  %v91_v50 = vsel %vm5784_vm0, %v4233_v28, 0.0  ;;  %s4087_s16 = smov 108   ;;  %s4088_s1 = smov 106  }
  0x40   :  { %v86_v41 = vadd.f32 %v85_v29, %v84_v34  ;;  %v166_v51 = vadd.f32 %v165_v43, %v164_v42  ;;  %v125_v52 = vmul.f32 %v63_v10, %v63_v10  ;;  %v169_v54 = vsel %vm5784_vm0, %v137_v37, 0.0  ;;  %s4089_s17 = smov 104   ;;  %s4090_s18 = smov 102  }
  0x41   :  { %v111_v44 = vadd.f32 %v110_v32, %v109_v36  ;;  %v126_v55 = vmul.f32 %v64_v12, %v64_v12  ;;  %v127_v56 = vmul.f32 %v65_v13, %v65_v13  ;;  %v93_v58 = vsel %vm5784_vm0, %v70_v45, 0.0  ;;  %s4091_s19 = smov 100   ;;  %s4092_s20 = smov 98  }
  0x42   :  { %v88_v49 = vadd.f32 %v87_v35, %v86_v41  ;;  %v139_v59 = vmul.f32 %v77_v17, %v77_v17  ;;  %v168_v60 = vadd.f32 %v167_v48, %v166_v51  ;;  %v171_v62 = vsel %vm5784_vm0, %v138_v47, 0.0  ;;  %s4093_s22 = smov 96   ;;  %s4094_s23 = smov 94  }
  0x43   :  { %v113_v53 = vadd.f32 %v112_v33, %v111_v44  ;;  %v128_v63 = vmul.f32 %v66_v14, %v66_v14  ;;  %v141_v0 = vsel %vm5784_vm0, %v125_v52, 0.0  ;;  %v142_v3 = vsel %vm5784_vm0, %v126_v55, 0.0  ;;  %s4095_s24 = smov 92   ;;  %s4096_s25 = smov 90  }
  0x44   :  { %v90_v57 = vadd.f32 %v89_v46, %v88_v49  ;;  %v170_v2 = vadd.f32 %v169_v54, %v168_v60  ;;  %v144_v4 = vsel %vm5784_vm0, %v127_v56, 0.0  ;;  %v143_v6 = vadd.f32 %v142_v3, %v141_v0  ;;  %s4098_s26 = smov 88   ;;  %s4099_s27 = smov 86  }
  0x45   :  { %v115_v61 = vadd.f32 %v114_v40, %v113_v53  ;;  %v140_v9 = vmul.f32 %v78_v18, %v78_v18  ;;  %v173_v13 = vsel %vm5784_vm0, %v139_v59, 0.0  ;;  %v129_v15 = vmul.f32 %v67_v20, %v67_v20  ;;  %s4100_s28 = smov 84   ;;  %s4101_s29 = smov 82  }
  0x46   :  { %v92_v1 = vadd.f32 %v91_v50, %v90_v57  ;;  %v172_v10 = vadd.f32 %v171_v62, %v170_v2  ;;  %v145_v11 = vadd.f32 %v144_v4, %v143_v6  ;;  %v146_v14 = vsel %vm5784_vm0, %v128_v63, 0.0  ;;  %s4103_s7 = smov 80   ;;  %s4136_s30 = smov 54  }
  0x47   :  { %v116_v5 = vrot.slane %v115_v61, 4  ;;  %v175_v24 = vsel %vm5784_vm0, %v140_v9, 0.0  ;;  %v130_v26 = vmul.f32 %v68_v25, %v68_v25  ;;  %v148_v27 = vsel %vm5784_vm0, %v129_v15, 0.0  ;;  %s4137_s0 = smov 56  }
  0x48   :  { %v94_v7 = vadd.f32 %v93_v58, %v92_v1  ;;  %v174_v21 = vadd.f32 %v173_v13, %v172_v10  ;;  %v147_v22 = vadd.f32 %v146_v14, %v145_v11  ;;  %v131_v20 = vmul.f32 %v4233_v28, %v4233_v28 }
  0x49   :  { %v117_v8 = vadd.f32 %v116_v5, %v115_v61  ;;  %v150_v33 = vsel %vm5784_vm0, %v130_v26, 0.0  ;;  %v132_v37 = vmul.f32 %v70_v45, %v70_v45  ;;  %v4097_v1 = vmov 1983009808  }
  0x4a   :  { %v95_v12 = vrot.slane %v94_v7, 4  ;;  %v176_v31 = vadd.f32 %v175_v24, %v174_v21  ;;  %v149_v32 = vadd.f32 %v148_v27, %v147_v22  ;;  %v152_v38 = vsel %vm5784_vm0, %v131_v20, 0.0 }
  0x4b   :  { %v118_v16 = vrot.slane %v117_v8, 2  ;;  %v154_v41 = vsel %vm5784_vm0, %v132_v37, 0.0  ;;  %v410_v2 = vunpack.c.l.s4 %v4097_v1  ;;  %v412_v3 = vlaneseq }
  0x4c   :  { %v96_v17 = vadd.f32 %v95_v12, %v94_v7  ;;  %v177_v35 = vrot.slane %v176_v31, 4  ;;  %v151_v36 = vadd.f32 %v150_v33, %v149_v32  ;;  %vm312_vm1 = vcmask 1041409  }
  0x4d   :  { %v119_v19 = vadd.f32 %v118_v16, %v117_v8  ;;  %v411_v6 = vunpack.c.0.s8 %v410_v2  ;;  %v4383_v7 = vshrl.u32 %v412_v3, 7  ;;  %v4102_v22 = vmov 1934713408  }
  0x4e   :  { %v97_v23 = vrot.slane %v96_v17, 2  ;;  %v178_v39 = vadd.f32 %v177_v35, %v176_v31  ;;  %v153_v40 = vadd.f32 %v152_v38, %v151_v36  ;;  %vm608_vm2 = vcmask 15360  }
  0x4f   :  { %v120_v18 = vrot.slane %v119_v19, 1  ;;  %5801 = vst [vmem:[#allocation12_spill] sm:$0xff] %v4383_v7  ;;  %v4395_v14 = vsub.s32 %v411_v6, %v4383_v7  ;;  %vm1778_vm3 = vcmask 31744   ;;  %vm1781_vm4 = vcmask 48128  }
  0x50   :  { %v98_v30 = vadd.f32 %v97_v23, %v96_v17  ;;  %v179_v43 = vrot.slane %v178_v39, 2  ;;  %v155_v44 = vadd.f32 %v154_v41, %v153_v40  ;;  %v442_v23 = vunpack.c.l.s4 %v4102_v22 }
  0x51   :  { %v121_v29 = vadd.f32 %v120_v18, %v119_v19  ;;  %vm5779_vm5 = vcmask 64512   ;;  %vm5782_vm6 = vcmask 80896   ;;  %vm5780_vm7 = vcmask 97280  }
  0x52   :  { %v99_v25 = vrot.slane %v98_v30, 1  ;;  %v180_v45 = vadd.f32 %v179_v43, %v178_v39  ;;  %v156_v46 = vrot.slane %v155_v44, 4  ;;  %v443_v20 = vunpack.c.0.s8 %v442_v23 }
  0x53   :  { %v4260_v34 = vmul.f32 0.015625, %v121_v29  ;;  %vm5781_vm8 = vcmask 113664   ;;  %vm5783_vm9 = vcmask 130048   ;;  %vm1799_vm10 = vcmask 146432  }
  0x54   :  { %v100_v28 = vadd.f32 %v99_v25, %v98_v30  ;;  %v181_v47 = vrot.slane %v180_v45, 1  ;;  %v157_v48 = vadd.f32 %v156_v46, %v155_v44  ;;  %v4414_v44 = vsub.s32 %v443_v20, %v4383_v7 }
  0x55   :  { %197 = vrot.lane.b32.xlu1 %v4260_v34, %s4078_s3  ;;  %189 = vrot.lane.b32.xlu0 %v4260_v34, %s4079_s8  ;;  %v311_v0 = vrot.slane %v4260_v34, 7  ;;  %vm5787_vm11 = vcmask 162816   ;;  %vm5785_vm12 = vcmask 179200   ;;  %vm5786_vm13 = vcmask 195584  }
  0x56   :  { %v4276_v42 = vmul.f32 0.015625, %v100_v28  ;;  %v182_v49 = vadd.f32 %v181_v47, %v180_v45  ;;  %v158_v50 = vrot.slane %v157_v48, 2  ;;  %vm5791_vm14 = vcmask 211968  }
  0x57   :  { %vm5788_vm15 = vcmask 228352   ;;  %vm1835_vm0 = vcmask 343040  }
  0x58   :  { %v4294_v51 = vmul.f32 0.015625, %v182_v49  ;;  %v159_v52 = vadd.f32 %v158_v50, %v157_v48  ;;  %v313_v9 = vsel %vm312_vm1, %v311_v0, %v4276_v42 }
  0x59   :  { %201 = vrot.lane.b32.xlu1 %v4260_v34, %s4080_s9  ;;  %193 = vrot.lane.b32.xlu0 %v4260_v34, %s4081_s10 }
  0x5a   :  { %v160_v53 = vrot.slane %v159_v52, 1 }
  0x5c   :  { %v161_v54 = vadd.f32 %v160_v53, %v159_v52 }
  0x5d   :  { %209 = vrot.lane.b32.xlu1 %v4260_v34, %s4082_s11  ;;  %205 = vrot.lane.b32.xlu0 %v4260_v34, %s4083_s12 }
  0x5e   :  { %v4308_v55 = vmul.f32 0.015625, %v161_v54 }
  0x61   :  { %213 = vrot.lane.b32.xlu0 %v4260_v34, %s4084_s13  ;;  %187 = vrot.lane.b32.xlu1 %v4276_v42, %s4079_s8 }
  0x65   :  { %191 = vrot.lane.b32.xlu0 %v4276_v42, %s4081_s10  ;;  %195 = vrot.lane.b32.xlu1 %v4276_v42, %s4078_s3 }
  0x69   :  { %199 = vrot.lane.b32.xlu0 %v4276_v42, %s4080_s9  ;;  %203 = vrot.lane.b32.xlu1 %v4276_v42, %s4083_s12 }
  0x6d   :  { %207 = vrot.lane.b32.xlu0 %v4276_v42, %s4082_s11  ;;  %211 = vrot.lane.b32.xlu1 %v4276_v42, %s4084_s13 }
  0x71   :  { %646 = vrot.lane.b32.xlu0 %v4294_v51, %s4079_s8  ;;  %650 = vrot.lane.b32.xlu1 %v4294_v51, %s4081_s10 }
  0x75   :  { %654 = vrot.lane.b32.xlu0 %v4294_v51, %s4078_s3  ;;  %658 = vrot.lane.b32.xlu1 %v4294_v51, %s4080_s9 }
  0x79   :  { %662 = vrot.lane.b32.xlu0 %v4294_v51, %s4083_s12  ;;  %666 = vrot.lane.b32.xlu1 %v4294_v51, %s4082_s11 }
  0x7d   :  { %670 = vrot.lane.b32.xlu0 %v4294_v51, %s4084_s13  ;;  %644 = vrot.lane.b32.xlu1 %v4308_v55, %s4079_s8  ;;  %s4105_s8 = smov 76  }
  0x81   :  { %648 = vrot.lane.b32.xlu0 %v4308_v55, %s4081_s10  ;;  %652 = vrot.lane.b32.xlu1 %v4308_v55, %s4078_s3  ;;  %s4104_s3 = smov 78   ;;  %s4107_s10 = smov 72  }
  0x85   :  { %656 = vrot.lane.b32.xlu0 %v4308_v55, %s4080_s9  ;;  %660 = vrot.lane.b32.xlu1 %v4308_v55, %s4083_s12  ;;  %s4106_s9 = smov 74   ;;  %s4109_s12 = smov 68  }
  0x89   :  { %664 = vrot.lane.b32.xlu0 %v4308_v55, %s4082_s11  ;;  %668 = vrot.lane.b32.xlu1 %v4308_v55, %s4084_s13  ;;  %s4108_s11 = smov 70   ;;  %s4110_s13 = smov 66  }
  0x8d   :  { %217 = vrot.lane.b32.xlu0 %v4260_v34, %s4085_s14  ;;  %221 = vrot.lane.b32.xlu1 %v4260_v34, %s4086_s15 }
  0x91   :  { %225 = vrot.lane.b32.xlu0 %v4260_v34, %s4087_s16  ;;  %229 = vrot.lane.b32.xlu1 %v4260_v34, %s4088_s1 }
  0x95   :  { %233 = vrot.lane.b32.xlu0 %v4260_v34, %s4089_s17  ;;  %237 = vrot.lane.b32.xlu1 %v4260_v34, %s4090_s18 }
  0x99   :  { %241 = vrot.lane.b32.xlu0 %v4260_v34, %s4091_s19  ;;  %245 = vrot.lane.b32.xlu1 %v4260_v34, %s4092_s20 }
  0x9d   :  { %215 = vrot.lane.b32.xlu0 %v4276_v42, %s4085_s14  ;;  %219 = vrot.lane.b32.xlu1 %v4276_v42, %s4086_s15 }
  0xa1   :  { %223 = vrot.lane.b32.xlu0 %v4276_v42, %s4087_s16  ;;  %227 = vrot.lane.b32.xlu1 %v4276_v42, %s4088_s1 }
  0xa5   :  { %231 = vrot.lane.b32.xlu0 %v4276_v42, %s4089_s17  ;;  %235 = vrot.lane.b32.xlu1 %v4276_v42, %s4090_s18 }
  0xa9   :  { %239 = vrot.lane.b32.xlu0 %v4276_v42, %s4091_s19  ;;  %243 = vrot.lane.b32.xlu1 %v4276_v42, %s4092_s20 }
  0xad   :  { %674 = vrot.lane.b32.xlu0 %v4294_v51, %s4085_s14  ;;  %678 = vrot.lane.b32.xlu1 %v4294_v51, %s4086_s15 }
  0xb1   :  { %682 = vrot.lane.b32.xlu0 %v4294_v51, %s4087_s16  ;;  %686 = vrot.lane.b32.xlu1 %v4294_v51, %s4088_s1 }
  0xb5   :  { %690 = vrot.lane.b32.xlu0 %v4294_v51, %s4089_s17  ;;  %694 = vrot.lane.b32.xlu1 %v4294_v51, %s4090_s18 }
  0xb9   :  { %698 = vrot.lane.b32.xlu0 %v4294_v51, %s4091_s19  ;;  %702 = vrot.lane.b32.xlu1 %v4294_v51, %s4092_s20 }
  0xbd   :  { %672 = vrot.lane.b32.xlu0 %v4308_v55, %s4085_s14  ;;  %676 = vrot.lane.b32.xlu1 %v4308_v55, %s4086_s15  ;;  %s4112_s14 = smov 2   ;;  %s4113_s15 = smov 6  }
  0xc1   :  { %680 = vrot.lane.b32.xlu0 %v4308_v55, %s4087_s16  ;;  %684 = vrot.lane.b32.xlu1 %v4308_v55, %s4088_s1  ;;  %s4114_s16 = smov 10   ;;  %s4115_s1 = smov 12  }
  0xc5   :  { %688 = vrot.lane.b32.xlu0 %v4308_v55, %s4089_s17  ;;  %692 = vrot.lane.b32.xlu1 %v4308_v55, %s4090_s18  ;;  %s4116_s17 = smov 14   ;;  %s4117_s18 = smov 16  }
  0xc7   :  { %v198_v56 = vpop.permute.xlu1 %197  ;;  %v190_v57 = vpop.permute.xlu0 %189 }
  0xc8   :  { %v318_v4 = vrot.slane %v198_v56, 7  ;;  %v314_v11 = vrot.slane %v190_v57, 7  ;;  %v768_v57 = vrot.slane %v4294_v51, 7 }
  0xc9   :  { %696 = vrot.lane.b32.xlu0 %v4308_v55, %s4091_s19  ;;  %700 = vrot.lane.b32.xlu1 %v4308_v55, %s4092_s20  ;;  %s4118_s19 = smov 18   ;;  %s4119_s20 = smov 20  }
  0xcb   :  { %v202_v58 = vpop.permute.xlu1 %201  ;;  %v194_v59 = vpop.permute.xlu0 %193 }
  0xcc   :  { %v316_v5 = vrot.slane %v194_v59, 7  ;;  %v320_v24 = vrot.slane %v202_v58, 7 }
  0xcd   :  { %249 = vrot.lane.b32.xlu0 %v4260_v34, %s4093_s22  ;;  %253 = vrot.lane.b32.xlu1 %v4260_v34, %s4094_s23 }
  0xcf   :  { %v210_v60 = vpop.permute.xlu1 %209  ;;  %v206_v61 = vpop.permute.xlu0 %205 }
  0xd0   :  { %v324_v26 = vrot.slane %v210_v60, 7  ;;  %v322_v27 = vrot.slane %v206_v61, 7 }
  0xd1   :  { %257 = vrot.lane.b32.xlu0 %v4260_v34, %s4095_s24  ;;  %261 = vrot.lane.b32.xlu1 %v4260_v34, %s4096_s25 }
  0xd3   :  { %v214_v62 = vpop.permute.xlu0 %213  ;;  %v188_v63 = vpop.permute.xlu1 %187 }
  0xd4   :  { %v315_v15 = vsel %vm312_vm1, %v314_v11, %v188_v63  ;;  %v326_v18 = vrot.slane %v214_v62, 7  ;;  %v769_v63 = vsel %vm312_vm1, %v768_v57, %v4308_v55 }
  0xd5   :  { %265 = vrot.lane.b32.xlu0 %v4260_v34, %s4098_s26  ;;  %269 = vrot.lane.b32.xlu1 %v4260_v34, %s4099_s27 }
  0xd7   :  { %v192_v8 = vpop.permute.xlu0 %191  ;;  %v196_v10 = vpop.permute.xlu1 %195 }
  0xd8   :  { %v317_v12 = vsel %vm312_vm1, %v316_v5, %v192_v8  ;;  %v319_v13 = vsel %vm312_vm1, %v318_v4, %v196_v10 }
  0xd9   :  { %273 = vrot.lane.b32.xlu0 %v4260_v34, %s4100_s28  ;;  %277 = vrot.lane.b32.xlu1 %v4260_v34, %s4101_s29  ;;  %v408_v16 = vcombine.low %v313_v9, %v317_v12  ;;  %v416_v17 = vcombine.low %v315_v15, %v319_v13 }
  0xdb   :  { %v200_v19 = vpop.permute.xlu0 %199  ;;  %v204_v21 = vpop.permute.xlu1 %203  ;;  %v415_v29 = vrot.slane %v408_v16, %v4395_v14  ;;  %v423_v30 = vrot.slane %v416_v17, %v4395_v14 }
  0xdc   :  { %v321_v33 = vsel %vm312_vm1, %v320_v24, %v200_v19  ;;  %v323_v25 = vsel %vm312_vm1, %v322_v27, %v204_v21 }
  0xdd   :  { %247 = vrot.lane.b32.xlu0 %v4276_v42, %s4093_s22  ;;  %251 = vrot.lane.b32.xlu1 %v4276_v42, %s4094_s23  ;;  %v440_v28 = vcombine.low %v415_v29, %v423_v30 }
  0xdf   :  { %v208_v31 = vpop.permute.xlu0 %207  ;;  %v212_v32 = vpop.permute.xlu1 %211  ;;  %v4421_v48 = vrot.slane %v440_v28, %v4414_v44 }
  0xe0   :  { %v325_v35 = vsel %vm312_vm1, %v324_v26, %v208_v31  ;;  %v327_v36 = vsel %vm312_vm1, %v326_v18, %v212_v32 }
  0xe1   :  { %v424_v37 = vcombine.low %v321_v33, %v325_v35  ;;  %v432_v38 = vcombine.low %v323_v25, %v327_v36  ;;  %255 = vrot.lane.b32.xlu0 %v4276_v42, %s4095_s24  ;;  %259 = vrot.lane.b32.xlu1 %v4276_v42, %s4096_s25 }
  0xe3   :  { %v431_v39 = vrot.slane %v424_v37, %v4395_v14  ;;  %v439_v40 = vrot.slane %v432_v38, %v4395_v14  ;;  %v647_v41 = vpop.permute.xlu0 %646  ;;  %v651_v43 = vpop.permute.xlu1 %650 }
  0xe4   :  { %v772_v58 = vrot.slane %v651_v43, 7  ;;  %v770_v62 = vrot.slane %v647_v41, 7 }
  0xe5   :  { %v448_v45 = vcombine.low %v431_v39, %v439_v40  ;;  %263 = vrot.lane.b32.xlu0 %v4276_v42, %s4098_s26  ;;  %267 = vrot.lane.b32.xlu1 %v4276_v42, %s4099_s27 }
  0xe7   :  { %v655_v46 = vpop.permute.xlu0 %654  ;;  %v659_v47 = vpop.permute.xlu1 %658  ;;  %v4424_v49 = vrot.slane %v448_v45, %v4414_v44 }
  0xe8   :  { %v774_v59 = vrot.slane %v655_v46, 7  ;;  %v776_v8 = vrot.slane %v659_v47, 7 }
  0xe9   :  { %271 = vrot.lane.b32.xlu0 %v4276_v42, %s4100_s28  ;;  %275 = vrot.lane.b32.xlu1 %v4276_v42, %s4101_s29  ;;  %v457_v50 = vcombine.high %v4421_v48, %v4424_v49 }
  0xeb   :  { %v663_v52 = vpop.permute.xlu0 %662  ;;  %v667_v53 = vpop.permute.xlu1 %666 }
  0xec   :  { %v778_v9 = vrot.slane %v663_v52, 7  ;;  %v780_v10 = vrot.slane %v667_v53, 7 }
  0xed   :  { %706 = vrot.lane.b32.xlu0 %v4294_v51, %s4093_s22  ;;  %710 = vrot.lane.b32.xlu1 %v4294_v51, %s4094_s23 }
  0xef   :  { %v671_v54 = vpop.permute.xlu0 %670  ;;  %v645_v56 = vpop.permute.xlu1 %644 }
  0xf0   :  { %v771_v2 = vsel %vm312_vm1, %v770_v62, %v645_v56  ;;  %v782_v11 = vrot.slane %v671_v54, 7 }
  0xf1   :  { %714 = vrot.lane.b32.xlu0 %v4294_v51, %s4095_s24  ;;  %718 = vrot.lane.b32.xlu1 %v4294_v51, %s4096_s25 }
  0xf3   :  { %v649_v60 = vpop.permute.xlu0 %648  ;;  %v653_v61 = vpop.permute.xlu1 %652 }
  0xf4   :  { %v773_v0 = vsel %vm312_vm1, %v772_v58, %v649_v60  ;;  %v775_v1 = vsel %vm312_vm1, %v774_v59, %v653_v61 }
  0xf5   :  { %722 = vrot.lane.b32.xlu0 %v4294_v51, %s4098_s26  ;;  %726 = vrot.lane.b32.xlu1 %v4294_v51, %s4099_s27  ;;  %v864_v3 = vcombine.low %v769_v63, %v773_v0  ;;  %v872_v4 = vcombine.low %v771_v2, %v775_v1 }
  0xf7   :  { %v657_v5 = vpop.permute.xlu0 %656  ;;  %v661_v6 = vpop.permute.xlu1 %660  ;;  %v871_v12 = vrot.slane %v864_v3, %v4395_v14  ;;  %v879_v13 = vrot.slane %v872_v4, %v4395_v14 }
  0xf8   :  { %v777_v17 = vsel %vm312_vm1, %v776_v8, %v657_v5  ;;  %v779_v19 = vsel %vm312_vm1, %v778_v9, %v661_v6 }
  0xf9   :  { %730 = vrot.lane.b32.xlu0 %v4294_v51, %s4100_s28  ;;  %734 = vrot.lane.b32.xlu1 %v4294_v51, %s4101_s29  ;;  %v896_v26 = vcombine.low %v871_v12, %v879_v13 }
  0xfb   :  { %v665_v15 = vpop.permute.xlu0 %664  ;;  %v669_v16 = vpop.permute.xlu1 %668  ;;  %v4471_v33 = vrot.slane %v896_v26, %v4414_v44 }
  0xfc   :  { %v781_v21 = vsel %vm312_vm1, %v780_v10, %v665_v15  ;;  %v783_v22 = vsel %vm312_vm1, %v782_v11, %v669_v16 }
  0xfd   :  { %v880_v23 = vcombine.low %v777_v17, %v781_v21  ;;  %v888_v24 = vcombine.low %v779_v19, %v783_v22  ;;  %704 = vrot.lane.b32.xlu0 %v4308_v55, %s4093_s22  ;;  %708 = vrot.lane.b32.xlu1 %v4308_v55, %s4094_s23  ;;  %s4120_s22 = smov 22   ;;  %s4121_s23 = smov 24  }
  0xff   :  { %v887_v27 = vrot.slane %v880_v23, %v4395_v14  ;;  %v895_v18 = vrot.slane %v888_v24, %v4395_v14  ;;  %v218_v29 = vpop.permute.xlu0 %217  ;;  %v222_v30 = vpop.permute.xlu1 %221 }
 0x100   :  { %v328_v47 = vrot.slane %v218_v29, 7  ;;  %v330_v52 = vrot.slane %v222_v30, 7 }
 0x101   :  { %v904_v31 = vcombine.low %v887_v27, %v895_v18  ;;  %712 = vrot.lane.b32.xlu0 %v4308_v55, %s4095_s24  ;;  %716 = vrot.lane.b32.xlu1 %v4308_v55, %s4096_s25  ;;  %s4122_s24 = smov 26   ;;  %s4123_s25 = smov 28  }
 0x103   :  { %v226_v32 = vpop.permute.xlu0 %225  ;;  %v230_v20 = vpop.permute.xlu1 %229  ;;  %v4474_v25 = vrot.slane %v904_v31, %v4414_v44 }
 0x104   :  { %v332_v41 = vrot.slane %v226_v32, 7  ;;  %v334_v43 = vrot.slane %v230_v20, 7 }
 0x105   :  { %720 = vrot.lane.b32.xlu0 %v4308_v55, %s4098_s26  ;;  %724 = vrot.lane.b32.xlu1 %v4308_v55, %s4099_s27  ;;  %v913_v35 = vcombine.high %v4471_v33, %v4474_v25  ;;  %s4124_s26 = smov 30   ;;  %s4125_s27 = smov 32  }
 0x107   :  { %v234_v36 = vpop.permute.xlu0 %233  ;;  %v238_v37 = vpop.permute.xlu1 %237 }
 0x108   :  { %v336_v62 = vrot.slane %v234_v36, 7  ;;  %v338_v63 = vrot.slane %v238_v37, 7 }
 0x109   :  { %728 = vrot.lane.b32.xlu0 %v4308_v55, %s4100_s28  ;;  %732 = vrot.lane.b32.xlu1 %v4308_v55, %s4101_s29  ;;  %s4126_s28 = smov 34   ;;  %s4127_s29 = smov 36  }
 0x10b   :  { %v242_v38 = vpop.permute.xlu0 %241  ;;  %v246_v28 = vpop.permute.xlu1 %245 }
 0x10c   :  { %v340_v0 = vrot.slane %v242_v38, 7  ;;  %v342_v1 = vrot.slane %v246_v28, 7 }
 0x10d   :  { %281 = vrot.lane.b32.xlu0 %v4260_v34, %s4103_s7  ;;  %285 = vrot.lane.b32.xlu1 %v4260_v34, %s4104_s3 }
 0x10f   :  { %v216_v39 = vpop.permute.xlu0 %215  ;;  %v220_v40 = vpop.permute.xlu1 %219 }
 0x110   :  { %v329_v56 = vsel %vm312_vm1, %v328_v47, %v216_v39  ;;  %v331_v57 = vsel %vm312_vm1, %v330_v52, %v220_v40 }
 0x111   :  { %289 = vrot.lane.b32.xlu0 %v4260_v34, %s4105_s8  ;;  %293 = vrot.lane.b32.xlu1 %v4260_v34, %s4106_s9 }
 0x113   :  { %v224_v45 = vpop.permute.xlu0 %223  ;;  %v228_v46 = vpop.permute.xlu1 %227 }
 0x114   :  { %v333_v53 = vsel %vm312_vm1, %v332_v41, %v224_v45  ;;  %v335_v54 = vsel %vm312_vm1, %v334_v43, %v228_v46 }
 0x115   :  { %297 = vrot.lane.b32.xlu0 %v4260_v34, %s4107_s10  ;;  %301 = vrot.lane.b32.xlu1 %v4260_v34, %s4108_s11  ;;  %v458_v58 = vcombine.low %v329_v56, %v333_v53  ;;  %v466_v59 = vcombine.low %v331_v57, %v335_v54 }
 0x117   :  { %v232_v60 = vpop.permute.xlu0 %231  ;;  %v236_v61 = vpop.permute.xlu1 %235  ;;  %v465_v2 = vrot.slane %v458_v58, %v4395_v14  ;;  %v473_v3 = vrot.slane %v466_v59, %v4395_v14 }
 0x118   :  { %v337_v6 = vsel %vm312_vm1, %v336_v62, %v232_v60  ;;  %v339_v8 = vsel %vm312_vm1, %v338_v63, %v236_v61 }
 0x119   :  { %305 = vrot.lane.b32.xlu0 %v4260_v34, %s4109_s12  ;;  %309 = vrot.lane.b32.xlu1 %v4260_v34, %s4110_s13  ;;  %v490_v12 = vcombine.low %v465_v2, %v473_v3 }
 0x11b   :  { %v240_v4 = vpop.permute.xlu0 %239  ;;  %v244_v5 = vpop.permute.xlu1 %243  ;;  %v4523_v23 = vrot.slane %v490_v12, %v4414_v44 }
 0x11c   :  { %v341_v9 = vsel %vm312_vm1, %v340_v0, %v240_v4  ;;  %v343_v10 = vsel %vm312_vm1, %v342_v1, %v244_v5 }
 0x11d   :  { %v474_v11 = vcombine.low %v337_v6, %v341_v9  ;;  %v482_v34 = vcombine.low %v339_v8, %v343_v10  ;;  %279 = vrot.lane.b32.xlu0 %v4276_v42, %s4103_s7  ;;  %283 = vrot.lane.b32.xlu1 %v4276_v42, %s4104_s3 }
 0x11f   :  { %v481_v13 = vrot.slane %v474_v11, %v4395_v14  ;;  %v489_v15 = vrot.slane %v482_v34, %v4395_v14  ;;  %v675_v16 = vpop.permute.xlu0 %674  ;;  %v679_v17 = vpop.permute.xlu1 %678 }
 0x120   :  { %v784_v38 = vrot.slane %v675_v16, 7  ;;  %v786_v28 = vrot.slane %v679_v17, 7 }
 0x121   :  { %v498_v19 = vcombine.low %v481_v13, %v489_v15  ;;  %287 = vrot.lane.b32.xlu0 %v4276_v42, %s4105_s8  ;;  %291 = vrot.lane.b32.xlu1 %v4276_v42, %s4106_s9 }
 0x123   :  { %v683_v21 = vpop.permute.xlu0 %682  ;;  %v687_v22 = vpop.permute.xlu1 %686  ;;  %v4526_v24 = vrot.slane %v498_v19, %v4414_v44 }
 0x124   :  { %v788_v20 = vrot.slane %v683_v21, 7  ;;  %v790_v36 = vrot.slane %v687_v22, 7 }
 0x125   :  { %295 = vrot.lane.b32.xlu0 %v4276_v42, %s4107_s10  ;;  %299 = vrot.lane.b32.xlu1 %v4276_v42, %s4108_s11  ;;  %v507_v26 = vcombine.high %v4523_v23, %v4526_v24 }
 0x127   :  { %v691_v27 = vpop.permute.xlu0 %690  ;;  %v695_v18 = vpop.permute.xlu1 %694 }
 0x128   :  { %v792_v53 = vrot.slane %v691_v27, 7  ;;  %v794_v54 = vrot.slane %v695_v18, 7 }
 0x129   :  { %303 = vrot.lane.b32.xlu0 %v4276_v42, %s4109_s12  ;;  %307 = vrot.lane.b32.xlu1 %v4276_v42, %s4110_s13 }
 0x12b   :  { %v699_v29 = vpop.permute.xlu0 %698  ;;  %v703_v30 = vpop.permute.xlu1 %702 }
 0x12c   :  { %v796_v56 = vrot.slane %v699_v29, 7  ;;  %v798_v57 = vrot.slane %v703_v30, 7 }
 0x12d   :  { %738 = vrot.lane.b32.xlu0 %v4294_v51, %s4103_s7  ;;  %742 = vrot.lane.b32.xlu1 %v4294_v51, %s4104_s3 }
 0x12f   :  { %v673_v31 = vpop.permute.xlu0 %672  ;;  %v677_v32 = vpop.permute.xlu1 %676 }
 0x130   :  { %v785_v41 = vsel %vm312_vm1, %v784_v38, %v673_v31  ;;  %v787_v43 = vsel %vm312_vm1, %v786_v28, %v677_v32 }
 0x131   :  { %746 = vrot.lane.b32.xlu0 %v4294_v51, %s4105_s8  ;;  %750 = vrot.lane.b32.xlu1 %v4294_v51, %s4106_s9 }
 0x133   :  { %v681_v37 = vpop.permute.xlu0 %680  ;;  %v685_v42 = vpop.permute.xlu1 %684 }
 0x134   :  { %v789_v39 = vsel %vm312_vm1, %v788_v20, %v681_v37  ;;  %v791_v40 = vsel %vm312_vm1, %v790_v36, %v685_v42 }
 0x135   :  { %754 = vrot.lane.b32.xlu0 %v4294_v51, %s4107_s10  ;;  %758 = vrot.lane.b32.xlu1 %v4294_v51, %s4108_s11  ;;  %v914_v45 = vcombine.low %v785_v41, %v789_v39  ;;  %v922_v46 = vcombine.low %v787_v43, %v791_v40 }
 0x137   :  { %v689_v47 = vpop.permute.xlu0 %688  ;;  %v693_v52 = vpop.permute.xlu1 %692  ;;  %v921_v58 = vrot.slane %v914_v45, %v4395_v14  ;;  %v929_v59 = vrot.slane %v922_v46, %v4395_v14 }
 0x138   :  { %v793_v62 = vsel %vm312_vm1, %v792_v53, %v689_v47  ;;  %v795_v63 = vsel %vm312_vm1, %v794_v54, %v693_v52 }
 0x139   :  { %762 = vrot.lane.b32.xlu0 %v4294_v51, %s4109_s12  ;;  %766 = vrot.lane.b32.xlu1 %v4294_v51, %s4110_s13  ;;  %v946_v3 = vcombine.low %v921_v58, %v929_v59 }
 0x13b   :  { %v697_v60 = vpop.permute.xlu0 %696  ;;  %v701_v61 = vpop.permute.xlu1 %700  ;;  %v4575_v34 = vrot.slane %v946_v3, %v4414_v44 }
 0x13c   :  { %v797_v0 = vsel %vm312_vm1, %v796_v56, %v697_v60  ;;  %v799_v1 = vsel %vm312_vm1, %v798_v57, %v701_v61 }
 0x13d   :  { %v930_v2 = vcombine.low %v793_v62, %v797_v0  ;;  %v938_v51 = vcombine.low %v795_v63, %v799_v1  ;;  %736 = vrot.lane.b32.xlu0 %v4308_v55, %s4103_s7  ;;  %740 = vrot.lane.b32.xlu1 %v4308_v55, %s4104_s3  ;;  %s4128_s7 = smov 38   ;;  %s5767_s3 = smov 40  }
 0x13f   :  { %v937_v4 = vrot.slane %v930_v2, %v4395_v14  ;;  %v945_v5 = vrot.slane %v938_v51, %v4395_v14  ;;  %v250_v6 = vpop.permute.xlu0 %249  ;;  %v254_v8 = vpop.permute.xlu1 %253 }
 0x140   :  { %v344_v31 = vrot.slane %v250_v6, 7  ;;  %v346_v32 = vrot.slane %v254_v8, 7 }
 0x141   :  { %v954_v9 = vcombine.low %v937_v4, %v945_v5  ;;  %744 = vrot.lane.b32.xlu0 %v4308_v55, %s4105_s8  ;;  %748 = vrot.lane.b32.xlu1 %v4308_v55, %s4106_s9  ;;  %v456_v4 = vcombine.low %v4421_v48, %v4424_v49  ;;  %s5769_s8 = smov 42   ;;  %s5771_s9 = smov 44  }
 0x143   :  { %v258_v10 = vpop.permute.xlu0 %257  ;;  %v262_v11 = vpop.permute.xlu1 %261  ;;  %v4578_v12 = vrot.slane %v954_v9, %v4414_v44 }
 0x144   :  { %v348_v27 = vrot.slane %v258_v10, 7  ;;  %v350_v18 = vrot.slane %v262_v11, 7  ;;  %v609_v11 = vsel %vm608_vm2, %v456_v4, 0.0 }
 0x145   :  { %752 = vrot.lane.b32.xlu0 %v4308_v55, %s4107_s10  ;;  %756 = vrot.lane.b32.xlu1 %v4308_v55, %s4108_s11  ;;  %v963_v13 = vcombine.high %v4575_v34, %v4578_v12  ;;  %s4132_s10 = smov 46   ;;  %s4133_s11 = smov 48  }
 0x147   :  { %v266_v15 = vpop.permute.xlu0 %265  ;;  %v270_v16 = vpop.permute.xlu1 %269 }
 0x148   :  { %v352_v40 = vrot.slane %v266_v15, 7  ;;  %v354_v41 = vrot.slane %v270_v16, 7  ;;  %v506_v15 = vcombine.low %v4523_v23, %v4526_v24  ;;  %v912_v16 = vcombine.low %v4471_v33, %v4474_v25 }
 0x149   :  { %760 = vrot.lane.b32.xlu0 %v4308_v55, %s4109_s12  ;;  %764 = vrot.lane.b32.xlu1 %v4308_v55, %s4110_s13  ;;  %s4134_s12 = smov 50   ;;  %s4135_s13 = smov 52  }
 0x14b   :  { %v274_v17 = vpop.permute.xlu0 %273  ;;  %v278_v19 = vpop.permute.xlu1 %277 }
 0x14c   :  { %v356_v43 = vrot.slane %v274_v17, 7  ;;  %v358_v45 = vrot.slane %v278_v19, 7 }
 0x14f   :  { %v248_v21 = vpop.permute.xlu0 %247  ;;  %v252_v22 = vpop.permute.xlu1 %251 }
 0x150   :  { %v345_v37 = vsel %vm312_vm1, %v344_v31, %v248_v21  ;;  %v347_v42 = vsel %vm312_vm1, %v346_v32, %v252_v22  ;;  %v612_v21 = vsel %vm608_vm2, %v506_v15, 0.0  ;;  %v962_v22 = vcombine.low %v4575_v34, %v4578_v12 }
 0x152   :  { %v1067_v31 = vsel %vm608_vm2, %v962_v22, 0.0 }
 0x153   :  { %v256_v29 = vpop.permute.xlu0 %255  ;;  %v260_v30 = vpop.permute.xlu1 %259 }
 0x154   :  { %v349_v20 = vsel %vm312_vm1, %v348_v27, %v256_v29  ;;  %v351_v36 = vsel %vm312_vm1, %v350_v18, %v260_v30  ;;  %v1064_v27 = vsel %vm608_vm2, %v912_v16, 0.0 }
 0x155   :  { %v508_v38 = vcombine.low %v345_v37, %v349_v20  ;;  %v516_v55 = vcombine.low %v347_v42, %v351_v36 }
 0x157   :  { %v264_v28 = vpop.permute.xlu0 %263  ;;  %v268_v39 = vpop.permute.xlu1 %267  ;;  %v515_v46 = vrot.slane %v508_v38, %v4395_v14  ;;  %v523_v47 = vrot.slane %v516_v55, %v4395_v14 }
 0x158   :  { %v353_v54 = vsel %vm312_vm1, %v352_v40, %v264_v28  ;;  %v355_v56 = vsel %vm312_vm1, %v354_v41, %v268_v39 }
 0x159   :  { %v540_v61 = vcombine.low %v515_v46, %v523_v47 }
 0x15b   :  { %v272_v52 = vpop.permute.xlu0 %271  ;;  %v276_v53 = vpop.permute.xlu1 %275  ;;  %v4605_v5 = vrot.slane %v540_v61, %v4414_v44 }
 0x15c   :  { %v357_v57 = vsel %vm312_vm1, %v356_v43, %v272_v52  ;;  %v359_v58 = vsel %vm312_vm1, %v358_v45, %v276_v53 }
 0x15d   :  { %v524_v59 = vcombine.low %v353_v54, %v357_v57  ;;  %v532_v60 = vcombine.low %v355_v56, %v359_v58 }
 0x15f   :  { %v531_v62 = vrot.slane %v524_v59, %v4395_v14  ;;  %v539_v63 = vrot.slane %v532_v60, %v4395_v14  ;;  %v707_v0 = vpop.permute.xlu0 %706  ;;  %v711_v1 = vpop.permute.xlu1 %710 }
 0x160   :  { %v800_v38 = vrot.slane %v707_v0, 7  ;;  %v802_v55 = vrot.slane %v711_v1, 7 }
 0x161   :  { %v548_v2 = vcombine.low %v531_v62, %v539_v63 }
 0x163   :  { %v715_v51 = vpop.permute.xlu0 %714  ;;  %v719_v3 = vpop.permute.xlu1 %718  ;;  %v4608_v6 = vrot.slane %v548_v2, %v4414_v44 }
 0x164   :  { %v804_v20 = vrot.slane %v715_v51, 7  ;;  %v806_v36 = vrot.slane %v719_v3, 7 }
 0x165   :  { %v557_v8 = vcombine.high %v4605_v5, %v4608_v6  ;;  %v556_v18 = vcombine.low %v4605_v5, %v4608_v6 }
 0x167   :  { %v723_v9 = vpop.permute.xlu0 %722  ;;  %v727_v10 = vpop.permute.xlu1 %726  ;;  %v615_v32 = vsel %vm608_vm2, %v556_v18, 0.0  ;;  %v627_v48 = vsel %vm608_vm2, %v557_v8, 0.0 }
 0x168   :  { %610 = vadd.xlane.f32.xlu0 %v609_v11  ;;  %v808_v52 = vrot.slane %v723_v9, 7  ;;  %v810_v53 = vrot.slane %v727_v10, 7 }
 0x16b   :  { %v731_v17 = vpop.permute.xlu0 %730  ;;  %v735_v19 = vpop.permute.xlu1 %734 }
 0x16c   :  { %613 = vadd.xlane.f32.xlu0 %v612_v21  ;;  %v812_v54 = vrot.slane %v731_v17, 7  ;;  %v814_v56 = vrot.slane %v735_v19, 7 }
 0x16d   :  { %1065 = vadd.xlane.f32.xlu1 %v1064_v27 }
 0x16f   :  { %v705_v29 = vpop.permute.xlu0 %704  ;;  %v709_v30 = vpop.permute.xlu1 %708 }
 0x170   :  { %1068 = vadd.xlane.f32.xlu0 %v1067_v31  ;;  %v801_v40 = vsel %vm312_vm1, %v800_v38, %v705_v29  ;;  %v803_v41 = vsel %vm312_vm1, %v802_v55, %v709_v30 }
 0x171   :  { %616 = vadd.xlane.f32.xlu1 %v615_v32 }
 0x173   :  { %v713_v37 = vpop.permute.xlu0 %712  ;;  %v717_v42 = vpop.permute.xlu1 %716 }
 0x174   :  { %v805_v28 = vsel %vm312_vm1, %v804_v20, %v713_v37  ;;  %v807_v39 = vsel %vm312_vm1, %v806_v36, %v717_v42 }
 0x175   :  { %v964_v43 = vcombine.low %v801_v40, %v805_v28  ;;  %v972_v45 = vcombine.low %v803_v41, %v807_v39 }
 0x177   :  { %v721_v46 = vpop.permute.xlu0 %720  ;;  %v725_v47 = vpop.permute.xlu1 %724  ;;  %v971_v57 = vrot.slane %v964_v43, %v4395_v14  ;;  %v979_v58 = vrot.slane %v972_v45, %v4395_v14 }
 0x178   :  { %v809_v61 = vsel %vm312_vm1, %v808_v52, %v721_v46  ;;  %v811_v62 = vsel %vm312_vm1, %v810_v53, %v725_v47 }
 0x179   :  { %v996_v51 = vcombine.low %v971_v57, %v979_v58 }
 0x17b   :  { %v729_v59 = vpop.permute.xlu0 %728  ;;  %v733_v60 = vpop.permute.xlu1 %732  ;;  %v4638_v17 = vrot.slane %v996_v51, %v4414_v44 }
 0x17c   :  { %v813_v63 = vsel %vm312_vm1, %v812_v54, %v729_v59  ;;  %v815_v0 = vsel %vm312_vm1, %v814_v56, %v733_v60 }
 0x17d   :  { %v980_v1 = vcombine.low %v809_v61, %v813_v63  ;;  %v988_v2 = vcombine.low %v811_v62, %v815_v0 }
 0x17f   :  { %v987_v3 = vrot.slane %v980_v1, %v4395_v14  ;;  %v995_v4 = vrot.slane %v988_v2, %v4395_v14  ;;  %v282_v9 = vpop.permute.xlu0 %281  ;;  %v286_v10 = vpop.permute.xlu1 %285 }
 0x180   :  { %v360_v55 = vrot.slane %v282_v9, 7  ;;  %v362_v28 = vrot.slane %v286_v10, 7 }
 0x181   :  { %v1004_v11 = vcombine.low %v987_v3, %v995_v4 }
 0x183   :  { %v290_v15 = vpop.permute.xlu0 %289  ;;  %v294_v16 = vpop.permute.xlu1 %293  ;;  %v4641_v19 = vrot.slane %v1004_v11, %v4414_v44 }
 0x184   :  { %v364_v36 = vrot.slane %v290_v15, 7  ;;  %v366_v37 = vrot.slane %v294_v16, 7 }
 0x185   :  { %v1012_v21 = vcombine.low %v4638_v17, %v4641_v19  ;;  %v1013_v22 = vcombine.high %v4638_v17, %v4641_v19 }
 0x187   :  { %v298_v27 = vpop.permute.xlu0 %297  ;;  %v302_v18 = vpop.permute.xlu1 %301  ;;  %v1070_v29 = vsel %vm608_vm2, %v1012_v21, 0.0 }
 0x188   :  { %1071 = vadd.xlane.f32.xlu0 %v1070_v29  ;;  %v368_v53 = vrot.slane %v298_v27, 7  ;;  %v370_v54 = vrot.slane %v302_v18, 7 }
 0x18b   :  { %v306_v30 = vpop.permute.xlu0 %305  ;;  %v310_v31 = vpop.permute.xlu1 %309 }
 0x18c   :  { %v372_v56 = vrot.slane %v306_v30, 7  ;;  %v374_v57 = vrot.slane %v310_v31, 7 }
 0x18f   :  { %v280_v32 = vpop.permute.xlu0 %279  ;;  %v284_v20 = vpop.permute.xlu1 %283 }
 0x190   :  { %v361_v41 = vsel %vm312_vm1, %v360_v55, %v280_v32  ;;  %v363_v43 = vsel %vm312_vm1, %v362_v28, %v284_v20  ;;  %v624_v55 = vsel %vm608_vm2, %v507_v26, 0.0 }
 0x193   :  { %v288_v42 = vpop.permute.xlu0 %287  ;;  %v292_v38 = vpop.permute.xlu1 %291 }
 0x194   :  { %v365_v39 = vsel %vm312_vm1, %v364_v36, %v288_v42  ;;  %v367_v40 = vsel %vm312_vm1, %v366_v37, %v292_v38  ;;  %v621_v37 = vsel %vm608_vm2, %v457_v50, 0.0 }
 0x195   :  { %v558_v45 = vcombine.low %v361_v41, %v365_v39  ;;  %v566_v46 = vcombine.low %v363_v43, %v367_v40 }
 0x197   :  { %v296_v47 = vpop.permute.xlu0 %295  ;;  %v300_v52 = vpop.permute.xlu1 %299  ;;  %v565_v58 = vrot.slane %v558_v45, %v4395_v14  ;;  %v573_v59 = vrot.slane %v566_v46, %v4395_v14 }
 0x198   :  { %v369_v62 = vsel %vm312_vm1, %v368_v53, %v296_v47  ;;  %v371_v63 = vsel %vm312_vm1, %v370_v54, %v300_v52 }
 0x199   :  { %v590_v3 = vcombine.low %v565_v58, %v573_v59 }
 0x19b   :  { %v304_v60 = vpop.permute.xlu0 %303  ;;  %v308_v61 = vpop.permute.xlu1 %307  ;;  %v597_v27 = vrot.slane %v590_v3, %v4414_v44 }
 0x19c   :  { %v373_v0 = vsel %vm312_vm1, %v372_v56, %v304_v60  ;;  %v375_v1 = vsel %vm312_vm1, %v374_v57, %v308_v61 }
 0x19d   :  { %v574_v2 = vcombine.low %v369_v62, %v373_v0  ;;  %v582_v51 = vcombine.low %v371_v63, %v375_v1 }
 0x19f   :  { %v581_v4 = vrot.slane %v574_v2, %v4395_v14  ;;  %v589_v9 = vrot.slane %v582_v51, %v4395_v14  ;;  %v739_v10 = vpop.permute.xlu0 %738  ;;  %v743_v11 = vpop.permute.xlu1 %742 }
 0x1a0   :  { %v816_v50 = vrot.slane %v739_v10, 7  ;;  %v818_v43 = vrot.slane %v743_v11, 7 }
 0x1a1   :  { %v598_v15 = vcombine.low %v581_v4, %v589_v9 }
 0x1a3   :  { %v747_v16 = vpop.permute.xlu0 %746  ;;  %v751_v21 = vpop.permute.xlu1 %750  ;;  %v605_v18 = vrot.slane %v598_v15, %v4414_v44 }
 0x1a4   :  { %v820_v28 = vrot.slane %v747_v16, 7  ;;  %v822_v39 = vrot.slane %v751_v21, 7  ;;  %v1076_v21 = vsel %vm608_vm2, %v913_v35, 0.0 }
 0x1a5   :  { %v606_v29 = vcombine.low %v597_v27, %v605_v18  ;;  %v607_v49 = vcombine.high %v597_v27, %v605_v18  ;;  %v1079_v27 = vsel %vm608_vm2, %v963_v13, 0.0  ;;  %v1082_v18 = vsel %vm608_vm2, %v1013_v22, 0.0 }
 0x1a7   :  { %v755_v30 = vpop.permute.xlu0 %754  ;;  %v759_v31 = vpop.permute.xlu1 %758  ;;  %v618_v32 = vsel %vm608_vm2, %v606_v29, 0.0  ;;  %v630_v5 = vsel %vm608_vm2, %v607_v49, 0.0 }
 0x1a8   :  { %619 = vadd.xlane.f32.xlu1 %v618_v32  ;;  %v824_v6 = vrot.slane %v755_v30, 7  ;;  %v826_v8 = vrot.slane %v759_v31, 7  ;;  %v4111_v31 = vmov 0.0  }
 0x1ab   :  { %v763_v20 = vpop.permute.xlu0 %762  ;;  %v767_v36 = vpop.permute.xlu1 %766 }
 0x1ac   :  { %622 = vadd.xlane.f32.xlu1 %v621_v37  ;;  %v828_v54 = vrot.slane %v763_v20, 7  ;;  %v830_v56 = vrot.slane %v767_v36, 7 }
 0x1af   :  { %v737_v42 = vpop.permute.xlu0 %736  ;;  %v741_v38 = vpop.permute.xlu1 %740 }
 0x1b0   :  { %625 = vadd.xlane.f32.xlu1 %v624_v55  ;;  %v817_v23 = vsel %vm312_vm1, %v816_v50, %v737_v42  ;;  %v819_v24 = vsel %vm312_vm1, %v818_v43, %v741_v38 }
 0x1b3   :  { %v745_v40 = vpop.permute.xlu0 %744  ;;  %v749_v41 = vpop.permute.xlu1 %748 }
 0x1b4   :  { %v821_v45 = vsel %vm312_vm1, %v820_v28, %v745_v40  ;;  %v823_v46 = vsel %vm312_vm1, %v822_v39, %v749_v41  ;;  %628 = vadd.xlane.f32.xlu1 %v627_v48 }
 0x1b5   :  { %v1014_v26 = vcombine.low %v817_v23, %v821_v45  ;;  %v1022_v47 = vcombine.low %v819_v24, %v823_v46 }
 0x1b7   :  { %v753_v52 = vpop.permute.xlu0 %752  ;;  %v757_v53 = vpop.permute.xlu1 %756  ;;  %v1021_v57 = vrot.slane %v1014_v26, %v4395_v14  ;;  %v1029_v58 = vrot.slane %v1022_v47, %v4395_v14 }
 0x1b8   :  { %631 = vadd.xlane.f32.xlu1 %v630_v5  ;;  %v825_v61 = vsel %vm312_vm1, %v824_v6, %v753_v52  ;;  %v827_v62 = vsel %vm312_vm1, %v826_v8, %v757_v53 }
 0x1b9   :  { %v1046_v51 = vcombine.low %v1021_v57, %v1029_v58 }
 0x1bb   :  { %v761_v59 = vpop.permute.xlu0 %760  ;;  %v765_v60 = vpop.permute.xlu1 %764  ;;  %v1053_v10 = vrot.slane %v1046_v51, %v4414_v44 }
 0x1bc   :  { %v829_v63 = vsel %vm312_vm1, %v828_v54, %v761_v59  ;;  %v831_v0 = vsel %vm312_vm1, %v830_v56, %v765_v60  ;;  %vm5789_vm1 = vcmask 244736  }
 0x1bd   :  { %v1030_v1 = vcombine.low %v825_v61, %v829_v63  ;;  %v1038_v2 = vcombine.low %v827_v62, %v831_v0 }
 0x1bf   :  { %v1037_v3 = vrot.slane %v1030_v1, %v4395_v14  ;;  %v1045_v4 = vrot.slane %v1038_v2, %v4395_v14 }
 0x1c1   :  { %v1054_v9 = vcombine.low %v1037_v3, %v1045_v4 }
 0x1c3   :  { %v1061_v11 = vrot.slane %v1054_v9, %v4414_v44 }
 0x1c5   :  { %v1062_v15 = vcombine.low %v1053_v10, %v1061_v11  ;;  %v1063_v29 = vcombine.high %v1053_v10, %v1061_v11 }
 0x1c7   :  { %v1073_v16 = vsel %vm608_vm2, %v1062_v15, 0.0  ;;  %v1085_v30 = vsel %vm608_vm2, %v1063_v29, 0.0 }
 0x1c8   :  { %1074 = vadd.xlane.f32.xlu0 %v1073_v16 }
 0x1cc   :  { %1077 = vadd.xlane.f32.xlu0 %v1076_v21 }
 0x1d0   :  { %1080 = vadd.xlane.f32.xlu0 %v1079_v27 }
 0x1d4   :  { %1083 = vadd.xlane.f32.xlu0 %v1082_v18 }
 0x1d8   :  { %1086 = vadd.xlane.f32.xlu0 %v1085_v30 }
 0x1f5   :  { %v611_v33 = vpop.xlane.xlu0 %610 }
 0x1f6   :  { %v634_v25 = vmul.f32 0.5, %v611_v33 }
 0x1f8   :  { %v1143_v35 = vrot.slane %v634_v25, %v4395_v14  ;;  %v1136_v34 = vcombine.high %v634_v25, %v4111_v31  ;;  %v1096_v22 = vmul.f32 %v634_v25, %v634_v25 }
 0x1f9   :  { %v614_v39 = vpop.xlane.xlu0 %613 }
 0x1fa   :  { %v4707_v12 = vrot.slane %v1143_v35, %v4414_v44  ;;  %v1066_v13 = vpop.xlane.xlu1 %1065  ;;  %v1151_v17 = vcombine.high %v1143_v35, %v4111_v31  ;;  %v1150_v37 = vrot.slane %v1136_v34, %v4395_v14  ;;  %v635_v48 = vmul.f32 0.5, %v614_v39 }
 0x1fb   :  { %v1088_v19 = vmul.f32 0.5, %v1066_v13 }
 0x1fc   :  { %v1181_v32 = vcombine.high %v4707_v12, %v4111_v31  ;;  %v1165_v36 = vrot.slane %v1151_v17, %v4414_v44  ;;  %v1173_v28 = vrot.slane %v1150_v37, %v4414_v44  ;;  %v1166_v40 = vcombine.high %v1150_v37, %v4111_v31 }
 0x1fd   :  { %v1104_v20 = vsub.f32 %v1088_v19, %v1096_v22  ;;  %v1069_v50 = vpop.xlane.xlu0 %1068  ;;  %v1192_v45 = vrot.slane %v635_v48, %v4395_v14  ;;  %v1097_v26 = vmul.f32 %v635_v48, %v635_v48  ;;  %v1185_v59 = vcombine.high %v635_v48, %v4111_v31 }
 0x1fe   :  { %1530 = vrot.lane.b32.xlu1 %v1181_v32, %s4112_s14  ;;  %1538 = vrot.lane.b32.xlu0 %v1165_v36, %s4077_s21  ;;  %v1182_v38 = vcombine.high %v1165_v36, %v4111_v31  ;;  %v1183_v41 = vcombine.high %v1173_v28, %v4111_v31  ;;  %v1180_v49 = vrot.slane %v1166_v40, %v4414_v44  ;;  %v1089_v46 = vmul.f32 0.5, %v1069_v50  ;;  %v617_v11 = vpop.xlane.xlu1 %616 }
 0x1ff   :  { %v1112_v42 = vmax.f32 %v1104_v20, 0.0  ;;  %v1207_v53 = vrot.slane %v1192_v45, %v4414_v44  ;;  %v1200_v8 = vcombine.high %v1192_v45, %v4111_v31  ;;  %v1199_v0 = vrot.slane %v1185_v59, %v4395_v14 }
 0x200   :  { %v1184_v23 = vcombine.high %v1180_v49, %v4111_v31  ;;  %v1105_v52 = vsub.f32 %v1089_v46, %v1097_v26  ;;  %v636_v21 = vmul.f32 0.5, %v617_v11 }
 0x201   :  { %v1120_v55 = vadd.f32 1e-05, %v1112_v42  ;;  %v1230_v56 = vcombine.high %v1207_v53, %v4111_v31  ;;  %v1214_v61 = vrot.slane %v1200_v8, %v4414_v44  ;;  %v1222_v51 = vrot.slane %v1199_v0, %v4414_v44 }
 0x202   :  { %1546 = vrot.lane.b32.xlu1 %v1182_v38, %s4113_s15  ;;  %1554 = vrot.lane.b32.xlu0 %v1173_v28, %s4074_s6  ;;  %v1113_v54 = vmax.f32 %v1105_v52, 0.0  ;;  %v1215_v10 = vcombine.high %v1199_v0, %v4111_v31  ;;  %v1241_v33 = vrot.slane %v636_v21, %v4395_v14  ;;  %v1098_v13 = vmul.f32 %v636_v21, %v636_v21 }
 0x203   :  { %3870 = vrsqrt.f32 %v1120_v55  ;;  %v1231_v1 = vcombine.high %v1214_v61, %v4111_v31  ;;  %v1232_v9 = vcombine.high %v1222_v51, %v4111_v31  ;;  %v1234_v55 = vcombine.high %v636_v21, %v4111_v31 }
 0x204   :  { %v1121_v60 = vadd.f32 1e-05, %v1113_v54  ;;  %v1229_v27 = vrot.slane %v1215_v10, %v4414_v44  ;;  %v1256_v19 = vrot.slane %v1241_v33, %v4414_v44  ;;  %v1249_v20 = vcombine.high %v1241_v33, %v4111_v31 }
 0x205   :  { %v1248_v48 = vrot.slane %v1234_v55, %v4395_v14 }
 0x206   :  { %1562 = vrot.lane.b32.xlu0 %v1183_v41, %s4114_s16  ;;  %3872 = vrsqrt.f32 %v1121_v60  ;;  %v1233_v35 = vcombine.high %v1229_v27, %v4111_v31  ;;  %v1279_v37 = vcombine.high %v1256_v19, %v4111_v31  ;;  %v1263_v39 = vrot.slane %v1249_v20, %v4414_v44 }
 0x20a   :  { %1570 = vrot.lane.b32.xlu0 %v1180_v49, %s4115_s1  ;;  %v1280_v49 = vcombine.high %v1263_v39, %v4111_v31 }
 0x20d   :  { %v3871_v43 = vpop.eup %3870 }
 0x20e   :  { %v1875_v24 = vrot.slane %v3871_v43, %v4395_v14  ;;  %1578 = vrot.lane.b32.xlu0 %v1184_v23, %s4116_s17  ;;  %v1868_v58 = vcombine.high %v3871_v43, %v4111_v31  ;;  %v1271_v43 = vrot.slane %v1248_v48, %v4414_v44 }
 0x210   :  { %v4730_v47 = vrot.slane %v1875_v24, %v4414_v44  ;;  %v1883_v6 = vcombine.high %v1875_v24, %v4111_v31  ;;  %v1882_v63 = vrot.slane %v1868_v58, %v4395_v14  ;;  %v3873_v16 = vpop.eup %3872  ;;  %v1281_v23 = vcombine.high %v1271_v43, %v4111_v31 }
 0x211   :  { %v1924_v30 = vrot.slane %v3873_v16, %v4395_v14  ;;  %v1917_v38 = vcombine.high %v3873_v16, %v4111_v31  ;;  %v1264_v24 = vcombine.high %v1248_v48, %v4111_v31 }
 0x212   :  { %v1913_v5 = vcombine.high %v4730_v47, %v4111_v31  ;;  %1586 = vrot.lane.b32.xlu0 %v1207_v53, %s4117_s18  ;;  %v1897_v57 = vrot.slane %v1883_v6, %v4414_v44  ;;  %v1905_v2 = vrot.slane %v1882_v63, %v4414_v44  ;;  %v1898_v3 = vcombine.high %v1882_v63, %v4111_v31 }
 0x213   :  { %v1939_v34 = vrot.slane %v1924_v30, %v4414_v44  ;;  %v1932_v32 = vcombine.high %v1924_v30, %v4111_v31  ;;  %v1931_v41 = vrot.slane %v1917_v38, %v4395_v14  ;;  %v1278_v6 = vrot.slane %v1264_v24, %v4414_v44  ;;  %v3854_v24 = vld [vmem:[#allocation5 + $0x4] ss:$8 sps:$4 sm:$0xff]  }
 0x214   :  { %2262 = vrot.lane.b32.xlu1 %v1913_v5, %s4112_s14  ;;  %v1914_v62 = vcombine.high %v1897_v57, %v4111_v31  ;;  %v1915_v4 = vcombine.high %v1905_v2, %v4111_v31  ;;  %v1912_v15 = vrot.slane %v1898_v3, %v4414_v44  ;;  %2710 = vmatprep.subr.bf16.mxu0 %v3854_v24 }
 0x215   :  { %v1072_v18 = vpop.xlane.xlu0 %1071  ;;  %v1962_v22 = vcombine.high %v1939_v34, %v4111_v31  ;;  %v1946_v42 = vrot.slane %v1932_v32, %v4414_v44  ;;  %v1954_v50 = vrot.slane %v1931_v41, %v4414_v44  ;;  %v1947_v46 = vcombine.high %v1931_v41, %v4111_v31 }
 0x216   :  { %1594 = vrot.lane.b32.xlu0 %v1230_v56, %s4118_s19  ;;  %v1916_v29 = vcombine.high %v1912_v15, %v4111_v31  ;;  %v1090_v25 = vmul.f32 0.5, %v1072_v18 }
 0x217   :  { %v1963_v40 = vcombine.high %v1946_v42, %v4111_v31  ;;  %v1964_v45 = vcombine.high %v1954_v50, %v4111_v31  ;;  %v1961_v52 = vrot.slane %v1947_v46, %v4414_v44 }
 0x218   :  { %2270 = vrot.lane.b32.xlu1 %v1897_v57, %s4077_s21  ;;  %v1106_v17 = vsub.f32 %v1090_v25, %v1098_v13  ;;  %v1282_v57 = vcombine.high %v1278_v6, %v4111_v31 }
 0x219   :  { %v1965_v8 = vcombine.high %v1961_v52, %v4111_v31 }
 0x21a   :  { %1602 = vrot.lane.b32.xlu0 %v1214_v61, %s4119_s20  ;;  %v1114_v36 = vmax.f32 %v1106_v17, 0.0 }
 0x21c   :  { %2278 = vrot.lane.b32.xlu1 %v1914_v62, %s4113_s15  ;;  %v1122_v28 = vadd.f32 1e-05, %v1114_v36 }
 0x21e   :  { %1610 = vrot.lane.b32.xlu0 %v1231_v1, %s4120_s22  ;;  %3874 = vrsqrt.f32 %v1122_v28 }
 0x220   :  { %2286 = vrot.lane.b32.xlu1 %v1905_v2, %s4074_s6 }
 0x222   :  { %1618 = vrot.lane.b32.xlu0 %v1222_v51, %s4121_s23 }
 0x224   :  { %2294 = vrot.lane.b32.xlu1 %v1915_v4, %s4114_s16 }
 0x226   :  { %1626 = vrot.lane.b32.xlu0 %v1232_v9, %s4122_s24 }
 0x228   :  { %2302 = vrot.lane.b32.xlu1 %v1912_v15, %s4115_s1  ;;  %v3875_v53 = vpop.eup %3874 }
 0x229   :  { %v1973_v54 = vrot.slane %v3875_v53, %v4395_v14  ;;  %v1966_v3 = vcombine.high %v3875_v53, %v4111_v31 }
 0x22a   :  { %1634 = vrot.lane.b32.xlu0 %v1229_v27, %s4123_s25 }
 0x22b   :  { %v1988_v58 = vrot.slane %v1973_v54, %v4414_v44  ;;  %v1981_v61 = vcombine.high %v1973_v54, %v4111_v31  ;;  %v1980_v16 = vrot.slane %v1966_v3, %v4395_v14  ;;  %v3860_v3 = vld [vmem:[#allocation5 + $0x24] ss:$8 sps:$4 sm:$0xff]  }
 0x22c   :  { %2310 = vrot.lane.b32.xlu1 %v1916_v29, %s4116_s17 }
 0x22d   :  { %v2011_v60 = vcombine.high %v1988_v58, %v4111_v31  ;;  %v1995_v51 = vrot.slane %v1981_v61, %v4414_v44  ;;  %v2003_v30 = vrot.slane %v1980_v16, %v4414_v44 }
 0x22e   :  { %1642 = vrot.lane.b32.xlu0 %v1233_v35, %s4124_s26 }
 0x22f   :  { %v2012_v15 = vcombine.high %v1995_v51, %v4111_v31  ;;  %v2013_v35 = vcombine.high %v2003_v30, %v4111_v31 }
 0x230   :  { %2318 = vrot.lane.b32.xlu1 %v1939_v34, %s4117_s18  ;;  %v1996_v34 = vcombine.high %v1980_v16, %v4111_v31 }
 0x232   :  { %1650 = vrot.lane.b32.xlu0 %v1256_v19, %s4125_s27 }
 0x234   :  { %2326 = vrot.lane.b32.xlu1 %v1962_v22, %s4118_s19  ;;  %v2010_v22 = vrot.slane %v1996_v34, %v4414_v44 }
 0x235   :  { %v620_v26 = vpop.xlane.xlu1 %619 }
 0x236   :  { %1658 = vrot.lane.b32.xlu0 %v1279_v37, %s4126_s28  ;;  %v637_v5 = vmul.f32 0.5, %v620_v26  ;;  %v2014_v55 = vcombine.high %v2010_v22, %v4111_v31 }
 0x238   :  { %2334 = vrot.lane.b32.xlu1 %v1946_v42, %s4119_s20  ;;  %v1290_v56 = vrot.slane %v637_v5, %v4395_v14  ;;  %v1099_v1 = vmul.f32 %v637_v5, %v637_v5  ;;  %v1283_v9 = vcombine.high %v637_v5, %v4111_v31  ;;  %v3856_v5 = vld [vmem:[#allocation5] ss:$8 sps:$4 sm:$0xff]  }
 0x239   :  { %v623_v13 = vpop.xlane.xlu1 %622  ;;  %2711 = vmatpush1.bf16.msra.mxu0 %v3856_v5 }
 0x23a   :  { %1666 = vrot.lane.b32.xlu0 %v1263_v39, %s4127_s29  ;;  %v1305_v59 = vrot.slane %v1290_v56, %v4414_v44  ;;  %v1298_v62 = vcombine.high %v1290_v56, %v4111_v31  ;;  %v1297_v18 = vrot.slane %v1283_v9, %v4395_v14  ;;  %v638_v32 = vmul.f32 0.5, %v623_v13  ;;  %v3857_v56 = vld [vmem:[#allocation5 + $0x14] ss:$8 sps:$4 sm:$0xff]   ;;  %v3862_v9 = vld [vmem:[#allocation5 + $0x20] ss:$8 sps:$4 sm:$0xff]  }
 0x23b   :  { %2712 = vmatprep.subr.bf16.mxu0 %v3857_v56  ;;  %v5773_v13 = vmov 0  }
 0x23c   :  { %2342 = vrot.lane.b32.xlu1 %v1963_v40, %s4120_s22  ;;  %v1328_v0 = vcombine.high %v1305_v59, %v4111_v31  ;;  %v1312_v10 = vrot.slane %v1298_v62, %v4414_v44  ;;  %v1320_v25 = vrot.slane %v1297_v18, %v4414_v44  ;;  %v1313_v19 = vcombine.high %v1297_v18, %v4111_v31  ;;  %v3859_v62 = vld [vmem:[#allocation5 + $0x10] ss:$8 sps:$4 sm:$0xff]  }
 0x23d   :  { %v1100_v39 = vmul.f32 %v638_v32, %v638_v32  ;;  %v4859_v41 = vpop.xlane.xlu1 %625  ;;  %v1339_v48 = vrot.slane %v638_v32, %v4395_v14  ;;  %2713 = vmatpush1.bf16.msra.mxu0 %v3859_v62  ;;  %2742 = vmatprep.mubr.bf16.mxu0 %v5773_v13 }
 0x23e   :  { %1674 = vrot.lane.b32.xlu0 %v1280_v49, %s4128_s7  ;;  %v1329_v29 = vcombine.high %v1312_v10, %v4111_v31  ;;  %v1330_v17 = vcombine.high %v1320_v25, %v4111_v31  ;;  %v1327_v42 = vrot.slane %v1313_v19, %v4414_v44  ;;  %2714 = vmatprep.subr.bf16.mxu0 %v3860_v3  ;;  %v639_v19 = vmul.f32 0.5, %v4859_v41 }
 0x23f   :  { %v1347_v26 = vcombine.high %v1339_v48, %v4111_v31 }
 0x240   :  { %2350 = vrot.lane.b32.xlu1 %v1954_v50, %s4121_s23 }
 0x241   :  { %v1361_v61 = vrot.slane %v1347_v26, %v4414_v44  ;;  %2715 = vmatpush1.bf16.msra.mxu0 %v3862_v9 }
 0x242   :  { %1682 = vrot.lane.b32.xlu0 %v1271_v43, %s5767_s3  ;;  %v1331_v43 = vcombine.high %v1327_v42, %v4111_v31 }
 0x244   :  { %2358 = vrot.lane.b32.xlu1 %v1964_v45, %s4122_s24 }
 0x246   :  { %1690 = vrot.lane.b32.xlu0 %v1281_v23, %s5769_s8 }
 0x248   :  { %2366 = vrot.lane.b32.xlu1 %v1961_v52, %s4123_s25 }
 0x24a   :  { %1698 = vrot.lane.b32.xlu0 %v1278_v6, %s5771_s9  ;;  %v4874_v6 = vpop.xlane.xlu1 %628 }
 0x24c   :  { %2374 = vrot.lane.b32.xlu1 %v1965_v8, %s4124_s26 }
 0x24e   :  { %1706 = vrot.lane.b32.xlu0 %v1282_v57, %s4132_s10  ;;  %v1332_v57 = vcombine.high %v638_v32, %v4111_v31 }
 0x250   :  { %2382 = vrot.lane.b32.xlu1 %v1988_v58, %s4125_s27 }
 0x252   :  { %1714 = vrot.lane.b32.xlu0 %v1305_v59, %s4133_s11 }
 0x254   :  { %2390 = vrot.lane.b32.xlu1 %v2011_v60, %s4126_s28 }
 0x255   :  { %v1075_v63 = vpop.xlane.xlu0 %1074 }
 0x256   :  { %v1091_v2 = vmul.f32 0.5, %v1075_v63  ;;  %1722 = vrot.lane.b32.xlu0 %v1328_v0, %s4134_s12  ;;  %v4887_v0 = vpop.xlane.xlu1 %631 }
 0x258   :  { %v1107_v4 = vsub.f32 %v1091_v2, %v1099_v1  ;;  %2398 = vrot.lane.b32.xlu1 %v1995_v51, %s4127_s29  ;;  %v1378_v2 = vcombine.high %v1361_v61, %v4111_v31  ;;  %v1346_v51 = vrot.slane %v1332_v57, %v4395_v14  ;;  %v1381_v57 = vcombine.high %v639_v19, %v4111_v31 }
 0x259   :  { %v1078_v21 = vpop.xlane.xlu0 %1077 }
 0x25a   :  { %v1115_v11 = vmax.f32 %v1107_v4, 0.0  ;;  %1730 = vrot.lane.b32.xlu0 %v1312_v10, %s4135_s13  ;;  %v1092_v37 = vmul.f32 0.5, %v1078_v21  ;;  %v3863_v10 = vld [vmem:[#allocation5 + $0x34] ss:$8 sps:$4 sm:$0xff]   ;;  %v1369_v16 = vrot.slane %v1346_v51, %v4414_v44  ;;  %v3865_v21 = vld [vmem:[#allocation5 + $0x30] ss:$8 sps:$4 sm:$0xff]   ;;  %v1362_v18 = vcombine.high %v1346_v51, %v4111_v31 }
 0x25b   :  { %2716 = vmatprep.subr.bf16.mxu0 %v3863_v10  ;;  %v1395_v51 = vrot.slane %v1381_v57, %v4395_v14 }
 0x25c   :  { %v1123_v27 = vadd.f32 1e-05, %v1115_v11  ;;  %2406 = vrot.lane.b32.xlu1 %v2012_v15, %s4128_s7  ;;  %v1108_v49 = vsub.f32 %v1092_v37, %v1100_v39  ;;  %2717 = vmatpush1.bf16.msra.mxu0 %v3865_v21  ;;  %v1376_v32 = vrot.slane %v1362_v18, %v4414_v44 }
 0x25d   :  { %v4839_v33 = vpop.xlane.xlu0 %1080  ;;  %v1418_v21 = vrot.slane %v1395_v51, %v4414_v44 }
 0x25e   :  { %3876 = vrsqrt.f32 %v1123_v27  ;;  %1738 = vrot.lane.b32.xlu0 %v1329_v29, %s4136_s30  ;;  %v1116_v52 = vmax.f32 %v1108_v49, 0.0  ;;  %v1379_v29 = vcombine.high %v1369_v16, %v4111_v31  ;;  %v1380_v39 = vcombine.high %v1376_v32, %v4111_v31 }
 0x260   :  { %2414 = vrot.lane.b32.xlu1 %v2003_v30, %s5767_s3  ;;  %s4138_s3 = smov 58   ;;  %v1124_v58 = vadd.f32 1e-05, %v1116_v52 }
 0x261   :  { %v4849_v20 = vpop.xlane.xlu0 %1083 }
 0x262   :  { %1746 = vrot.lane.b32.xlu0 %v1320_v25, %s4137_s0  ;;  %3878 = vrsqrt.f32 %v1124_v58  ;;  %v4910_v25 = vrot.slane %v1339_v48, %v4414_v44  ;;  %v1101_v48 = vmul.f32 %v639_v19, %v639_v19 }
 0x264   :  { %2422 = vrot.lane.b32.xlu1 %v2013_v35, %s5769_s8  ;;  %s4139_s8 = smov 60   ;;  %5802 = vst [vmem:[#allocation13_spill] sm:$0xff] %v4910_v25  ;;  %v1377_v37 = vcombine.high %v4910_v25, %v4111_v31 }
 0x265   :  { %v4863_v50 = vpop.xlane.xlu0 %1086 }
 0x266   :  { %1754 = vrot.lane.b32.xlu0 %v1330_v17, %s4138_s3 }
 0x268   :  { %v3877_v36 = vpop.eup %3876  ;;  %2430 = vrot.lane.b32.xlu1 %v2010_v22, %s5771_s9  ;;  %s4140_s9 = smov 62  }
 0x269   :  { %v2015_v38 = vcombine.high %v3877_v36, %v4111_v31  ;;  %v2022_v28 = vrot.slane %v3877_v36, %v4395_v14 }
 0x26a   :  { %1762 = vrot.lane.b32.xlu0 %v1327_v42, %s4139_s8 }
 0x26b   :  { %v2029_v40 = vrot.slane %v2015_v38, %v4395_v14  ;;  %v2037_v46 = vrot.slane %v2022_v28, %v4414_v44  ;;  %v2030_v54 = vcombine.high %v2022_v28, %v4111_v31  ;;  %v1388_v38 = vrot.slane %v639_v19, %v4395_v14 }
 0x26c   :  { %2438 = vrot.lane.b32.xlu1 %v2014_v55, %s4132_s10  ;;  %v3879_v17 = vpop.eup %3878  ;;  %v1093_v55 = vmul.f32 0.5, %v4839_v33  ;;  %v1411_v19 = vcombine.high %v1395_v51, %v4111_v31 }
 0x26d   :  { %v2045_v45 = vcombine.high %v2029_v40, %v4111_v31  ;;  %v2060_v8 = vcombine.high %v2037_v46, %v4111_v31  ;;  %v2044_v63 = vrot.slane %v2030_v54, %v4414_v44  ;;  %v2052_v27 = vrot.slane %v2029_v40, %v4414_v44 }
 0x26e   :  { %1770 = vrot.lane.b32.xlu0 %v1331_v43, %s4140_s9  ;;  %v2071_v42 = vrot.slane %v3879_v17, %v4395_v14  ;;  %v1109_v49 = vsub.f32 %v1093_v55, %v1101_v48  ;;  %v1396_v24 = vcombine.high %v1388_v38, %v4111_v31  ;;  %v2064_v56 = vcombine.high %v3879_v17, %v4111_v31 }
 0x26f   :  { %v2059_v23 = vrot.slane %v2045_v45, %v4414_v44  ;;  %v2061_v4 = vcombine.high %v2044_v63, %v4111_v31  ;;  %v2062_v34 = vcombine.high %v2052_v27, %v4111_v31  ;;  %v1403_v45 = vrot.slane %v1388_v38, %v4414_v44 }
 0x270   :  { %2446 = vrot.lane.b32.xlu1 %v2037_v46, %s4133_s11  ;;  %v4872_v53 = vpop.permute.xlu0 %1538  ;;  %v4896_v11 = vpop.permute.xlu1 %1530  ;;  %v4937_v41 = vrot.slane %v2071_v42, %v4414_v44  ;;  %v1117_v26 = vmax.f32 %v1109_v49, 0.0  ;;  %v1428_v17 = vcombine.high %v1418_v21, %v4111_v31  ;;  %v640_v38 = vmul.f32 0.5, %v4874_v6 }
 0x271   :  { %v2063_v60 = vcombine.high %v2059_v23, %v4111_v31  ;;  %v1426_v5 = vcombine.high %v1403_v45, %v4111_v31 }
 0x272   :  { %2494 = vrot.lane.b32.xlu0 %v2059_v23, %s4139_s8  ;;  %5803 = vst [vmem:[#allocation14_spill] sm:$0xff] %v4937_v41  ;;  %v2109_v46 = vcombine.high %v4937_v41, %v4111_v31  ;;  %v2079_v23 = vcombine.high %v2071_v42, %v4111_v31  ;;  %v1125_v58 = vadd.f32 1e-05, %v1117_v26 }
 0x274   :  { %2454 = vrot.lane.b32.xlu1 %v2060_v8, %s4134_s12  ;;  %v4881_v59 = vpop.permute.xlu0 %1554  ;;  %v4912_v35 = vpop.permute.xlu1 %1546  ;;  %v2093_v54 = vrot.slane %v2079_v23, %v4414_v44  ;;  %3880 = vrsqrt.f32 %v1125_v58  ;;  %v1094_v23 = vmul.f32 0.5, %v4849_v20 }
 0x276   :  { %2502 = vrot.lane.b32.xlu0 %v2063_v60, %s4140_s9  ;;  %v2110_v62 = vcombine.high %v2093_v54, %v4111_v31 }
 0x278   :  { %2462 = vrot.lane.b32.xlu1 %v2044_v63, %s4135_s13  ;;  %v4890_v1 = vpop.permute.xlu0 %1562 }
 0x27a   :  { %1548 = vrot.lane.b32.xlu0 %v1378_v2, %s4113_s15  ;;  %v2078_v2 = vrot.slane %v2064_v56, %v4395_v14 }
 0x27c   :  { %2470 = vrot.lane.b32.xlu1 %v2061_v4, %s4136_s30  ;;  %v4899_v15 = vpop.permute.xlu0 %1570  ;;  %v2101_v10 = vrot.slane %v2078_v2, %v4414_v44 }
 0x27e   :  { %1556 = vrot.lane.b32.xlu0 %v1369_v16, %s4074_s6  ;;  %v2111_v18 = vcombine.high %v2101_v10, %v4111_v31  ;;  %v3881_v42 = vpop.eup %3880 }
 0x280   :  { %2478 = vrot.lane.b32.xlu1 %v2052_v27, %s4137_s0  ;;  %v4907_v30 = vpop.permute.xlu0 %1578  ;;  %v2094_v27 = vcombine.high %v2078_v2, %v4111_v31 }
 0x282   :  { %1564 = vrot.lane.b32.xlu0 %v1379_v29, %s4114_s16 }
 0x284   :  { %2486 = vrot.lane.b32.xlu1 %v2062_v34, %s4138_s3  ;;  %v4919_v22 = vpop.permute.xlu0 %1586 }
 0x286   :  { %v4922_v36 = vpop.permute.xlu1 %2262  ;;  %1572 = vrot.lane.b32.xlu0 %v1376_v32, %s4115_s1 }
 0x288   :  { %1532 = vrot.lane.b32.xlu1 %v1377_v37, %s4112_s14  ;;  %v4931_v28 = vpop.permute.xlu0 %1594  ;;  %v2108_v37 = vrot.slane %v2094_v27, %v4414_v44 }
 0x28a   :  { %v4934_v40 = vpop.permute.xlu1 %2270  ;;  %1580 = vrot.lane.b32.xlu0 %v1380_v39, %s4116_s17  ;;  %v1425_v39 = vrot.slane %v1411_v19, %v4414_v44  ;;  %v2112_v49 = vcombine.high %v2108_v37, %v4111_v31 }
 0x28c   :  { %1540 = vrot.lane.b32.xlu1 %v1361_v61, %s4077_s21  ;;  %v4941_v43 = vpop.permute.xlu0 %1602  ;;  %v1410_v61 = vrot.slane %v1396_v24, %v4414_v44  ;;  %v1429_v6 = vcombine.high %v1425_v39, %v4111_v31 }
 0x28e   :  { %v4944_v33 = vpop.permute.xlu1 %2278  ;;  %1588 = vrot.lane.b32.xlu0 %v1403_v45, %s4117_s18  ;;  %v1427_v4 = vcombine.high %v1410_v61, %v4111_v31  ;;  %v2120_v45 = vrot.slane %v3881_v42, %v4395_v14 }
 0x290   :  { %2264 = vrot.lane.b32.xlu1 %v2109_v46, %s4112_s14  ;;  %v4952_v52 = vpop.permute.xlu0 %1610  ;;  %v1437_v46 = vrot.slane %v640_v38, %v4395_v14  ;;  %s5805_s14 = smov 42  }
 0x292   :  { %v4955_v8 = vpop.permute.xlu1 %2286  ;;  %1596 = vrot.lane.b32.xlu0 %v1426_v5, %s4118_s19  ;;  %v2135_v5 = vrot.slane %v2120_v45, %v4414_v44  ;;  %v1452_v58 = vrot.slane %v1437_v46, %v4414_v44  ;;  %v1445_v2 = vcombine.high %v1437_v46, %v4111_v31 }
 0x294   :  { %2272 = vrot.lane.b32.xlu1 %v2093_v54, %s4077_s21  ;;  %v4962_v60 = vpop.permute.xlu0 %1618  ;;  %v1102_v54 = vmul.f32 %v640_v38, %v640_v38  ;;  %v2158_v20 = vcombine.high %v2135_v5, %v4111_v31  ;;  %s5804_s21 = smov 40  }
 0x296   :  { %v4966_v63 = vpop.permute.xlu1 %2294  ;;  %1604 = vrot.lane.b32.xlu0 %v1410_v61, %s4119_s20  ;;  %v1110_v56 = vsub.f32 %v1094_v23, %v1102_v54 }
 0x298   :  { %2280 = vrot.lane.b32.xlu1 %v2110_v62, %s4113_s15  ;;  %v4972_v3 = vpop.permute.xlu0 %1626  ;;  %v2128_v62 = vcombine.high %v2120_v45, %v4111_v31  ;;  %v1118_v51 = vmax.f32 %v1110_v56, 0.0  ;;  %s5806_s15 = smov 44  }
 0x29a   :  { %v4975_v9 = vpop.permute.xlu1 %2302  ;;  %1612 = vrot.lane.b32.xlu0 %v1427_v4, %s4120_s22  ;;  %v2142_v27 = vrot.slane %v2128_v62, %v4414_v44  ;;  %v1126_v19 = vadd.f32 1e-05, %v1118_v51 }
 0x29c   :  { %2288 = vrot.lane.b32.xlu1 %v2101_v10, %s4074_s6  ;;  %v4980_v16 = vpop.permute.xlu0 %1634  ;;  %v1475_v10 = vcombine.high %v1452_v58, %v4111_v31  ;;  %v2159_v45 = vcombine.high %v2142_v27, %v4111_v31  ;;  %3882 = vrsqrt.f32 %v1126_v19 }
 0x29e   :  { %v4985_v29 = vpop.permute.xlu1 %2310  ;;  %1620 = vrot.lane.b32.xlu0 %v1418_v21, %s4121_s23 }
 0x2a0   :  { %2296 = vrot.lane.b32.xlu1 %v2111_v18, %s4114_s16  ;;  %v4989_v34 = vpop.permute.xlu0 %1642  ;;  %v2113_v18 = vcombine.high %v3881_v42, %v4111_v31 }
 0x2a2   :  { %v4993_v32 = vpop.permute.xlu1 %2318  ;;  %1628 = vrot.lane.b32.xlu0 %v1428_v17, %s4122_s24  ;;  %v1430_v17 = vcombine.high %v640_v38, %v4111_v31  ;;  %v2127_v46 = vrot.slane %v2113_v18, %v4395_v14 }
 0x2a4   :  { %2304 = vrot.lane.b32.xlu1 %v2108_v37, %s4115_s1  ;;  %v4999_v55 = vpop.permute.xlu0 %1650  ;;  %v1444_v42 = vrot.slane %v1430_v17, %v4395_v14  ;;  %v2143_v62 = vcombine.high %v2127_v46, %v4111_v31 }
 0x2a6   :  { %v5002_v48 = vpop.permute.xlu1 %2326  ;;  %1636 = vrot.lane.b32.xlu0 %v1425_v39, %s4123_s25  ;;  %v1459_v39 = vrot.slane %v1445_v2, %v4414_v44  ;;  %v1467_v56 = vrot.slane %v1444_v42, %v4414_v44  ;;  %v2157_v17 = vrot.slane %v2143_v62, %v4414_v44  ;;  %v3883_v19 = vpop.eup %3882 }
 0x2a8   :  { %2312 = vrot.lane.b32.xlu1 %v2112_v49, %s4116_s17  ;;  %v5010_v24 = vpop.permute.xlu0 %1658  ;;  %v1476_v38 = vcombine.high %v1459_v39, %v4111_v31  ;;  %v1477_v51 = vcombine.high %v1467_v56, %v4111_v31 }
 0x2aa   :  { %v5013_v26 = vpop.permute.xlu1 %2334  ;;  %1644 = vrot.lane.b32.xlu0 %v1429_v6, %s4124_s26 }
 0x2ac   :  { %2320 = vrot.lane.b32.xlu1 %v2135_v5, %s4117_s18  ;;  %v5018_v57 = vpop.permute.xlu0 %1666  ;;  %v2150_v5 = vrot.slane %v2127_v46, %v4414_v44 }
 0x2ae   :  { %v5021_v61 = vpop.permute.xlu1 %2342  ;;  %1652 = vrot.lane.b32.xlu0 %v1452_v58, %s4125_s27 }
 0x2b0   :  { %2328 = vrot.lane.b32.xlu1 %v2158_v20, %s4118_s19  ;;  %v5028_v4 = vpop.permute.xlu0 %1674  ;;  %v2160_v20 = vcombine.high %v2150_v5, %v4111_v31 }
 0x2b2   :  { %v5031_v21 = vpop.permute.xlu1 %2350  ;;  %1660 = vrot.lane.b32.xlu0 %v1475_v10, %s4126_s28  ;;  %v1460_v10 = vcombine.high %v1444_v42, %v4111_v31  ;;  %v2169_v42 = vrot.slane %v3883_v19, %v4395_v14 }
 0x2b4   :  { %2336 = vrot.lane.b32.xlu1 %v2142_v27, %s4119_s20  ;;  %v5038_v37 = vpop.permute.xlu0 %1682  ;;  %v641_v27 = vmul.f32 0.5, %v4887_v0  ;;  %v1474_v46 = vrot.slane %v1460_v10, %v4414_v44  ;;  %v2161_v0 = vcombine.high %v2157_v17, %v4111_v31  ;;  %v2184_v10 = vrot.slane %v2169_v42, %v4414_v44 }
 0x2b5   :  { %v2177_v41 = vcombine.high %v2169_v42, %v4111_v31 }
 0x2b6   :  { %v5041_v49 = vpop.permute.xlu1 %2358  ;;  %1668 = vrot.lane.b32.xlu0 %v1459_v39, %s4127_s29  ;;  %v1095_v39 = vmul.f32 0.5, %v4863_v50  ;;  %v1486_v50 = vrot.slane %v641_v27, %v4395_v14  ;;  %v1478_v62 = vcombine.high %v1474_v46, %v4111_v31 }
 0x2b7   :  { %v2191_v42 = vrot.slane %v2177_v41, %v4414_v44 }
 0x2b8   :  { %2344 = vrot.lane.b32.xlu1 %v2159_v45, %s4120_s22  ;;  %v5048_v23 = vpop.permute.xlu0 %1690 }
 0x2ba   :  { %v5051_v6 = vpop.permute.xlu1 %2366  ;;  %1676 = vrot.lane.b32.xlu0 %v1476_v38, %s4128_s7  ;;  %v1103_v38 = vmul.f32 %v641_v27, %v641_v27 }
 0x2bc   :  { %2352 = vrot.lane.b32.xlu1 %v2150_v5, %s4121_s23  ;;  %v5056_v54 = vpop.permute.xlu0 %1698 }
 0x2be   :  { %v5059_v58 = vpop.permute.xlu1 %2374  ;;  %1684 = vrot.lane.b32.xlu0 %v1467_v56, %s5804_s21  ;;  %v1111_v56 = vsub.f32 %v1095_v39, %v1103_v38  ;;  %v1501_v39 = vrot.slane %v1486_v50, %v4414_v44 }
 0x2c0   :  { %2360 = vrot.lane.b32.xlu1 %v2160_v20, %s4122_s24  ;;  %v5065_v2 = vpop.permute.xlu0 %1706  ;;  %v1524_v7 = vcombine.high %v1501_v39, %v4111_v31 }
 0x2c2   :  { %v5070_v18 = vpop.permute.xlu1 %2382  ;;  %1692 = vrot.lane.b32.xlu0 %v1477_v51, %s5805_s14 }
 0x2c4   :  { %2368 = vrot.lane.b32.xlu1 %v2157_v17, %s4123_s25  ;;  %v5076_v45 = vpop.permute.xlu0 %1714  ;;  %v1119_v17 = vmax.f32 %v1111_v56, 0.0  ;;  %v1776_v56 = vsel %vm608_vm2, %v4707_v12, %v4896_v11  ;;  %v1479_v12 = vcombine.high %v641_v27, %v4111_v31 }
 0x2c6   :  { %v5079_v5 = vpop.permute.xlu1 %2390  ;;  %1700 = vrot.lane.b32.xlu0 %v1474_v46, %s5806_s15  ;;  %v1127_v46 = vadd.f32 1e-05, %v1119_v17  ;;  %v2162_v17 = vcombine.high %v3883_v19, %v4111_v31 }
 0x2c8   :  { %2376 = vrot.lane.b32.xlu1 %v2161_v0, %s4124_s26  ;;  %v5086_v20 = vpop.permute.xlu0 %1722  ;;  %v2207_v0 = vcombine.high %v2184_v10, %v4111_v31  ;;  %3884 = vrsqrt.f32 %v1127_v46 }
 0x2ca   :  { %v5089_v51 = vpop.permute.xlu1 %2398  ;;  %1708 = vrot.lane.b32.xlu0 %v1478_v62, %s4132_s10  ;;  %v1494_v62 = vcombine.high %v1486_v50, %v4111_v31  ;;  %v1779_v50 = vsel %vm1778_vm3, %v1776_v56, %v4872_v53 }
 0x2cb   :  { %v1782_v11 = vsel %vm1781_vm4, %v1779_v50, %v4912_v35  ;;  %v1493_v35 = vrot.slane %v1479_v12, %v4395_v14 }
 0x2cc   :  { %2384 = vrot.lane.b32.xlu1 %v2184_v10, %s4125_s27  ;;  %v5094_v13 = vpop.permute.xlu0 %1730  ;;  %v1508_v41 = vrot.slane %v1494_v62, %v4414_v44  ;;  %v1785_v53 = vsel %vm5779_vm5, %v1782_v11, %v4881_v59 }
 0x2cd   :  { %v1788_v27 = vsel %vm5782_vm6, %v1785_v53, %v4890_v1  ;;  %v2508_v1 = vsel %vm608_vm2, %v4730_v47, %v4922_v36  ;;  %v1516_v36 = vrot.slane %v1493_v35, %v4414_v44 }
 0x2ce   :  { %v5097_v38 = vpop.permute.xlu1 %2406  ;;  %1716 = vrot.lane.b32.xlu0 %v1501_v39, %s4133_s11  ;;  %v1525_v62 = vcombine.high %v1508_v41, %v4111_v31  ;;  %v1791_v56 = vsel %vm5780_vm7, %v1788_v27, %v4899_v15  ;;  %v2510_v15 = vsel %vm1778_vm3, %v2508_v1, %v4934_v40 }
 0x2cf   :  { %v2512_v12 = vsel %vm1781_vm4, %v2510_v15, %v4944_v33 }
 0x2d0   :  { %2392 = vrot.lane.b32.xlu1 %v2207_v0, %s4126_s28  ;;  %v5107_v25 = vpop.permute.xlu0 %1738  ;;  %v2176_v0 = vrot.slane %v2162_v17, %v4395_v14  ;;  %v1794_v17 = vsel %vm5781_vm8, %v1791_v56, %v4907_v30  ;;  %v2514_v40 = vsel %vm5779_vm5, %v2512_v12, %v4955_v8  ;;  %vm5790_vm5 = vcmask 261120  }
 0x2d1   :  { %v1797_v50 = vsel %vm5783_vm9, %v1794_v17, %v4919_v22  ;;  %v2516_v53 = vsel %vm5782_vm6, %v2514_v40, %v4966_v63  ;;  %vm5793_vm6 = vcmask 310272  }
 0x2d2   :  { %v5110_v10 = vpop.permute.xlu1 %2414  ;;  %1724 = vrot.lane.b32.xlu0 %v1524_v7, %s4134_s12  ;;  %v2208_v7 = vcombine.high %v2191_v42, %v4111_v31  ;;  %v2199_v59 = vrot.slane %v2176_v0, %v4414_v44  ;;  %v1800_v30 = vsel %vm1799_vm10, %v1797_v50, %v4931_v28  ;;  %v3885_v11 = vpop.eup %3884  ;;  %v2192_v28 = vcombine.high %v2176_v0, %v4111_v31 }
 0x2d3   :  { %v1803_v22 = vsel %vm5787_vm11, %v1800_v30, %v4941_v43  ;;  %v2518_v8 = vsel %vm5780_vm7, %v2516_v53, %v4975_v9  ;;  %v1509_v0 = vcombine.high %v1493_v35, %v4111_v31  ;;  %vm5792_vm7 = vcmask 277504  }
 0x2d4   :  { %2400 = vrot.lane.b32.xlu1 %v2191_v42, %s4127_s29  ;;  %v5121_v39 = vpop.permute.xlu0 %1746  ;;  %v1806_v33 = vsel %vm5785_vm12, %v1803_v22, %v4952_v52  ;;  %v2520_v63 = vsel %vm5781_vm8, %v2518_v8, %v4985_v29  ;;  %vm1826_vm8 = vcmask 293888  }
 0x2d5   :  { %v1809_v43 = vsel %vm5786_vm13, %v1806_v33, %v4962_v60  ;;  %v2211_v60 = vcombine.high %v3885_v11, %v4111_v31  ;;  %v2522_v56 = vsel %vm5783_vm9, %v2520_v63, %v4993_v32  ;;  %vm5794_vm9 = vcmask 326656  }
 0x2d6   :  { %v5124_v19 = vpop.permute.xlu1 %2422  ;;  %1732 = vrot.lane.b32.xlu0 %v1508_v41, %s4135_s13  ;;  %v1812_v52 = vsel %vm5791_vm14, %v1809_v43, %v4972_v3  ;;  %v2206_v3 = vrot.slane %v2192_v28, %v4414_v44  ;;  %v1523_v1 = vrot.slane %v1509_v0, %v4414_v44 }
 0x2d7   :  { %v1815_v9 = vsel %vm5788_vm15, %v1812_v52, %v4980_v16  ;;  %v5213_v50 = vrot.slane %v2211_v60, %v4395_v14  ;;  %v5807_v52 = vld [vmem:[#allocation12_spill] sm:$0xff] }
 0x2d8   :  { %2408 = vrot.lane.b32.xlu1 %v2208_v7, %s4128_s7  ;;  %v5135_v46 = vpop.permute.xlu0 %1754  ;;  %v2209_v7 = vcombine.high %v2199_v59, %v4111_v31  ;;  %v1818_v29 = vsel %vm5789_vm1, %v1815_v9, %v4989_v34  ;;  %v2210_v30 = vcombine.high %v2206_v3, %v4111_v31  ;;  %v5284_v63 = vsub.s32 0, %v5807_v52 }
 0x2d9   :  { %v1821_v16 = vsel %vm5790_vm5, %v1818_v29, %v4999_v55 }
 0x2da   :  { %v5140_v42 = vpop.permute.xlu1 %2430  ;;  %1740 = vrot.lane.b32.xlu0 %v1525_v62, %s4136_s30  ;;  %v1526_v62 = vcombine.high %v1516_v36, %v4111_v31  ;;  %v1824_v34 = vsel %vm5792_vm7, %v1821_v16, %v5010_v24  ;;  %v2218_v24 = vrot.slane %v3885_v11, %v4395_v14  ;;  %v2241_v11 = vcombine.high %v5213_v50, %v4111_v31 }
 0x2db   :  { %v1827_v55 = vsel %vm1826_vm8, %v1824_v34, %v5018_v57 }
 0x2dc   :  { %2416 = vrot.lane.b32.xlu1 %v2199_v59, %s5804_s21  ;;  %v5158_v47 = vpop.permute.xlu0 %1762  ;;  %v2524_v59 = vsel %vm1799_vm10, %v2522_v56, %v5002_v48  ;;  %v2233_v40 = vrot.slane %v2218_v24, %v4414_v44  ;;  %v5258_v28 = vrot.slane %v2241_v11, %v4414_v44  ;;  %v2226_v43 = vcombine.high %v2218_v24, %v4111_v31  ;;  %v3953_v11 = vld [vmem:[#allocation2 + $0x18] sm:$0xff] }
 0x2dd   :  { %v2526_v32 = vsel %vm5787_vm11, %v2524_v59, %v5013_v26  ;;  %vm1844_vm11 = vcmask 392192  }
 0x2de   :  { %v5165_v41 = vpop.permute.xlu1 %2438  ;;  %1748 = vrot.lane.b32.xlu0 %v1516_v36, %s4137_s0  ;;  %v2528_v48 = vsel %vm5785_vm12, %v2526_v32, %v5021_v61  ;;  %v1830_v61 = vsel %vm5793_vm6, %v1827_v55, %v5028_v4  ;;  %vm1838_vm12 = vcmask 359424   ;;  %v1527_v36 = vcombine.high %v1523_v1, %v4111_v31  ;;  %v3950_v55 = vld [vmem:[#allocation2] sm:$0xff] }
 0x2df   :  { %v2530_v26 = vsel %vm5786_vm13, %v2528_v48, %v5031_v21  ;;  %v1833_v57 = vsel %vm5794_vm9, %v1830_v61, %v5038_v37  ;;  %vm1841_vm13 = vcmask 375808   ;;  %v2256_v53 = vcombine.high %v2233_v40, %v4111_v31 }
 0x2e0   :  { %2424 = vrot.lane.b32.xlu1 %v2209_v7, %s5805_s14  ;;  %v5184_v27 = vpop.permute.xlu0 %1770  ;;  %v2532_v12 = vsel %vm5791_vm14, %v2530_v26, %v5041_v49  ;;  %v1836_v14 = vsel %vm1835_vm0, %v1833_v57, %v5048_v23  ;;  %vm5798_vm14 = vcmask 457728  }
 0x2e1   :  { %v2534_v21 = vsel %vm5788_vm15, %v2532_v12, %v5051_v6  ;;  %v1839_v37 = vsel %vm1838_vm12, %v1836_v14, %v5056_v54  ;;  %vm1847_vm15 = vcmask 408576   ;;  %v5808_v12 = vld [vmem:[#allocation13_spill] sm:$0xff] }
 0x2e2   :  { %v5192_v35 = vpop.permute.xlu1 %2446  ;;  %1756 = vrot.lane.b32.xlu0 %v1526_v62, %s4138_s3  ;;  %v2536_v4 = vsel %vm5789_vm1, %v2534_v21, %v5059_v58  ;;  %v1842_v23 = vsel %vm1841_vm13, %v1839_v37, %v5065_v2  ;;  %vm5800_vm1 = vcmask 424960   ;;  %v2240_v62 = vrot.slane %v2226_v43, %v4414_v44 }
 0x2e3   :  { %v2538_v6 = vsel %vm5790_vm5, %v2536_v4, %v5070_v18  ;;  %v1845_v7 = vsel %vm1844_vm11, %v1842_v23, %v5076_v45  ;;  %vm5799_vm5 = vcmask 441344  }
 0x2e4   :  { %2432 = vrot.lane.b32.xlu1 %v2206_v3, %s5806_s15  ;;  %v5209_v17 = vpop.permute.xlu0 %2494  ;;  %v2540_v58 = vsel %vm5792_vm7, %v2538_v6, %v5079_v5  ;;  %v1848_v18 = vsel %vm1847_vm15, %v1845_v7, %v5086_v20  ;;  %vm5797_vm7 = vcmask 474112   ;;  %v2257_v29 = vcombine.high %v2240_v62, %v4111_v31 }
 0x2e5   :  { %v2542_v54 = vsel %vm1826_vm8, %v2540_v58, %v5089_v51  ;;  %v1851_v45 = vsel %vm5800_vm1, %v1848_v18, %v5094_v13  ;;  %v2259_v7 = vcombine.high %v5258_v28, %v4111_v31 }
 0x2e6   :  { %v2455_v15 = vpop.permute.xlu1 %2454  ;;  %1764 = vrot.lane.b32.xlu0 %v1523_v1, %s4139_s8  ;;  %v2544_v2 = vsel %vm5793_vm6, %v2542_v54, %v5097_v38  ;;  %v1854_v20 = vsel %vm5799_vm5, %v1851_v45, %v5107_v25  ;;  %vm5796_vm6 = vcmask 490496   ;;  %v2248_v1 = vrot.slane %v5213_v50, %v4414_v44 }
 0x2e7   :  { %v2546_v51 = vsel %vm5794_vm9, %v2544_v2, %v5110_v10  ;;  %v1857_v13 = vsel %vm5798_vm14, %v1854_v20, %v5121_v39  ;;  %vm5795_vm9 = vcmask 506880  }
 0x2e8   :  { %2440 = vrot.lane.b32.xlu1 %v2210_v30, %s4132_s10  ;;  %v2503_v49 = vpop.permute.xlu0 %2502  ;;  %v2548_v38 = vsel %vm1835_vm0, %v2546_v51, %v5124_v19  ;;  %v1860_v8 = vsel %vm5797_vm7, %v1857_v13, %v5135_v46  ;;  %v2258_v14 = vcombine.high %v2248_v1, %v4111_v31 }
 0x2e9   :  { %v2550_v10 = vsel %vm1838_vm12, %v2548_v38, %v5140_v42  ;;  %v1863_v0 = vsel %vm5796_vm6, %v1860_v8, %v5158_v47  ;;  %v3954_v38 = vld [vmem:[#allocation2 + $0x20] sm:$0xff] }
 0x2ea   :  { %v2463_v22 = vpop.permute.xlu1 %2462  ;;  %1772 = vrot.lane.b32.xlu0 %v1527_v36, %s4140_s9  ;;  %v2552_v25 = vsel %vm1841_vm13, %v2550_v10, %v5165_v41  ;;  %v1866_v60 = vsel %vm5795_vm9, %v1863_v0, %v5184_v27  ;;  %v3955_v10 = vld [vmem:[#allocation2 + $0x28] sm:$0xff] }
 0x2eb   :  { %v2554_v39 = vsel %vm1844_vm11, %v2552_v25, %v5192_v35  ;;  %v5296_v56 = vrot.slane %v1866_v60, %v5284_v63 }
 0x2ec   :  { %2448 = vrot.lane.b32.xlu1 %v2233_v40, %s4133_s11  ;;  %v1549_v5 = vpop.permute.xlu0 %1548  ;;  %v2556_v46 = vsel %vm1847_vm15, %v2554_v39, %v2455_v15  ;;  %v3951_v15 = vld [vmem:[#allocation2 + $0x8] sm:$0xff]  ;;  %v5811_v40 = vmov 0  }
 0x2ed   :  { %v2558_v41 = vsel %vm5800_vm1, %v2556_v46, %v2463_v22  ;;  %v2578_v26 = vsub.f32 %v3950_v55, %v5296_v56  ;;  %v2579_v30 = vsub.f32 %v3951_v15, %v5296_v56  ;;  %v2581_v37 = vsub.f32 %v3953_v11, %v5296_v56 }
 0x2ee   :  { %v2471_v33 = vpop.permute.xlu1 %2470  ;;  %2496 = vrot.lane.b32.xlu0 %v5258_v28, %s4139_s8  ;;  %v2582_v13 = vsub.f32 %v3954_v38, %v5296_v56  ;;  %v2583_v8 = vsub.f32 %v3955_v10, %v5296_v56  ;;  %vm5833_vm1 = vcmask 277504  }
 0x2ef   :  { %v2560_v47 = vsel %vm5799_vm5, %v2558_v41, %v2471_v33  ;;  %v5816_v33 = vld [vmem:[#allocation14_spill] sm:$0xff] }
 0x2f0   :  { %2456 = vrot.lane.b32.xlu1 %v2256_v53, %s4134_s12  ;;  %v1557_v19 = vpop.permute.xlu0 %1556 }
 0x2f2   :  { %v2479_v42 = vpop.permute.xlu1 %2478 }
 0x2f3   :  { %v2562_v35 = vsel %vm5798_vm14, %v2560_v47, %v2479_v42  ;;  %vm5814_vm14 = vcmask 113664  }
 0x2f4   :  { %2464 = vrot.lane.b32.xlu1 %v2240_v62, %s4135_s13  ;;  %v1565_v9 = vpop.permute.xlu0 %1564 }
 0x2f6   :  { %v2487_v3 = vpop.permute.xlu1 %2486 }
 0x2f7   :  { %v2564_v59 = vsel %vm5797_vm7, %v2562_v35, %v2487_v3  ;;  %vm5812_vm7 = vcmask 80896   ;;  %v3957_v3 = vld [vmem:[#allocation2 + $0x38] sm:$0xff] }
 0x2f8   :  { %v2566_v27 = vsel %vm5796_vm6, %v2564_v59, %v5209_v17  ;;  %2472 = vrot.lane.b32.xlu1 %v2257_v29, %s4136_s30  ;;  %v1573_v32 = vpop.permute.xlu0 %1572  ;;  %vm5810_vm6 = vcmask 64512   ;;  %v2585_v29 = vsub.f32 %v3957_v3, %v5296_v56 }
 0x2f9   :  { %v2568_v16 = vsel %vm5795_vm9, %v2566_v27, %v2503_v49  ;;  %vm5809_vm9 = vcmask 523264   ;;  %v3952_v49 = vld [vmem:[#allocation2 + $0x10] sm:$0xff] }
 0x2fa   :  { %v5306_v34 = vrot.slane %v2568_v16, %v5284_v63  ;;  %v1533_v48 = vpop.permute.xlu1 %1532  ;;  %v2580_v36 = vsub.f32 %v3952_v49, %v5296_v56 }
 0x2fb   :  { %v1777_v57 = vsel %vm608_vm2, %v5808_v12, %v1533_v48 }
 0x2fc   :  { %2480 = vrot.lane.b32.xlu1 %v2248_v1, %s4137_s0  ;;  %v2602_v17 = vmul.f32 %v5306_v34, %v2578_v26  ;;  %v2603_v24 = vmul.f32 %v5306_v34, %v2579_v30  ;;  %v1581_v61 = vpop.permute.xlu0 %1580  ;;  %v2604_v54 = vmul.f32 %v5306_v34, %v2580_v36  ;;  %v2605_v18 = vmul.f32 %v5306_v34, %v2581_v37 }
 0x2fd   :  { %v2606_v39 = vmul.f32 %v5306_v34, %v2582_v13  ;;  %v2607_v42 = vmul.f32 %v5306_v34, %v2583_v8 }
 0x2fe   :  { %v1541_v21 = vpop.permute.xlu1 %1540  ;;  %v2618_v44 = vpack.c.bf16 %v2603_v24, %v2602_v17  ;;  %v2619_v31 = vpack.c.bf16 %v2605_v18, %v2604_v54 }
 0x2ff   :  { %v1780_v50 = vsel %vm1778_vm3, %v1777_v57, %v1541_v21  ;;  %v2620_v41 = vpack.c.bf16 %v2607_v42, %v2606_v39 }
 0x300   :  { %v1783_v4 = vsel %vm1781_vm4, %v1780_v50, %v1549_v5  ;;  %2488 = vrot.lane.b32.xlu1 %v2258_v14, %s4138_s3  ;;  %3605 = vmatmul.mubr.msk.bf16.vlgmr.msra.gmra.mrb[0].mxu0 %vm5809_vm9, %v2618_v44  ;;  %v1589_v22 = vpop.permute.xlu0 %1588  ;;  %vm5813_vm9 = vcmask 97280  }
 0x301   :  { %v1786_v6 = vsel %vm5810_vm6, %v1783_v4, %v1557_v19  ;;  %2752 = vmatprep.mubr.bf16.mxu0 %v5811_v40  ;;  %vm5815_vm6 = vcmask 130048  }
 0x302   :  { %v1789_v23 = vsel %vm5812_vm7, %v1786_v6, %v1565_v9  ;;  %v2265_v58 = vpop.permute.xlu1 %2264  ;;  %vm5817_vm7 = vcmask 523264   ;;  %v3956_v9 = vld [vmem:[#allocation2 + $0x30] sm:$0xff] }
 0x303   :  { %v1792_v2 = vsel %vm5813_vm9, %v1789_v23, %v1573_v32  ;;  %v2509_v53 = vsel %vm608_vm2, %v5816_v33, %v2265_v58  ;;  %vm5819_vm2 = vcmask 64512   ;;  %v2584_v35 = vsub.f32 %v3956_v9, %v5296_v56 }
 0x304   :  { %v1795_v5 = vsel %vm5814_vm14, %v1792_v2, %v1581_v61  ;;  %2504 = vrot.lane.b32.xlu1 %v2259_v7, %s4140_s9  ;;  %v1597_v51 = vpop.permute.xlu0 %1596  ;;  %vm5818_vm14 = vcmask 162816   ;;  %v2609_v32 = vmul.f32 %v5306_v34, %v2585_v29 }
 0x305   :  { %v1798_v45 = vsel %vm5815_vm6, %v1795_v5, %v1589_v22  ;;  %v2608_v16 = vmul.f32 %v5306_v34, %v2584_v35 }
 0x306   :  { %v1801_v43 = vsel %vm1799_vm10, %v1798_v45, %v1597_v51  ;;  %v2273_v20 = vpop.permute.xlu1 %2272 }
 0x307   :  { %v2511_v28 = vsel %vm1778_vm3, %v2509_v53, %v2273_v20  ;;  %vm5820_vm3 = vmmov %vm5817_vm7  ;;  %v2621_v26 = vpack.c.bf16 %v2609_v32, %v2608_v16 }
 0x308   :  { %3606 = vmatmul.mubr.msk.bf16.gmra.mrb[4].mxu0 %vm5817_vm7, %v2619_v31  ;;  %v1605_v25 = vpop.permute.xlu0 %1604  ;;  %vm5822_vm6 = vmmov %vm5820_vm3  ;;  %vm5823_vm7 = vcmask 113664  }
 0x309   :  { %2762 = vmatprep.mubr.bf16.mxu0 %v5811_v40  ;;  %v1804_v19 = vsel %vm5818_vm14, %v1801_v43, %v1605_v25  ;;  %vm5824_vm14 = vcmask 130048  }
 0x30a   :  { %v2281_v0 = vpop.permute.xlu1 %2280 }
 0x30b   :  { %v2513_v62 = vsel %vm1781_vm4, %v2511_v28, %v2281_v0  ;;  %vm5821_vm4 = vcmask 80896  }
 0x30c   :  { %v1613_v60 = vpop.permute.xlu0 %1612 }
 0x30e   :  { %v2289_v46 = vpop.permute.xlu1 %2288 }
 0x30f   :  { %v2515_v47 = vsel %vm5819_vm2, %v2513_v62, %v2289_v46  ;;  %vm5825_vm2 = vcmask 179200  }
 0x310   :  { %3607 = vmatmul.mubr.msk.bf16.gmra.mrb[8].mxu0 %vm5820_vm3, %v2620_v41  ;;  %v1621_v59 = vpop.permute.xlu0 %1620  ;;  %v1807_v38 = vsel %vm5825_vm2, %v1804_v19, %v1613_v60  ;;  %vm5826_vm3 = vcmask 195584   ;;  %vm5832_vm5 = vmmov %vm5825_vm2 }
 0x311   :  { %2772 = vmatprep.mubr.bf16.mxu0 %v5811_v40  ;;  %v1810_v13 = vsel %vm5826_vm3, %v1807_v38, %v1621_v59  ;;  %vm5834_vm2 = vmmov %vm5826_vm3  ;;  %v5412_v38 = vld [vmem:[#allocation2 + $0x50] sm:$0xff] }
 0x312   :  { %v2297_v27 = vpop.permute.xlu1 %2296 }
 0x313   :  { %v2517_v48 = vsel %vm5821_vm4, %v2515_v47, %v2297_v27  ;;  %vm5827_vm4 = vcmask 211968  }
 0x314   :  { %v1629_v1 = vpop.permute.xlu0 %1628  ;;  %vm5835_vm3 = vmmov %vm5827_vm4 }
 0x315   :  { %v1813_v10 = vsel %vm5827_vm4, %v1810_v13, %v1629_v1  ;;  %vm5836_vm4 = vcmask 310272  }
 0x316   :  { %v2305_v55 = vpop.permute.xlu1 %2304 }
 0x317   :  { %v2519_v15 = vsel %vm5813_vm9, %v2517_v48, %v2305_v55  ;;  %vm5828_vm9 = vcmask 228352  }
 0x318   :  { %3608 = vmatmul.mubr.msk.bf16.gmra.mrb[12].mxu0 %vm5822_vm6, %v2621_v26  ;;  %v1637_v30 = vpop.permute.xlu0 %1636  ;;  %vm5829_vm6 = vcmask 244736  }
 0x319   :  { %2782 = vmatprep.mubr.bf16.mxu0 %v5811_v40  ;;  %v1816_v25 = vsel %vm5828_vm9, %v1813_v10, %v1637_v30  ;;  %v5415_v10 = vld [vmem:[#allocation2 + $0x58] sm:$0xff] }
 0x31a   :  { %v2313_v56 = vpop.permute.xlu1 %2312 }
 0x31b   :  { %v2521_v17 = vsel %vm5823_vm7, %v2519_v15, %v2313_v56  ;;  %vm5830_vm7 = vcmask 162816  }
 0x31c   :  { %v1645_v24 = vpop.permute.xlu0 %1644 }
 0x31d   :  { %v1819_v39 = vsel %vm5829_vm6, %v1816_v25, %v1645_v24  ;;  %v3962_v25 = vld [vmem:[#allocation2 + $0x60] sm:$0xff] }
 0x31e   :  { %v2321_v61 = vpop.permute.xlu1 %2320 }
 0x31f   :  { %v2523_v12 = vsel %vm5824_vm14, %v2521_v17, %v2321_v61  ;;  %vm5831_vm14 = vcmask 261120  }
 0x320   :  { %v1653_v34 = vpop.permute.xlu0 %1652 }
 0x321   :  { %v1822_v62 = vsel %vm5831_vm14, %v1819_v39, %v1653_v34  ;;  %v3963_v39 = vld [vmem:[#allocation2 + $0x68] sm:$0xff] }
 0x322   :  { %v2329_v57 = vpop.permute.xlu1 %2328 }
 0x323   :  { %v2525_v0 = vsel %vm1799_vm10, %v2523_v12, %v2329_v57  ;;  %vm5837_vm10 = vmmov %vm5828_vm9  ;;  %vm5838_vm9 = vcmask 326656  }
 0x324   :  { %v1661_v21 = vpop.permute.xlu0 %1660 }
 0x325   :  { %v1825_v19 = vsel %vm5833_vm1, %v1822_v62, %v1661_v21  ;;  %v5418_v62 = vld [vmem:[#allocation2 + $0x70] sm:$0xff] }
 0x326   :  { %v2337_v14 = vpop.permute.xlu1 %2336 }
 0x327   :  { %v2527_v42 = vsel %vm5830_vm7, %v2525_v0, %v2337_v14  ;;  %vm5840_vm7 = vmmov %vm5836_vm4 }
 0x328   :  { %v1669_v44 = vpop.permute.xlu0 %1668 }
 0x329   :  { %v1828_v9 = vsel %vm1826_vm8, %v1825_v19, %v1669_v44 }
 0x32a   :  { %v2345_v50 = vpop.permute.xlu1 %2344 }
 0x32b   :  { %v2529_v46 = vsel %vm5832_vm5, %v2527_v42, %v2345_v50  ;;  %vm5839_vm5 = vmmov %vm5831_vm14 }
 0x32c   :  { %v1677_v4 = vpop.permute.xlu0 %1676  ;;  %vm5841_vm14 = vmmov %vm5838_vm9 }
 0x32d   :  { %v1831_v3 = vsel %vm5836_vm4, %v1828_v9, %v1677_v4  ;;  %vm5844_vm4 = vcmask 457728  }
 0x32e   :  { %v2353_v49 = vpop.permute.xlu1 %2352 }
 0x32f   :  { %v2531_v60 = vsel %vm5834_vm2, %v2529_v46, %v2353_v49  ;;  %vm5842_vm2 = vcmask 424960  }
 0x330   :  { %v1685_v36 = vpop.permute.xlu0 %1684 }
 0x331   :  { %v1834_v59 = vsel %vm5838_vm9, %v1831_v3, %v1685_v36  ;;  %vm5847_vm9 = vcmask 506880  }
 0x332   :  { %v2361_v11 = vpop.permute.xlu1 %2360 }
 0x333   :  { %v2533_v35 = vsel %vm5835_vm3, %v2531_v60, %v2361_v11  ;;  %vm5843_vm3 = vcmask 441344  }
 0x334   :  { %v1693_v37 = vpop.permute.xlu0 %1692 }
 0x335   :  { %v1837_v16 = vsel %vm1835_vm0, %v1834_v59, %v1693_v37 }
 0x336   :  { %v2369_v6 = vpop.permute.xlu1 %2368 }
 0x337   :  { %v2535_v29 = vsel %vm5837_vm10, %v2533_v35, %v2369_v6  ;;  %vm5846_vm10 = vcmask 490496  }
 0x338   :  { %v1701_v22 = vpop.permute.xlu0 %1700 }
 0x339   :  { %v1840_v1 = vsel %vm1838_vm12, %v1837_v16, %v1701_v22 }
 0x33a   :  { %v2377_v23 = vpop.permute.xlu1 %2376 }
 0x33b   :  { %v2537_v27 = vsel %vm5829_vm6, %v2535_v29, %v2377_v23  ;;  %vm5849_vm6 = vmmov %vm5843_vm3 }
 0x33c   :  { %v1709_v58 = vpop.permute.xlu0 %1708 }
 0x33d   :  { %v1843_v15 = vsel %vm1841_vm13, %v1840_v1, %v1709_v58 }
 0x33e   :  { %v2385_v7 = vpop.permute.xlu1 %2384 }
 0x33f   :  { %v2539_v32 = vsel %vm5839_vm5, %v2537_v27, %v2385_v7  ;;  %vm5853_vm5 = vmmov %vm5847_vm9 }
 0x340   :  { %v1717_v18 = vpop.permute.xlu0 %1716 }
 0x341   :  { %v1846_v56 = vsel %vm1844_vm11, %v1843_v15, %v1717_v18 }
 0x342   :  { %v2393_v54 = vpop.permute.xlu1 %2392 }
 0x343   :  { %v2541_v55 = vsel %vm5833_vm1, %v2539_v32, %v2393_v54 }
 0x344   :  { %v1725_v5 = vpop.permute.xlu0 %1724 }
 0x345   :  { %v1849_v24 = vsel %vm1847_vm15, %v1846_v56, %v1725_v5 }
 0x346   :  { %v2401_v2 = vpop.permute.xlu1 %2400 }
 0x347   :  { %v2543_v30 = vsel %vm1826_vm8, %v2541_v55, %v2401_v2  ;;  %vm5845_vm8 = vcmask 474112   ;;  %v2634_v55 = vld [vmem:[%s5760_s2] sm:$0x3]  ;;  %s5858_s2 = smov 64  }
 0x348   :  { %v1733_v33 = vpop.permute.xlu0 %1732  ;;  %v5433_v15 = vrot.slane %v2634_v55, %v5284_v63 }
 0x349   :  { %v1852_v34 = vsel %vm5842_vm2, %v1849_v24, %v1733_v33 }
 0x34a   :  { %v2409_v45 = vpop.permute.xlu1 %2408 }
 0x34b   :  { %v2545_v17 = vsel %vm5840_vm7, %v2543_v30, %v2409_v45 }
 0x34c   :  { %v1741_v43 = vpop.permute.xlu0 %1740 }
 0x34d   :  { %v1855_v21 = vsel %vm5843_vm3, %v1852_v34, %v1741_v43 }
 0x34e   :  { %v2417_v51 = vpop.permute.xlu1 %2416 }
 0x34f   :  { %v2547_v61 = vsel %vm5841_vm14, %v2545_v17, %v2417_v51 }
 0x350   :  { %v1749_v28 = vpop.permute.xlu0 %1748 }
 0x351   :  { %v1858_v44 = vsel %vm5844_vm4, %v1855_v21, %v1749_v28 }
 0x352   :  { %v2425_v53 = vpop.permute.xlu1 %2424 }
 0x353   :  { %v2549_v57 = vsel %vm1835_vm0, %v2547_v61, %v2425_v53  ;;  %vm5848_vm0 = vmmov %vm5842_vm2  ;;  %v5405_v53 = vld [vmem:[#allocation2 + $0x40] sm:$0xff] }
 0x354   :  { %v1757_v41 = vpop.permute.xlu0 %1756 }
 0x355   :  { %v1861_v49 = vsel %vm5845_vm8, %v1858_v44, %v1757_v41  ;;  %v3965_v41 = vld [vmem:[#allocation2 + $0x78] sm:$0xff] }
 0x356   :  { %v2433_v20 = vpop.permute.xlu1 %2432 }
 0x357   :  { %v2551_v14 = vsel %vm1838_vm12, %v2549_v57, %v2433_v20  ;;  %vm5850_vm12 = vmmov %vm5844_vm4 }
 0x358   :  { %v1765_v26 = vpop.permute.xlu0 %1764 }
 0x359   :  { %v1864_v37 = vsel %vm5846_vm10, %v1861_v49, %v1765_v26  ;;  %v2642_v26 = vsub.s32 1, %v5807_v52 }
 0x35a   :  { %v2441_v31 = vpop.permute.xlu1 %2440 }
 0x35b   :  { %v2553_v50 = vsel %vm1841_vm13, %v2551_v14, %v2441_v31  ;;  %vm5851_vm13 = vmmov %vm5845_vm8  ;;  %v5409_v31 = vld [vmem:[#allocation2 + $0x48] sm:$0xff]  ;;  %v5435_v56 = vrot.slane %v2634_v55, %v2642_v26 }
 0x35c   :  { %v1773_v4 = vpop.permute.xlu0 %1772 }
 0x35d   :  { %v1867_v22 = vsel %vm5847_vm9, %v1864_v37, %v1773_v4 }
 0x35e   :  { %v2449_v8 = vpop.permute.xlu1 %2448  ;;  %v2577_v18 = vrot.slane %v1867_v22, %v5284_v63 }
 0x35f   :  { %v2555_v36 = vsel %vm1844_vm11, %v2553_v50, %v2449_v8  ;;  %vm5852_vm11 = vmmov %vm5846_vm10 }
 0x360   :  { %v2497_v5 = vpop.permute.xlu0 %2496  ;;  %v2586_v43 = vsub.f32 %v5405_v53, %v2577_v18  ;;  %v2587_v28 = vsub.f32 %v5409_v31, %v2577_v18  ;;  %v2588_v13 = vsub.f32 %v5412_v38, %v2577_v18  ;;  %v2589_v8 = vsub.f32 %v5415_v10, %v2577_v18 }
 0x361   :  { %v2590_v0 = vsub.f32 %v3962_v25, %v2577_v18  ;;  %v2591_v42 = vsub.f32 %v3963_v39, %v2577_v18  ;;  %v2592_v46 = vsub.f32 %v5418_v62, %v2577_v18  ;;  %v2593_v19 = vsub.f32 %v3965_v41, %v2577_v18 }
 0x362   :  { %v2457_v47 = vpop.permute.xlu1 %2456 }
 0x363   :  { %v2557_v6 = vsel %vm1847_vm15, %v2555_v36, %v2457_v47  ;;  %vm5854_vm15 = vcmask 523264  }
 0x364   :  { %vm5855_vm1 = vmmov %vm5854_vm15 }
 0x365   :  { %vm5856_vm7 = vmmov %vm5855_vm1 }
 0x366   :  { %v2465_v48 = vpop.permute.xlu1 %2464  ;;  %vm5857_vm14 = vmmov %vm5855_vm1 }
 0x367   :  { %v2559_v23 = vsel %vm5848_vm0, %v2557_v6, %v2465_v48  ;;  %vm5859_vm2 = vmmov %vm5855_vm1 }
 0x368   :  { %vm5860_vm3 = vmmov %vm5855_vm1 }
 0x369   :  { %vm5861_vm4 = vmmov %vm5855_vm1 }
 0x36a   :  { %v2473_v12 = vpop.permute.xlu1 %2472  ;;  %vm5862_vm8 = vmmov %vm5855_vm1 }
 0x36b   :  { %v2561_v58 = vsel %vm5849_vm6, %v2559_v23, %v2473_v12  ;;  %vm5863_vm10 = vmmov %vm5855_vm1 }
 0x36c   :  { %vm5864_vm9 = vmmov %vm5855_vm1 }
 0x36d   :  { %vm5865_vm0 = vmmov %vm5855_vm1 }
 0x36e   :  { %v2481_v11 = vpop.permute.xlu1 %2480  ;;  %vm5866_vm6 = vmmov %vm5865_vm0 }
 0x36f   :  { %v2563_v7 = vsel %vm5850_vm12, %v2561_v58, %v2481_v11  ;;  %vm5867_vm12 = vmmov %vm5865_vm0 }
 0x372   :  { %v2489_v54 = vpop.permute.xlu1 %2488 }
 0x373   :  { %v2565_v2 = vsel %vm5851_vm13, %v2563_v7, %v2489_v54  ;;  %vm5868_vm13 = vmmov %vm5865_vm0 }
 0x374   :  { %v2567_v51 = vsel %vm5852_vm11, %v2565_v2, %v2497_v5  ;;  %vm5869_vm11 = vmmov %vm5865_vm0 }
 0x376   :  { %v2505_v45 = vpop.permute.xlu1 %2504 }
 0x377   :  { %v2569_v33 = vsel %vm5853_vm5, %v2567_v51, %v2505_v45  ;;  %vm5870_vm5 = vmmov %vm5865_vm0 }
 0x378   :  { %v2601_v20 = vrot.slane %v2569_v33, %v5284_v63 }
 0x37a   :  { %v2610_v60 = vmul.f32 %v2601_v20, %v2586_v43  ;;  %v2611_v47 = vmul.f32 %v2601_v20, %v2587_v28  ;;  %v2612_v9 = vmul.f32 %v2601_v20, %v2588_v13  ;;  %v2613_v35 = vmul.f32 %v2601_v20, %v2589_v8 }
 0x37b   :  { %v2614_v3 = vmul.f32 %v2601_v20, %v2590_v0  ;;  %v2615_v29 = vmul.f32 %v2601_v20, %v2591_v42  ;;  %v2616_v59 = vmul.f32 %v2601_v20, %v2592_v46  ;;  %v2617_v27 = vmul.f32 %v2601_v20, %v2593_v19 }
 0x37c   :  { %v2622_v16 = vpack.c.bf16 %v2611_v47, %v2610_v60  ;;  %v2623_v32 = vpack.c.bf16 %v2613_v35, %v2612_v9 }
 0x37d   :  { %v2624_v48 = vpack.c.bf16 %v2615_v29, %v2614_v3  ;;  %v2625_v1 = vpack.c.bf16 %v2617_v27, %v2616_v59 }
 0x37e   :  { %3609 = vmatmul.mubr.msk.bf16.gmra.mrb[16].mxu0 %vm5854_vm15, %v2622_v16  ;;  %vm5871_vm15 = vmmov %vm5865_vm0 }
 0x37f   :  { %2792 = vmatprep.mubr.bf16.mxu0 %v5811_v40 }
 0x386   :  { %3610 = vmatmul.mubr.msk.bf16.gmra.mrb[20].mxu0 %vm5855_vm1, %v2623_v32  ;;  %vm5872_vm1 = vmmov %vm5865_vm0 }
 0x387   :  { %2802 = vmatprep.mubr.bf16.mxu0 %v5811_v40 }
 0x38e   :  { %3611 = vmatmul.mubr.msk.bf16.gmra.mrb[24].mxu0 %vm5856_vm7, %v2624_v48  ;;  %vm5873_vm7 = vmmov %vm5865_vm0 }
 0x38f   :  { %2812 = vmatprep.mubr.bf16.mxu0 %v5811_v40 }
 0x396   :  { %3612 = vmatmul.mubr.msk.bf16.gmra.mrb[28].mxu0 %vm5857_vm14, %v2625_v1  ;;  %vm5874_vm14 = vmmov %vm5865_vm0 }
 0x3d3   :  { %v2744_v30 = vpop.f32.mrb[0].mxu0 }
 0x3d4   :  { %v2746_v17 = vpop.f32.mrb[1].mxu0  ;;  %v2745_v61 = vadd.f32 %v2744_v30, %v5433_v15 }
 0x3d5   :  { %v2748_v24 = vpop.f32.mrb[2].mxu0  ;;  %v2747_v34 = vadd.f32 %v2746_v17, %v5435_v56 }
 0x3d6   :  { %v2749_v40 = vadd.f32 %v2748_v24, %v5433_v15  ;;  %v2750_v12 = vpop.f32.mrb[3].mxu0 }
 0x3d7   :  { %v2751_v57 = vadd.f32 %v2750_v12, %v5435_v56 }
 0x3d8   :  { %v2823_v21 = vpack.c.bf16 %v2749_v40, %v2745_v61 }
 0x3d9   :  { %v5441_v14 = vpack.c.bf16 %v2751_v57, %v2747_v34 }
 0x3da   :  { %2843 = vrot.lane.b32.xlu0 %v2823_v21, %s5858_s2  ;;  %3694 = vmatprep.mubr.msk.bf16.mxu1 %vm5859_vm2, %v2823_v21  ;;  %vm5875_vm2 = vmmov %vm5865_vm0 }
 0x3db   :  { %v2754_v52 = vpop.f32.mrb[4].mxu0 }
 0x3dc   :  { %v2756_v63 = vpop.f32.mrb[5].mxu0  ;;  %v2755_v50 = vadd.f32 %v2754_v52, %v5433_v15 }
 0x3dd   :  { %v2758_v44 = vpop.f32.mrb[6].mxu0  ;;  %v2757_v36 = vadd.f32 %v2756_v63, %v5435_v56 }
 0x3de   :  { %v2759_v4 = vadd.f32 %v2758_v44, %v5433_v15  ;;  %v2760_v49 = vpop.f32.mrb[7].mxu0 }
 0x3df   :  { %v2761_v11 = vadd.f32 %v2760_v49, %v5435_v56 }
 0x3e0   :  { %v5449_v37 = vpack.c.bf16 %v2759_v4, %v2755_v50 }
 0x3e1   :  { %v5451_v6 = vpack.c.bf16 %v2761_v11, %v2757_v36 }
 0x3e2   :  { %2845 = vrot.lane.b32.xlu1 %v5449_v37, %s5858_s2 }
 0x3e3   :  { %v2764_v22 = vpop.f32.mrb[8].mxu0 }
 0x3e4   :  { %v2766_v23 = vpop.f32.mrb[9].mxu0  ;;  %v2765_v7 = vadd.f32 %v2764_v22, %v5433_v15 }
 0x3e5   :  { %v2768_v58 = vpop.f32.mrb[10].mxu0  ;;  %v2767_v2 = vadd.f32 %v2766_v23, %v5435_v56 }
 0x3e6   :  { %v2769_v54 = vadd.f32 %v2768_v58, %v5433_v15  ;;  %v2770_v18 = vpop.f32.mrb[11].mxu0 }
 0x3e7   :  { %v2771_v5 = vadd.f32 %v2770_v18, %v5435_v56 }
 0x3e8   :  { %v5459_v45 = vpack.c.bf16 %v2769_v54, %v2765_v7 }
 0x3e9   :  { %v5461_v51 = vpack.c.bf16 %v2771_v5, %v2767_v2 }
 0x3ea   :  { %2847 = vrot.lane.b32.xlu0 %v5459_v45, %s5858_s2 }
 0x3eb   :  { %v2774_v33 = vpop.f32.mrb[12].mxu0 }
 0x3ec   :  { %v2776_v43 = vpop.f32.mrb[13].mxu0  ;;  %v2775_v28 = vadd.f32 %v2774_v33, %v5433_v15 }
 0x3ed   :  { %v2778_v20 = vpop.f32.mrb[14].mxu0  ;;  %v2777_v25 = vadd.f32 %v2776_v43, %v5435_v56 }
 0x3ee   :  { %v2779_v13 = vadd.f32 %v2778_v20, %v5433_v15  ;;  %v2780_v8 = vpop.f32.mrb[15].mxu0 }
 0x3ef   :  { %v2781_v0 = vadd.f32 %v2780_v8, %v5435_v56 }
 0x3f0   :  { %v5469_v39 = vpack.c.bf16 %v2779_v13, %v2775_v28 }
 0x3f1   :  { %v5471_v42 = vpack.c.bf16 %v2781_v0, %v2777_v25 }
 0x3f2   :  { %2849 = vrot.lane.b32.xlu1 %v5469_v39, %s5858_s2 }
 0x44c   :  { %v2844_v46 = vpop.permute.xlu0 %2843 }
 0x44d   :  { %3774 = vmatprep.subr.msk.bf16.mxu1 %vm5860_vm3, %v2844_v46  ;;  %v2864_v41 = vsel %vm5861_vm4, %v2844_v46, 0  ;;  %vm5876_vm3 = vmmov %vm5865_vm0 }
 0x44e   :  { %3687 = vmatpush3.bf16.xpose.msra.mxu1 %v2864_v41  ;;  %vm5877_vm4 = vmmov %vm5865_vm0 }
 0x451   :  { %v2784_v19 = vpop.f32.mrb[16].mxu0 }
 0x452   :  { %v2786_v60 = vpop.f32.mrb[17].mxu0  ;;  %v2785_v9 = vadd.f32 %v2784_v19, %v5433_v15 }
 0x453   :  { %v2788_v47 = vpop.f32.mrb[18].mxu0  ;;  %v2787_v59 = vadd.f32 %v2786_v60, %v5435_v56 }
 0x454   :  { %v2789_v35 = vadd.f32 %v2788_v47, %v5433_v15  ;;  %v2846_v3 = vpop.permute.xlu1 %2845  ;;  %v2790_v29 = vpop.f32.mrb[19].mxu0 }
 0x455   :  { %v2791_v27 = vadd.f32 %v2790_v29, %v5435_v56  ;;  %3775 = vmatprep.subr.msk.bf16.mxu1 %vm5862_vm8, %v2846_v3  ;;  %v2867_v16 = vsel %vm5863_vm10, %v2846_v3, 0  ;;  %vm5878_vm8 = vmmov %vm5865_vm0 }
 0x456   :  { %v2827_v32 = vpack.c.bf16 %v2789_v35, %v2785_v9  ;;  %3689 = vmatpush3.bf16.xpose.msra.mxu1 %v2867_v16  ;;  %vm5879_vm10 = vmmov %vm5865_vm0 }
 0x457   :  { %v5483_v48 = vpack.c.bf16 %v2791_v27, %v2787_v59 }
 0x458   :  { %2944 = vrot.lane.b32.xlu0 %v2827_v32, %s5858_s2 }
 0x459   :  { %v2794_v1 = vpop.f32.mrb[20].mxu0 }
 0x45a   :  { %v2796_v55 = vpop.f32.mrb[21].mxu0  ;;  %v2795_v30 = vadd.f32 %v2794_v1, %v5433_v15 }
 0x45b   :  { %v2798_v26 = vpop.f32.mrb[22].mxu0  ;;  %v2797_v40 = vadd.f32 %v2796_v55, %v5435_v56 }
 0x45c   :  { %v2799_v17 = vadd.f32 %v2798_v26, %v5433_v15  ;;  %v2800_v24 = vpop.f32.mrb[23].mxu0  ;;  %v2848_v61 = vpop.permute.xlu0 %2847 }
 0x45d   :  { %v2801_v12 = vadd.f32 %v2800_v24, %v5435_v56  ;;  %3776 = vmatprep.subr.msk.bf16.mxu1 %vm5864_vm9, %v2848_v61  ;;  %v2870_v34 = vsel %vm5865_vm0, %v2848_v61, 0  ;;  %vm5880_vm9 = vmmov %vm5865_vm0 }
 0x45e   :  { %v2828_v57 = vpack.c.bf16 %v2799_v17, %v2795_v30  ;;  %3691 = vmatpush3.bf16.xpose.msra.mxu1 %v2870_v34 }
 0x45f   :  { %v5492_v21 = vpack.c.bf16 %v2801_v12, %v2797_v40 }
 0x460   :  { %2946 = vrot.lane.b32.xlu1 %v2828_v57, %s5858_s2 }
 0x461   :  { %v2804_v52 = vpop.f32.mrb[24].mxu0 }
 0x462   :  { %v2806_v63 = vpop.f32.mrb[25].mxu0  ;;  %v2805_v50 = vadd.f32 %v2804_v52, %v5433_v15 }
 0x463   :  { %v2808_v44 = vpop.f32.mrb[26].mxu0  ;;  %v2807_v11 = vadd.f32 %v2806_v63, %v5435_v56 }
 0x464   :  { %v2809_v4 = vadd.f32 %v2808_v44, %v5433_v15  ;;  %v2850_v49 = vpop.permute.xlu1 %2849  ;;  %v2810_v36 = vpop.f32.mrb[27].mxu0 }
 0x465   :  { %v2811_v22 = vadd.f32 %v2810_v36, %v5435_v56  ;;  %3777 = vmatprep.subr.msk.bf16.mxu1 %vm5866_vm6, %v2850_v49  ;;  %v2873_v23 = vsel %vm5867_vm12, %v2850_v49, 0  ;;  %vm5881_vm6 = vmmov %vm5865_vm0 }
 0x466   :  { %v2829_v58 = vpack.c.bf16 %v2809_v4, %v2805_v50  ;;  %3693 = vmatpush3.bf16.xpose.msra.mxu1 %v2873_v23  ;;  %vm5882_vm12 = vmmov %vm5865_vm0 }
 0x467   :  { %v5501_v7 = vpack.c.bf16 %v2811_v22, %v2807_v11 }
 0x468   :  { %2948 = vrot.lane.b32.xlu0 %v2829_v58, %s5858_s2 }
 0x469   :  { %v2814_v54 = vpop.f32.mrb[28].mxu0 }
 0x46a   :  { %v2816_v18 = vpop.f32.mrb[29].mxu0  ;;  %v2815_v5 = vadd.f32 %v2814_v54, %v5433_v15 }
 0x46b   :  { %v2818_v2 = vpop.f32.mrb[30].mxu0  ;;  %v2817_v20 = vadd.f32 %v2816_v18, %v5435_v56 }
 0x46c   :  { %v2819_v33 = vadd.f32 %v2818_v2, %v5433_v15  ;;  %v2820_v43 = vpop.f32.mrb[31].mxu0 }
 0x46d   :  { %v2821_v28 = vadd.f32 %v2820_v43, %v5435_v56  ;;  %3695 = vmatmul.mubr.msk.bf16.vlgmr.msra.gmra.mrb[0].mxu1 %vm5868_vm13, %v5449_v37  ;;  %vm5883_vm13 = vmmov %vm5865_vm0 }
 0x46e   :  { %v2830_v13 = vpack.c.bf16 %v2819_v33, %v2815_v5  ;;  %3698 = vmatprep.mubr.msk.bf16.mxu1 %vm5869_vm11, %v5459_v45  ;;  %vm5884_vm11 = vmmov %vm5865_vm0 }
 0x46f   :  { %v5512_v8 = vpack.c.bf16 %v2821_v28, %v2817_v20 }
 0x470   :  { %2950 = vrot.lane.b32.xlu1 %v2830_v13, %s5858_s2 }
 0x475   :  { %3699 = vmatmul.mubr.msk.bf16.gmra.mrb[4].mxu1 %vm5870_vm5, %v5469_v39  ;;  %vm5885_vm5 = vmmov %vm5865_vm0 }
 0x476   :  { %3710 = vmatprep.mubr.msk.bf16.mxu1 %vm5871_vm15, %v2827_v32  ;;  %vm5886_vm15 = vmmov %vm5865_vm0 }
 0x4ca   :  { %v2945_v15 = vpop.permute.xlu0 %2944 }
 0x4cb   :  { %v2965_v25 = vsel %vm5872_vm1, %v2945_v15, 0  ;;  %3778 = vmatprep.subr.msk.bf16.mxu1 %vm5873_vm7, %v2945_v15  ;;  %vm5887_vm1 = vmmov %vm5865_vm0 }
 0x4cc   :  { %3703 = vmatpush3.bf16.xpose.msra.mxu1 %v2965_v25  ;;  %vm5888_vm7 = vmmov %vm5865_vm0 }
 0x4d2   :  { %v2947_v56 = vpop.permute.xlu1 %2946 }
 0x4d3   :  { %v2968_v37 = vsel %vm5874_vm14, %v2947_v56, 0  ;;  %3779 = vmatprep.subr.msk.bf16.mxu1 %vm5875_vm2, %v2947_v56  ;;  %vm5889_vm14 = vmmov %vm5865_vm0 }
 0x4d4   :  { %3705 = vmatpush3.bf16.xpose.msra.mxu1 %v2968_v37  ;;  %vm5890_vm2 = vmmov %vm5865_vm0 }
 0x4da   :  { %v2949_v45 = vpop.permute.xlu0 %2948 }
 0x4db   :  { %v2971_v0 = vsel %vm5876_vm3, %v2949_v45, 0  ;;  %3780 = vmatprep.subr.msk.bf16.mxu1 %vm5877_vm4, %v2949_v45  ;;  %vm5891_vm3 = vmmov %vm5865_vm0 }
 0x4dc   :  { %3707 = vmatpush3.bf16.xpose.msra.mxu1 %v2971_v0  ;;  %vm5892_vm4 = vmmov %vm5865_vm0 }
 0x4e2   :  { %v2951_v39 = vpop.permute.xlu1 %2950 }
 0x4e3   :  { %v2974_v46 = vsel %vm5878_vm8, %v2951_v39, 0  ;;  %3781 = vmatprep.subr.msk.bf16.mxu1 %vm5879_vm10, %v2951_v39  ;;  %vm5893_vm8 = vmmov %vm5865_vm0 }
 0x4e4   :  { %3709 = vmatpush3.bf16.xpose.msra.mxu1 %v2974_v46  ;;  %vm5894_vm10 = vmmov %vm5865_vm0 }
 0x4e5   :  { %3718 = vmatprep.subr.bf16.mxu1 %v5441_v14 }
 0x4eb   :  { %3711 = vmatmul.mubr.msk.bf16.vlgmr.msra.gmra.mrb[8].mxu1 %vm5880_vm9, %v2828_v57  ;;  %vm5895_vm9 = vmmov %vm5865_vm0 }
 0x4ec   :  { %3714 = vmatprep.mubr.msk.bf16.mxu1 %vm5865_vm0, %v2829_v58  ;;  %3719 = vmatpush3.bf16.msra.mxu1 %v5441_v14 }
 0x4ed   :  { %3720 = vmatprep.subr.bf16.mxu1 %v5451_v6 }
 0x4f0   :  { %3721 = vmatpush3.bf16.msra.mxu1 %v5451_v6 }
 0x4f1   :  { %3722 = vmatprep.subr.bf16.mxu1 %v5461_v51 }
 0x4f3   :  { %3715 = vmatmul.mubr.msk.bf16.gmra.mrb[12].mxu1 %vm5881_vm6, %v2830_v13  ;;  %vm5896_vm6 = vmmov %vm5865_vm0 }
 0x4f4   :  { %3723 = vmatpush3.bf16.msra.mxu1 %v5461_v51 }
 0x4f5   :  { %3724 = vmatprep.subr.bf16.mxu1 %v5471_v42 }
 0x4f8   :  { %3725 = vmatpush3.bf16.msra.mxu1 %v5471_v42 }
 0x4f9   :  { %3734 = vmatprep.subr.bf16.mxu1 %v5483_v48 }
 0x540   :  { %v3696_v41 = vpop.f32.mrb[0].mxu1 }
 0x541   :  { %v2909_v19 = vpop.f32.mrb[1].mxu1  ;;  %v3047_v9 = vsel %vm5884_vm11, %v3696_v41, -inf  ;;  %vm5899_vm11 = vmmov %vm5865_vm0 }
 0x542   :  { %v5538_v60 = vpop.f32.mrb[2].mxu1  ;;  %v3041_v14 = vsel %vm5882_vm12, %v2909_v19, -inf  ;;  %vm5897_vm12 = vmmov %vm5865_vm0 }
 0x543   :  { %3042 = vmax.xlane.f32.xlu0 %v3041_v14  ;;  %v2912_v6 = vpop.f32.mrb[3].mxu1  ;;  %v3050_v3 = vsel %vm5885_vm5, %v5538_v60, -inf  ;;  %vm5900_vm5 = vmmov %vm5865_vm0 }
 0x544   :  { %v3044_v47 = vsel %vm5883_vm13, %v2912_v6, -inf  ;;  %vm5898_vm13 = vmmov %vm5865_vm0 }
 0x545   :  { %3045 = vmax.xlane.f32.xlu1 %v3044_v47 }
 0x547   :  { %3048 = vmax.xlane.f32.xlu0 %v3047_v9 }
 0x548   :  { %v5543_v51 = vpop.f32.mrb[4].mxu1 }
 0x549   :  { %v2925_v35 = vpop.f32.mrb[5].mxu1  ;;  %v3059_v27 = vsel %vm5887_vm1, %v5543_v51, -inf  ;;  %vm5902_vm1 = vmmov %vm5865_vm0 }
 0x54a   :  { %v5545_v42 = vpop.f32.mrb[6].mxu1  ;;  %v3053_v29 = vsel %vm5886_vm15, %v2925_v35, -inf  ;;  %vm5901_vm15 = vmmov %vm5865_vm0 }
 0x54b   :  { %3051 = vmax.xlane.f32.xlu0 %v3050_v3  ;;  %3054 = vmax.xlane.f32.xlu1 %v3053_v29  ;;  %v2928_v59 = vpop.f32.mrb[7].mxu1  ;;  %v3062_v32 = vsel %vm5889_vm14, %v5545_v42, -inf  ;;  %vm5904_vm14 = vmmov %vm5865_vm0 }
 0x54c   :  { %v3056_v16 = vsel %vm5888_vm7, %v2928_v59, -inf  ;;  %vm5903_vm7 = vmmov %vm5865_vm0 }
 0x54f   :  { %3060 = vmax.xlane.f32.xlu1 %v3059_v27  ;;  %3057 = vmax.xlane.f32.xlu0 %v3056_v16 }
 0x553   :  { %3063 = vmax.xlane.f32.xlu0 %v3062_v32 }
 0x5be   :  { %v5555_v1 = vpop.f32.mrb[8].mxu1 }
 0x5bf   :  { %v5557_v55 = vpop.f32.mrb[9].mxu1  ;;  %v3071_v61 = vsel %vm5892_vm4, %v5555_v1, -inf  ;;  %vm5907_vm4 = vmmov %vm5865_vm0 }
 0x5c0   :  { %v5559_v26 = vpop.f32.mrb[10].mxu1  ;;  %v3065_v30 = vsel %vm5890_vm2, %v5557_v55, -inf  ;;  %vm5905_vm2 = vmmov %vm5865_vm0 }
 0x5c1   :  { %3066 = vmax.xlane.f32.xlu1 %v3065_v30  ;;  %v5563_v17 = vpop.f32.mrb[11].mxu1  ;;  %v3074_v12 = vsel %vm5893_vm8, %v5559_v26, -inf  ;;  %vm5908_vm8 = vmmov %vm5865_vm0 }
 0x5c2   :  { %v3068_v24 = vsel %vm5891_vm3, %v5563_v17, -inf  ;;  %vm5906_vm3 = vmmov %vm5865_vm0 }
 0x5c3   :  { %3069 = vmax.xlane.f32.xlu0 %v3068_v24 }
 0x5c5   :  { %3072 = vmax.xlane.f32.xlu1 %v3071_v61 }
 0x5c6   :  { %v5569_v40 = vpop.f32.mrb[12].mxu1 }
 0x5c7   :  { %3075 = vmax.xlane.f32.xlu0 %v3074_v12  ;;  %v5573_v34 = vpop.f32.mrb[13].mxu1  ;;  %v3083_v50 = vsel %vm5865_vm0, %v5569_v40, -inf }
 0x5c8   :  { %v5575_v57 = vpop.f32.mrb[14].mxu1  ;;  %v3077_v52 = vsel %vm5894_vm10, %v5573_v34, -inf  ;;  %vm5909_vm10 = vmmov %vm5865_vm0 }
 0x5c9   :  { %3078 = vmax.xlane.f32.xlu1 %v3077_v52  ;;  %v5579_v63 = vpop.f32.mrb[15].mxu1  ;;  %v3086_v4 = vsel %vm5896_vm6, %v5575_v57, -inf  ;;  %vm5911_vm6 = vmmov %vm5865_vm0 }
 0x5ca   :  { %v3080_v44 = vsel %vm5895_vm9, %v5579_v63, -inf  ;;  %vm5910_vm9 = vmmov %vm5865_vm0 }
 0x5cb   :  { %3081 = vmax.xlane.f32.xlu0 %v3080_v44 }
 0x5cd   :  { %3084 = vmax.xlane.f32.xlu1 %v3083_v50 }
 0x5cf   :  { %3087 = vmax.xlane.f32.xlu0 %v3086_v4 }
 0x5d0   :  { %v3043_v49 = vpop.xlane.xlu0 %3042 }
 0x5d1   :  { %v3089_v36 = vsub.f32 %v2909_v19, %v3043_v49 }
 0x5d2   :  { %v3046_v11 = vpop.xlane.xlu1 %3045 }
 0x5d3   :  { %v3105_v22 = vmul.f32 1.442695, %v3089_v36  ;;  %v3090_v23 = vsub.f32 %v2912_v6, %v3046_v11 }
 0x5d4   :  { %v3049_v58 = vpop.xlane.xlu0 %3048 }
 0x5d5   :  { %3886 = vpow2.f32 %v3105_v22  ;;  %v3107_v54 = vmul.f32 1.442695, %v3090_v23  ;;  %v3091_v18 = vsub.f32 %v3696_v41, %v3049_v58 }
 0x5d7   :  { %3888 = vpow2.f32 %v3107_v54  ;;  %v3109_v2 = vmul.f32 1.442695, %v3091_v18 }
 0x5d8   :  { %v3055_v5 = vpop.xlane.xlu1 %3054  ;;  %v3052_v33 = vpop.xlane.xlu0 %3051 }
 0x5d9   :  { %3890 = vpow2.f32 %v3109_v2  ;;  %v3093_v43 = vsub.f32 %v2925_v35, %v3055_v5  ;;  %v3092_v20 = vsub.f32 %v5538_v60, %v3052_v33 }
 0x5db   :  { %v3113_v28 = vmul.f32 1.442695, %v3093_v43  ;;  %v3111_v13 = vmul.f32 1.442695, %v3092_v20 }
 0x5dc   :  { %v3061_v15 = vpop.xlane.xlu1 %3060  ;;  %v3058_v25 = vpop.xlane.xlu0 %3057 }
 0x5dd   :  { %3892 = vpow2.f32 %v3113_v28  ;;  %v3095_v56 = vsub.f32 %v5543_v51, %v3061_v15  ;;  %v3094_v37 = vsub.f32 %v2928_v59, %v3058_v25 }
 0x5de   :  { %3894 = vpow2.f32 %v3111_v13 }
 0x5df   :  { %v5589_v45 = vpop.eup %3886  ;;  %v3117_v0 = vmul.f32 1.442695, %v3095_v56  ;;  %v3115_v39 = vmul.f32 1.442695, %v3094_v37 }
 0x5e0   :  { %v3064_v46 = vpop.xlane.xlu0 %3063  ;;  %v3137_v41 = vsel %vm5897_vm12, %v5589_v45, 0.0  ;;  %vm5912_vm12 = vmmov %vm5865_vm0 }
 0x5e1   :  { %v5593_v19 = vpop.eup %3888  ;;  %3896 = vpow2.f32 %v3117_v0  ;;  %v3096_v60 = vsub.f32 %v5545_v42, %v3064_v46  ;;  %3138 = vadd.xlane.f32.xlu1 %v3137_v41 }
 0x5e2   :  { %3898 = vpow2.f32 %v3115_v39  ;;  %v3140_v14 = vsel %vm5898_vm13, %v5593_v19, 0.0  ;;  %vm5913_vm13 = vmmov %vm5865_vm0 }
 0x5e3   :  { %v5598_v6 = vpop.eup %3890  ;;  %v3119_v47 = vmul.f32 1.442695, %v3096_v60  ;;  %3141 = vadd.xlane.f32.xlu0 %v3140_v14 }
 0x5e4   :  { %v3143_v9 = vsel %vm5899_vm11, %v5598_v6, 0.0  ;;  %vm5914_vm11 = vmmov %vm5865_vm0 }
 0x5e5   :  { %3900 = vpow2.f32 %v3119_v47  ;;  %3144 = vadd.xlane.f32.xlu1 %v3143_v9 }
 0x5e7   :  { %v5602_v51 = vpop.eup %3892 }
 0x5e8   :  { %v5604_v35 = vpop.eup %3894  ;;  %v3149_v42 = vsel %vm5900_vm5, %v5602_v51, 0.0  ;;  %vm5915_vm5 = vmmov %vm5865_vm0 }
 0x5e9   :  { %3150 = vadd.xlane.f32.xlu1 %v3149_v42  ;;  %v3146_v3 = vsel %vm5901_vm15, %v5604_v35, 0.0  ;;  %vm5916_vm15 = vmmov %vm5865_vm0 }
 0x5ea   :  { %3147 = vadd.xlane.f32.xlu0 %v3146_v3 }
 0x5eb   :  { %v5610_v29 = vpop.eup %3896 }
 0x5ec   :  { %v5612_v59 = vpop.eup %3898  ;;  %v3155_v27 = vsel %vm5902_vm1, %v5610_v29, 0.0  ;;  %vm5917_vm1 = vmmov %vm5865_vm0 }
 0x5ed   :  { %3156 = vadd.xlane.f32.xlu1 %v3155_v27  ;;  %v3152_v16 = vsel %vm5903_vm7, %v5612_v59, 0.0  ;;  %vm5918_vm7 = vmmov %vm5865_vm0 }
 0x5ee   :  { %3153 = vadd.xlane.f32.xlu0 %v3152_v16 }
 0x5ef   :  { %v5618_v32 = vpop.eup %3900 }
 0x5f0   :  { %v3158_v30 = vsel %vm5904_vm14, %v5618_v32, 0.0  ;;  %vm5919_vm14 = vmmov %vm5865_vm0 }
 0x5f2   :  { %3159 = vadd.xlane.f32.xlu0 %v3158_v30 }
 0x64e   :  { %v3067_v24 = vpop.xlane.xlu1 %3066 }
 0x64f   :  { %v3097_v61 = vsub.f32 %v5557_v55, %v3067_v24 }
 0x650   :  { %v3070_v12 = vpop.xlane.xlu0 %3069 }
 0x651   :  { %v3121_v52 = vmul.f32 1.442695, %v3097_v61  ;;  %v3098_v44 = vsub.f32 %v5563_v17, %v3070_v12 }
 0x652   :  { %v3073_v50 = vpop.xlane.xlu1 %3072 }
 0x653   :  { %3902 = vpow2.f32 %v3121_v52  ;;  %v3123_v4 = vmul.f32 1.442695, %v3098_v44  ;;  %v3099_v49 = vsub.f32 %v5555_v1, %v3073_v50 }
 0x654   :  { %v3076_v36 = vpop.xlane.xlu0 %3075 }
 0x655   :  { %3904 = vpow2.f32 %v3123_v4  ;;  %v3125_v11 = vmul.f32 1.442695, %v3099_v49  ;;  %v3100_v22 = vsub.f32 %v5559_v26, %v3076_v36 }
 0x656   :  { %v3079_v23 = vpop.xlane.xlu1 %3078 }
 0x657   :  { %3906 = vpow2.f32 %v3125_v11  ;;  %v3127_v58 = vmul.f32 1.442695, %v3100_v22  ;;  %v3101_v54 = vsub.f32 %v5573_v34, %v3079_v23 }
 0x658   :  { %v3082_v55 = vpop.xlane.xlu0 %3081 }
 0x659   :  { %3908 = vpow2.f32 %v3127_v58  ;;  %v3129_v18 = vmul.f32 1.442695, %v3101_v54  ;;  %v3102_v17 = vsub.f32 %v5579_v63, %v3082_v55 }
 0x65a   :  { %v3085_v2 = vpop.xlane.xlu1 %3084 }
 0x65b   :  { %3910 = vpow2.f32 %v3129_v18  ;;  %v3131_v5 = vmul.f32 1.442695, %v3102_v17  ;;  %v3103_v1 = vsub.f32 %v5569_v40, %v3085_v2  ;;  %v3866_v17 = vld [vmem:[#allocation7] sm:$0xff]  }
 0x65c   :  { %v3088_v33 = vpop.xlane.xlu0 %3087  ;;  %3750 = vmatprep.subr.bf16.mxu0 %v3866_v17 }
 0x65d   :  { %v5629_v43 = vpop.eup %3902  ;;  %3912 = vpow2.f32 %v3131_v5  ;;  %v3133_v26 = vmul.f32 1.442695, %v3103_v1  ;;  %v3104_v20 = vsub.f32 %v5575_v57, %v3088_v33  ;;  %3751 = vmatpush3.bf16.msra.mxu0 %v3866_v17  ;;  %v5704_v17 = vld [vmem:[%s5762_s4] ss:$0 sm:$0xff]  ;;  %s4142_s4 = smov [#allocation8]  }
 0x65e   :  { %v3161_v34 = vsel %vm5905_vm2, %v5629_v43, 0.0  ;;  %vm5920_vm2 = vmmov %vm5865_vm0  ;;  %s3584_s17 = sshll.u32 %s4142_s4, 4  ;;  %s3585_s17 = int_to_ptr.vmem [resolvable:$true] %s3584_s17 }
 0x65f   :  { %v5634_v28 = vpop.eup %3904  ;;  %3914 = vpow2.f32 %v3133_v26  ;;  %v3135_v13 = vmul.f32 1.442695, %v3104_v20  ;;  %3162 = vadd.xlane.f32.xlu1 %v3161_v34  ;;  %s4043_s18 = scalar_lea.vmem %s3585_s17, 2048  ;;  %p4048_p11 = scmp.lt.s32.totalorder %s3585_s17, %s3585_s17 }
 0x660   :  { %v3164_v63 = vsel %vm5906_vm3, %v5634_v28, 0.0  ;;  %vm5921_vm3 = vmmov %vm5865_vm0  ;;  %p4044_p10 = scmp.ne.s32.totalorder %s3585_s17, %s4043_s18  ;;  %p4049_p12 = scmp.lt.s32.totalorder %s4043_s18, %s4043_s18 }
 0x661   :  { %v5638_v15 = vpop.eup %3906  ;;  %3916 = vpow2.f32 %v3135_v13  ;;  %3165 = vadd.xlane.f32.xlu0 %v3164_v63 }
 0x662   :  { %v3167_v40 = vsel %vm5907_vm4, %v5638_v15, 0.0  ;;  %vm5922_vm4 = vmmov %vm5865_vm0  ;;  %p4050_p13 = por %p4049_p12, %p4048_p11 }
 0x663   :  { %v5642_v25 = vpop.eup %3908  ;;  %3168 = vadd.xlane.f32.xlu1 %v3167_v40 }
 0x664   :  { %v3170_v57 = vsel %vm5908_vm8, %v5642_v25, 0.0  ;;  %vm5923_vm8 = vmmov %vm5865_vm0  ;;  %p4051_p0 = pnand %p4050_p13, %p4044_p10 }
 0x665   :  { %v5646_v56 = vpop.eup %3910  ;;  %3171 = vadd.xlane.f32.xlu0 %v3170_v57 }
 0x666   :  { %v3173_v37 = vsel %vm5909_vm10, %v5646_v56, 0.0  ;;  %vm5924_vm10 = vmmov %vm5865_vm0 }
 0x667   :  { %v5650_v0 = vpop.eup %3912  ;;  %3174 = vadd.xlane.f32.xlu1 %v3173_v37 }
 0x668   :  { %v3176_v39 = vsel %vm5910_vm9, %v5650_v0, 0.0  ;;  %vm5925_vm9 = vmmov %vm5865_vm0 }
 0x669   :  { %v5654_v46 = vpop.eup %3914  ;;  %3177 = vadd.xlane.f32.xlu0 %v3176_v39 }
 0x66a   :  { %v3179_v41 = vsel %vm5865_vm0, %v5654_v46, 0.0 }
 0x66b   :  { %v5658_v60 = vpop.eup %3916  ;;  %3180 = vadd.xlane.f32.xlu1 %v3179_v41 }
 0x66c   :  { %v3182_v14 = vsel %vm5911_vm6, %v5658_v60, 0.0  ;;  %vm5926_vm6 = vmmov %vm5865_vm0 }
 0x66d   :  { %3183 = vadd.xlane.f32.xlu0 %v3182_v14 }
 0x66e   :  { %v3139_v47 = vpop.xlane.xlu1 %3138 }
 0x66f   :  { %3918 = vrcp.f32 %v3139_v47 }
 0x670   :  { %v3142_v9 = vpop.xlane.xlu0 %3141 }
 0x671   :  { %3920 = vrcp.f32 %v3142_v9 }
 0x672   :  { %v3145_v42 = vpop.xlane.xlu1 %3144 }
 0x673   :  { %3922 = vrcp.f32 %v3145_v42 }
 0x676   :  { %v3151_v3 = vpop.xlane.xlu1 %3150 }
 0x677   :  { %v3148_v27 = vpop.xlane.xlu0 %3147 }
 0x678   :  { %3924 = vrcp.f32 %v3148_v27 }
 0x679   :  { %v3919_v16 = vpop.eup %3918  ;;  %3926 = vrcp.f32 %v3151_v3 }
 0x67a   :  { %v3157_v24 = vpop.xlane.xlu1 %3156  ;;  %v3201_v12 = vmul.f32 %v3919_v16, %v5589_v45 }
 0x67b   :  { %v3921_v30 = vpop.eup %3920  ;;  %v3154_v61 = vpop.xlane.xlu0 %3153 }
 0x67c   :  { %3928 = vrcp.f32 %v3154_v61  ;;  %v3202_v52 = vmul.f32 %v3921_v30, %v5593_v19 }
 0x67d   :  { %3930 = vrcp.f32 %v3157_v24  ;;  %v3923_v4 = vpop.eup %3922 }
 0x67e   :  { %v3217_v44 = vpack.c.bf16 %v3202_v52, %v3201_v12  ;;  %v3203_v36 = vmul.f32 %v3923_v4, %v5598_v6  ;;  %v3867_v6 = vld [vmem:[#allocation7 + $0x8] sm:$0xff]  }
 0x67f   :  { %v3160_v50 = vpop.xlane.xlu0 %3159  ;;  %3752 = vmatprep.subr.bf16.mxu0 %v3867_v6 }
 0x680   :  { %3932 = vrcp.f32 %v3160_v50  ;;  %3726 = vmatprep.mubr.msk.bf16.mxu1 %vm5912_vm12, %v3217_v44  ;;  %3753 = vmatpush3.bf16.msra.mxu0 %v3867_v6  ;;  %vm5927_vm12 = vmmov %vm5865_vm0 }
 0x682   :  { %v3925_v49 = vpop.eup %3924 }
 0x683   :  { %v3204_v11 = vmul.f32 %v3925_v49, %v5604_v35  ;;  %v3927_v22 = vpop.eup %3926 }
 0x684   :  { %v3205_v45 = vmul.f32 %v3927_v22, %v5602_v51 }
 0x685   :  { %v3218_v23 = vpack.c.bf16 %v3204_v11, %v3203_v36 }
 0x686   :  { %v3929_v58 = vpop.eup %3928 }
 0x687   :  { %3727 = vmatmul.mubr.msk.bf16.vlgmr.msra.gmra.mrb[16].mxu1 %vm5913_vm13, %v3218_v23  ;;  %v3206_v19 = vmul.f32 %v3929_v58, %v5612_v59  ;;  %v3931_v54 = vpop.eup %3930  ;;  %vm5928_vm13 = vmmov %vm5865_vm0 }
 0x688   :  { %3735 = vmatpush3.bf16.msra.mxu1 %v5483_v48  ;;  %v3207_v35 = vmul.f32 %v3931_v54, %v5610_v29  ;;  %v3868_v48 = vld [vmem:[#allocation7 + $0x10] sm:$0xff]   ;;  %v3869_v29 = vld [vmem:[#allocation7 + $0x18] sm:$0xff]  }
 0x689   :  { %3736 = vmatprep.subr.bf16.mxu1 %v5492_v21  ;;  %v3219_v55 = vpack.c.bf16 %v3206_v19, %v3205_v45  ;;  %3754 = vmatprep.subr.bf16.mxu0 %v3868_v48 }
 0x68a   :  { %v3933_v18 = vpop.eup %3932  ;;  %3755 = vmatpush3.bf16.msra.mxu0 %v3868_v48 }
 0x68b   :  { %3730 = vmatprep.mubr.msk.bf16.mxu1 %vm5914_vm11, %v3219_v55  ;;  %v3208_v2 = vmul.f32 %v3933_v18, %v5618_v32  ;;  %3756 = vmatprep.subr.bf16.mxu0 %v3869_v29  ;;  %vm5929_vm11 = vmmov %vm5865_vm0 }
 0x68c   :  { %3737 = vmatpush3.bf16.msra.mxu1 %v5492_v21 }
 0x68d   :  { %3738 = vmatprep.subr.bf16.mxu1 %v5501_v7  ;;  %v3220_v51 = vpack.c.bf16 %v3208_v2, %v3207_v35 }
 0x68e   :  { %3757 = vmatpush3.bf16.msra.mxu0 %v3869_v29  ;;  %v3966_v29 = vld [vmem:[#allocation2 + $0x10] sm:$0xff] }
 0x68f   :  { %3731 = vmatmul.mubr.msk.bf16.gmra.mrb[20].mxu1 %vm5915_vm5, %v3220_v51  ;;  %vm5930_vm5 = vmmov %vm5865_vm0 }
 0x690   :  { %3739 = vmatpush3.bf16.msra.mxu1 %v5501_v7 }
 0x691   :  { %3740 = vmatprep.subr.bf16.mxu1 %v5512_v8 }
 0x694   :  { %3741 = vmatpush3.bf16.msra.mxu1 %v5512_v8 }
 0x6ec   :  { %v3163_v21 = vpop.xlane.xlu1 %3162 }
 0x6ed   :  { %3934 = vrcp.f32 %v3163_v21 }
 0x6ee   :  { %v3166_v59 = vpop.xlane.xlu0 %3165 }
 0x6ef   :  { %3936 = vrcp.f32 %v3166_v59 }
 0x6f0   :  { %v3169_v32 = vpop.xlane.xlu1 %3168 }
 0x6f1   :  { %3938 = vrcp.f32 %v3169_v32 }
 0x6f2   :  { %v3172_v5 = vpop.xlane.xlu0 %3171 }
 0x6f3   :  { %3940 = vrcp.f32 %v3172_v5  ;;  %v3967_v5 = vld [vmem:[#allocation2] sm:$0xff] }
 0x6f4   :  { %v3175_v1 = vpop.xlane.xlu1 %3174 }
 0x6f5   :  { %3942 = vrcp.f32 %v3175_v1 }
 0x6f6   :  { %v3178_v7 = vpop.xlane.xlu0 %3177 }
 0x6f7   :  { %v3935_v33 = vpop.eup %3934  ;;  %3944 = vrcp.f32 %v3178_v7 }
 0x6f8   :  { %v3181_v26 = vpop.xlane.xlu1 %3180  ;;  %v3209_v34 = vmul.f32 %v3935_v33, %v5629_v43  ;;  %v3968_v33 = vld [vmem:[#allocation2 + $0x18] sm:$0xff] }
 0x6f9   :  { %v3937_v20 = vpop.eup %3936  ;;  %3946 = vrcp.f32 %v3181_v26 }
 0x6fa   :  { %v3184_v8 = vpop.xlane.xlu0 %3183  ;;  %v3210_v13 = vmul.f32 %v3937_v20, %v5634_v28  ;;  %v3969_v20 = vld [vmem:[#allocation2 + $0x8] sm:$0xff] }
 0x6fb   :  { %v3939_v63 = vpop.eup %3938  ;;  %3948 = vrcp.f32 %v3184_v8 }
 0x6fc   :  { %v3221_v40 = vpack.c.bf16 %v3210_v13, %v3209_v34  ;;  %v3211_v37 = vmul.f32 %v3939_v63, %v5638_v15 }
 0x6fd   :  { %v3941_v57 = vpop.eup %3940 }
 0x6fe   :  { %v3212_v39 = vmul.f32 %v3941_v57, %v5642_v25  ;;  %3742 = vmatprep.mubr.msk.bf16.mxu1 %vm5916_vm15, %v3221_v40  ;;  %vm5931_vm15 = vmmov %vm5865_vm0 }
 0x6ff   :  { %v3943_v41 = vpop.eup %3942 }
 0x700   :  { %v3222_v14 = vpack.c.bf16 %v3212_v39, %v3211_v37  ;;  %v3213_v9 = vmul.f32 %v3943_v41, %v5646_v56  ;;  %v3970_v37 = vld [vmem:[#allocation2 + $0x30] sm:$0xff] }
 0x701   :  { %v3945_v47 = vpop.eup %3944 }
 0x702   :  { %3743 = vmatmul.mubr.msk.bf16.vlgmr.msra.gmra.mrb[24].mxu1 %vm5917_vm1, %v3222_v14  ;;  %v3214_v43 = vmul.f32 %v3945_v47, %v5650_v0  ;;  %v3971_v47 = vld [vmem:[#allocation2 + $0x20] sm:$0xff]  ;;  %vm5932_vm1 = vmmov %vm5865_vm0 }
 0x703   :  { %v3947_v28 = vpop.eup %3946 }
 0x704   :  { %v3223_v42 = vpack.c.bf16 %v3214_v43, %v3213_v9  ;;  %v3215_v15 = vmul.f32 %v3947_v28, %v5654_v46  ;;  %v3972_v28 = vld [vmem:[#allocation2 + $0x38] sm:$0xff] }
 0x705   :  { %v3949_v3 = vpop.eup %3948 }
 0x706   :  { %3746 = vmatprep.mubr.msk.bf16.mxu1 %vm5918_vm7, %v3223_v42  ;;  %v3216_v25 = vmul.f32 %v3949_v3, %v5658_v60  ;;  %v3973_v3 = vld [vmem:[#allocation2 + $0x28] sm:$0xff]  ;;  %vm5933_vm7 = vmmov %vm5865_vm0 }
 0x708   :  { %v3224_v27 = vpack.c.bf16 %v3216_v25, %v3215_v15 }
 0x70a   :  { %3747 = vmatmul.mubr.msk.bf16.gmra.mrb[28].mxu1 %vm5919_vm14, %v3224_v27  ;;  %vm5934_vm14 = vmmov %vm5865_vm0 }
 0x75a   :  { %v3728_v16 = vpop.f32.mrb[16].mxu1 }
 0x75b   :  { %v3271_v30 = vpop.f32.mrb[17].mxu1 }
 0x75c   :  { %v3729_v24 = vpop.f32.mrb[18].mxu1 }
 0x75d   :  { %v3380_v61 = vpack.c.bf16 %v3729_v24, %v3728_v16  ;;  %v3274_v12 = vpop.f32.mrb[19].mxu1 }
 0x75e   :  { %v3379_v56 = vpack.c.bf16 %v3274_v12, %v3271_v30 }
 0x760   :  { %3758 = vmatprep.mubr.msk.bf16.mxu0 %vm5920_vm2, %v3379_v56  ;;  %vm5935_vm2 = vmmov %vm5865_vm0 }
 0x761   :  { %3759 = vmatmul.mubr.msk.bf16.vlgmr.msra.gmra.mrb[32].mxu0 %vm5921_vm3, %v3380_v61  ;;  %vm5936_vm3 = vmmov %vm5865_vm0 }
 0x762   :  { %v3732_v0 = vpop.f32.mrb[20].mxu1 }
 0x763   :  { %v3287_v52 = vpop.f32.mrb[21].mxu1 }
 0x764   :  { %v3733_v44 = vpop.f32.mrb[22].mxu1 }
 0x765   :  { %v3382_v50 = vpack.c.bf16 %v3733_v44, %v3732_v0  ;;  %v3290_v46 = vpop.f32.mrb[23].mxu1 }
 0x766   :  { %v3381_v4 = vpack.c.bf16 %v3290_v46, %v3287_v52 }
 0x768   :  { %3762 = vmatprep.mubr.msk.bf16.mxu0 %vm5922_vm4, %v3381_v4  ;;  %vm5937_vm4 = vmmov %vm5865_vm0 }
 0x769   :  { %3763 = vmatmul.mubr.msk.bf16.gmra.mrb[36].mxu0 %vm5923_vm8, %v3382_v50  ;;  %vm5938_vm8 = vmmov %vm5865_vm0 }
 0x7d5   :  { %v3744_v60 = vpop.f32.mrb[24].mxu1 }
 0x7d6   :  { %v3348_v49 = vpop.f32.mrb[25].mxu1 }
 0x7d7   :  { %v3745_v36 = vpop.f32.mrb[26].mxu1 }
 0x7d8   :  { %v3384_v11 = vpack.c.bf16 %v3745_v36, %v3744_v60  ;;  %v3351_v22 = vpop.f32.mrb[27].mxu1 }
 0x7d9   :  { %v3383_v23 = vpack.c.bf16 %v3351_v22, %v3348_v49 }
 0x7db   :  { %3766 = vmatprep.mubr.msk.bf16.mxu0 %vm5924_vm10, %v3383_v23  ;;  %vm5939_vm10 = vmmov %vm5865_vm0  ;;  %v3975_v23 = vld [vmem:[#allocation2 + $0x78] sm:$0xff] }
 0x7dc   :  { %3767 = vmatmul.mubr.msk.bf16.gmra.mrb[40].mxu0 %vm5925_vm9, %v3384_v11  ;;  %v3974_v11 = vld [vmem:[#allocation2 + $0x60] sm:$0xff]  ;;  %vm5940_vm9 = vmmov %vm5865_vm0 }
 0x7dd   :  { %v3748_v58 = vpop.f32.mrb[28].mxu1 }
 0x7de   :  { %v3364_v45 = vpop.f32.mrb[29].mxu1 }
 0x7df   :  { %v3749_v19 = vpop.f32.mrb[30].mxu1 }
 0x7e0   :  { %v3386_v54 = vpack.c.bf16 %v3749_v19, %v3748_v58  ;;  %v3367_v55 = vpop.f32.mrb[31].mxu1 }
 0x7e1   :  { %v3385_v18 = vpack.c.bf16 %v3367_v55, %v3364_v45  ;;  %v3976_v45 = vld [vmem:[#allocation2 + $0x68] sm:$0xff] }
 0x7e3   :  { %3770 = vmatprep.mubr.msk.bf16.mxu0 %vm5865_vm0, %v3385_v18 }
 0x7e4   :  { %3771 = vmatmul.mubr.msk.bf16.gmra.mrb[44].mxu0 %vm5926_vm6, %v3386_v54  ;;  %vm5941_vm6 = vmmov %vm5865_vm0 }
 0x834   :  { %v3760_v6 = vpop.f32.mrb[32].mxu0 }
 0x835   :  { %v3493_v35 = vadd.f32 %v3760_v6, %v5704_v17  ;;  %v3484_v2 = vpop.f32.mrb[33].mxu0 }
 0x836   :  { %v3485_v51 = vadd.f32 %v5704_v17, %v3484_v2  ;;  %v3761_v48 = vpop.f32.mrb[34].mxu0 }
 0x837   :  { %v3549_v21 = vadd.f32 %v3966_v29, %v3493_v35  ;;  %v3496_v59 = vadd.f32 %v3761_v48, %v5704_v17  ;;  %v3487_v32 = vpop.f32.mrb[35].mxu0 }
 0x838   :  { %v3547_v1 = vadd.f32 %v3967_v5, %v3485_v51  ;;  %v3488_v7 = vadd.f32 %v5704_v17, %v3487_v32 }
 0x839   :  { %3565 = vst.msk [vmem:[#allocation8 + $0x10] sm:$0xff] %vm5927_vm12, %v3549_v21  ;;  %v3550_v26 = vadd.f32 %v3968_v33, %v3496_v59 }
 0x83a   :  { %3563 = vst.msk [vmem:[#allocation8] sm:$0xff] %vm5928_vm13, %v3547_v1  ;;  %v3548_v8 = vadd.f32 %v3969_v20, %v3488_v7 }
 0x83b   :  { %3566 = vst.msk [vmem:[#allocation8 + $0x18] sm:$0xff] %vm5929_vm11, %v3550_v26 }
 0x83c   :  { %3564 = vst.msk [vmem:[#allocation8 + $0x8] sm:$0xff] %vm5930_vm5, %v3548_v8  ;;  %v3764_v34 = vpop.f32.mrb[36].mxu0 }
 0x83d   :  { %v3509_v13 = vadd.f32 %v3764_v34, %v5704_v17  ;;  %v3500_v63 = vpop.f32.mrb[37].mxu0 }
 0x83e   :  { %v3501_v40 = vadd.f32 %v5704_v17, %v3500_v63  ;;  %v3765_v57 = vpop.f32.mrb[38].mxu0 }
 0x83f   :  { %v3553_v39 = vadd.f32 %v3970_v37, %v3509_v13  ;;  %v3512_v41 = vadd.f32 %v3765_v57, %v5704_v17  ;;  %v3503_v14 = vpop.f32.mrb[39].mxu0 }
 0x840   :  { %v3551_v9 = vadd.f32 %v3971_v47, %v3501_v40  ;;  %v3504_v43 = vadd.f32 %v5704_v17, %v3503_v14 }
 0x841   :  { %3569 = vst.msk [vmem:[#allocation8 + $0x30] sm:$0xff] %vm5931_vm15, %v3553_v39  ;;  %v3554_v42 = vadd.f32 %v3972_v28, %v3512_v41 }
 0x842   :  { %3567 = vst.msk [vmem:[#allocation8 + $0x20] sm:$0xff] %vm5932_vm1, %v3551_v9  ;;  %v3552_v15 = vadd.f32 %v3973_v3, %v3504_v43 }
 0x843   :  { %3570 = vst.msk [vmem:[#allocation8 + $0x38] sm:$0xff] %vm5933_vm7, %v3554_v42 }
 0x844   :  { %3568 = vst.msk [vmem:[#allocation8 + $0x28] sm:$0xff] %vm5934_vm14, %v3552_v15 }
 0x8af   :  { %v3768_v25 = vpop.f32.mrb[40].mxu0 }
 0x8b0   :  { %v3525_v27 = vadd.f32 %v3768_v25, %v5704_v17  ;;  %v3516_v16 = vpop.f32.mrb[41].mxu0 }
 0x8b1   :  { %v3517_v30 = vadd.f32 %v5704_v17, %v3516_v16  ;;  %v3769_v24 = vpop.f32.mrb[42].mxu0 }
 0x8b2   :  { %v3557_v61 = vadd.f32 %v5412_v38, %v3525_v27  ;;  %v3528_v12 = vadd.f32 %v3769_v24, %v5704_v17  ;;  %v3519_v56 = vpop.f32.mrb[43].mxu0 }
 0x8b3   :  { %v3555_v0 = vadd.f32 %v5405_v53, %v3517_v30  ;;  %v3520_v52 = vadd.f32 %v5704_v17, %v3519_v56 }
 0x8b4   :  { %3573 = vst.msk [vmem:[#allocation8 + $0x50] sm:$0xff] %vm5935_vm2, %v3557_v61  ;;  %v3558_v44 = vadd.f32 %v5415_v10, %v3528_v12 }
 0x8b5   :  { %3571 = vst.msk [vmem:[#allocation8 + $0x40] sm:$0xff] %vm5936_vm3, %v3555_v0  ;;  %v3556_v50 = vadd.f32 %v5409_v31, %v3520_v52 }
 0x8b6   :  { %3574 = vst.msk [vmem:[#allocation8 + $0x58] sm:$0xff] %vm5937_vm4, %v3558_v44 }
 0x8b7   :  { %3572 = vst.msk [vmem:[#allocation8 + $0x48] sm:$0xff] %vm5938_vm8, %v3556_v50  ;;  %v3772_v38 = vpop.f32.mrb[44].mxu0 }
 0x8b8   :  { %v3541_v46 = vadd.f32 %v3772_v38, %v5704_v17  ;;  %v3532_v4 = vpop.f32.mrb[45].mxu0 }
 0x8b9   :  { %v3533_v53 = vadd.f32 %v5704_v17, %v3532_v4  ;;  %v3773_v60 = vpop.f32.mrb[46].mxu0 }
 0x8ba   :  { %v3561_v49 = vadd.f32 %v5418_v62, %v3541_v46  ;;  %v3544_v36 = vadd.f32 %v3773_v60, %v5704_v17  ;;  %v3535_v10 = vpop.f32.mrb[47].mxu0 }
 0x8bb   :  { %v3559_v31 = vadd.f32 %v3974_v11, %v3533_v53  ;;  %v3536_v22 = vadd.f32 %v5704_v17, %v3535_v10 }
 0x8bc   :  { %3577 = vst.msk [vmem:[#allocation8 + $0x70] sm:$0xff] %vm5939_vm10, %v3561_v49  ;;  %v3562_v58 = vadd.f32 %v3975_v23, %v3544_v36 }
 0x8bd   :  { %3575 = vst.msk [vmem:[#allocation8 + $0x60] sm:$0xff] %vm5940_vm9, %v3559_v31  ;;  %v3560_v19 = vadd.f32 %v3976_v45, %v3536_v22 }
 0x8be   :  { %3578 = vst.msk [vmem:[#allocation8 + $0x78] sm:$0xff] %vm5865_vm0, %v3562_v58 }
 0x8bf   :  { %3576 = vst.msk [vmem:[#allocation8 + $0x68] sm:$0xff] %vm5941_vm6, %v3560_v19 }
 0x8c0   :  { %4054 = shalt.err (!%p4051_p0)
}
 0x8c1   :  { %s4055_s22 = scalar_lea.hbm %s5763_s5, 2048 }
 0x8c2   :  { %p4056_p1 = scmp.ne.s32.totalorder %s5763_s5, %s4055_s22  ;;  %p4059_p2 = scmp.lt.u32.totalorder %s4055_s22, %s5763_s5 }
 0x8c4   :  { %p4061_p3 = pnand %p4059_p2, %p4056_p1 }
 0x8c6   :  { %4064 = shalt.err (!%p4061_p3)
}
 0x8c7   :  { %s5942_s27 = smov 128  }
 0x8c8   :  { %3590 = dma.vmem_to_hbm [thread:$0]  %s3585_s17, 2048, %s5763_s5, [#allocation4], %s5942_s27, %s5942_s27, %s4074_s6  }
 0x8c9   :  { %4069 = dma.done.wait [#allocation4], 2048  }
 0x8ca   :  { %4070 = vsyncadd [#allocation4], 4294965248 }
 0x8cb   :  { %3594 = vsyncpa [#allocation3], 1 }
 0x8cc   :  { %3595 = vsyncpa [#allocation6], 1 }
 0x8cd   :  { %3596 = vsyncpa [#allocation4], 1 }

</bundles_post_ra>
